<compile_context>
chip_gen: v5e
topology: v5e:2x2
jax: 0.10.0
libtpu: 0.0.40
codegen_flags: <defaults>
</compile_context>

<pallas_src>
import math

import jax
import jax.numpy as jnp
from jax import lax
from jax.experimental import pallas as pl
from jax.experimental.pallas import tpu as pltpu


# ----------------------------- fused Pallas kernel ---------------------------

def _decoder_fused_kernel(
        # token-tiled, layer-invariant inputs
        x0_ref, refin_ref, refpts_ref,
        # layer-invariant constants / weights (constant index maps -> DMA once)
        invdt_ref, phase_ref,
        rw1_ref, rb1_ref, rw2_ref, rb2_ref,
        # per-layer (stacked) weights, leading layer dim squeezed away
        lw1_ref, lb1_ref, lw2_ref, lb2_ref,
        bw1_ref, bb1_ref, bw2_ref, bb2_ref, bw3_ref, bb3_ref,
        nw_ref, nb_ref,
        # outputs (one block per (token-tile, layer) step)
        inter_ref, newref_ref,
        # scratch (persists across the sequential layer axis)
        out_carry, qpos_sc, unsig_sc):
    layer = pl.program_id(1)

    @pl.when(layer == 0)
    def _init():
        # carried decoder state for this token tile
        out_carry[...] = x0_ref[...]

        # gen_sineembed_for_position fused with the first ref_point_head matmul:
        # qse = cat(pos_y, pos_x, pos_w, pos_h)  (coords 1,0,2,3), and
        # qse @ W1 is computed as 4 partial K=128 matmuls against W1 reshaped
        # to (4,128,H)  -> no (TM,512) concat copy in VMEM.
        invdt = invdt_ref[...]            # (1,128) = 2*pi / dim_t
        phase = phase_ref[...]            # 0 on even lanes, pi/2 on odd lanes
        ref = refin_ref[...]              # (TM,4) = reference_points_input[:, :, 0, :]

        acc = None
        for idx, c in enumerate((1, 0, 2, 3)):
            # even lanes: sin(p); odd lanes: sin(p + pi/2) == cos(p)
            e = jnp.sin(ref[:, c:c + 1] * invdt + phase)        # (TM,128) f32
            part = jnp.dot(e.astype(jnp.bfloat16), rw1_ref[idx],
                           preferred_element_type=jnp.float32)  # (TM,H) f32
            acc = part if acc is None else acc + part

        # query_pos = ref_point_head(query_sine_embed); pos_scale = 1
        h = jnp.maximum(acc + rb1_ref[...], 0.0)
        qpos_sc[...] = jnp.dot(h.astype(jnp.bfloat16), rw2_ref[...],
                               preferred_element_type=jnp.float32) + rb2_ref[...]

        # inverse_sigmoid(reference_points) -- also layer-invariant
        eps = 1e-4
        r = jnp.clip(refpts_ref[...], 0.0, 1.0)
        unsig_sc[...] = jnp.log(jnp.maximum(r, eps) / jnp.maximum(1.0 - r, eps))

    # ---- decoder layer ----
    # TODO(synk): the real DeformableTransformerDecoderLayer (self-attn +
    # deformable cross-attn + FFN) is an external dependency not provided in
    # the spec; stand-in = per-token residual FFN conditioned on query_pos
    # (memory / masks / reference_points_input are unused).
    x = out_carry[...]
    z = (x + qpos_sc[...]).astype(jnp.bfloat16)
    h = jnp.maximum(
        jnp.dot(z, lw1_ref[...], preferred_element_type=jnp.float32)
        + lb1_ref[...], 0.0)
    x = x + jnp.dot(h.astype(jnp.bfloat16), lw2_ref[...],
                    preferred_element_type=jnp.float32) + lb2_ref[...]
    out_carry[...] = x

    # ---- bbox_embed (Linear-ReLU-Linear-ReLU-Linear) + inv_sigmoid + sigmoid ----
    h2 = jnp.maximum(
        jnp.dot(x.astype(jnp.bfloat16), bw1_ref[...],
                preferred_element_type=jnp.float32) + bb1_ref[...], 0.0)
    h2 = jnp.maximum(
        jnp.dot(h2.astype(jnp.bfloat16), bw2_ref[...],
                preferred_element_type=jnp.float32) + bb2_ref[...], 0.0)
    delta = jnp.dot(h2.astype(jnp.bfloat16), bw3_ref[...],
                    preferred_element_type=jnp.float32) + bb3_ref[...]
    unsig = delta + unsig_sc[...]
    newref_ref[...] = 1.0 / (1.0 + jnp.exp(-unsig))

    # ---- intermediate.append(norm(output)) ----
    mean = jnp.mean(x, axis=-1, keepdims=True)
    var = jnp.mean((x - mean) ** 2, axis=-1, keepdims=True)
    inter_ref[...] = (x - mean) * lax.rsqrt(var + 1e-5) * nw_ref[...] + nb_ref[...]


# ----------------------------- BlockSpec helpers -----------------------------

def _const_spec(shape):
    """Whole array as one block, identical across the grid (DMA'd once)."""
    nd = len(shape)
    return pl.BlockSpec(tuple(shape), lambda m, l, _nd=nd: (0,) * _nd)


def _layer_spec(shape):
    """Stacked (L, ...) array: select block `l`, squeeze the leading layer dim."""
    nd = len(shape) - 1
    return pl.BlockSpec((None,) + tuple(shape[1:]),
                        lambda m, l, _nd=nd: (l,) + (0,) * _nd)


def _token_spec(shape, tm):
    """(N, D) array tiled along tokens: block `m` along the first axis."""
    nd = len(shape) - 1
    return pl.BlockSpec((tm,) + tuple(shape[1:]),
                        lambda m, l, _nd=nd: (m,) + (0,) * _nd)


# ----------------------------- parameters ------------------------------------

def init_params(key, hidden, layer_nums):
    keys = iter(jax.random.split(key, 128))

    def lin(in_d, out_d):
        # weights stored in bf16 (matmul operands); biases stay f32
        w = (jax.random.normal(next(keys), (in_d, out_d), jnp.float32)
             / math.sqrt(in_d)).astype(jnp.bfloat16)
        b = jax.random.normal(next(keys), (1, out_d), jnp.float32) * 0.01
        return w, b

    def lin_stack(n, in_d, out_d):
        ws, bs = [], []
        for _ in range(n):
            w, b = lin(in_d, out_d)
            ws.append(w)
            bs.append(b)
        return jnp.stack(ws), jnp.stack(bs)          # (n,in,out) bf16, (n,1,out) f32

    params = {"layer_nums": layer_nums}

    # ref_point_head: DINODETRMLPHead(2*H, H, H, num_layers=2)
    w1, b1 = lin(2 * hidden, hidden)
    w2, b2 = lin(hidden, hidden)
    params["ref_point_head"] = {"w1": w1, "b1": b1, "w2": w2, "b2": b2}

    # stand-in decoder layers (one parameter set per layer, stacked over L)
    lw1, lb1 = lin_stack(layer_nums, hidden, hidden)
    lw2, lb2 = lin_stack(layer_nums, hidden, hidden)
    params["layers"] = {"w1": lw1, "b1": lb1, "w2": lw2, "b2": lb2}

    # bbox_embed: one DINODETRMLPHead(H, H, 4, num_layers=3) per decoder layer
    bw1, bb1 = lin_stack(layer_nums, hidden, hidden)
    bw2, bb2 = lin_stack(layer_nums, hidden, hidden)
    bw3, bb3 = lin_stack(layer_nums, hidden, 4)
    params["bbox_embed"] = {"w1": bw1, "b1": bb1, "w2": bw2, "b2": bb2,
                            "w3": bw3, "b3": bb3}

    # nn.LayerNorm(hidden): weight=1, bias=0 (f32)
    params["norm_w"] = jnp.ones((1, hidden), jnp.float32)
    params["norm_b"] = jnp.zeros((1, hidden), jnp.float32)

    # dim_t = 10000 ** (2 * (arange(128) // 2) / 128)
    i = jnp.arange(128, dtype=jnp.float32)
    dim_t = 10000.0 ** (2.0 * jnp.floor(i / 2.0) / 128.0)
    params["dim_t"] = dim_t.reshape(1, 128)                       # JAX reference
    params["inv_dim_t"] = ((2.0 * math.pi) / dim_t).reshape(1, 128)
    # phase: 0 on even lanes (sin), pi/2 on odd lanes (cos == sin(x + pi/2))
    params["phase"] = jnp.where((jnp.arange(128) % 2) == 0, 0.0,
                                math.pi / 2.0).astype(jnp.float32).reshape(1, 128)
    return params


# ----------------------------- decoder forward -------------------------------

def transformer_decoder_forward(params, tgt, memory, refpoints_unsigmoid,
                                valid_ratios, token_tile=None):
    Q, B, H = tgt.shape
    assert H == 256, "gen_sineembed hardcodes 128 dims/coord -> hidden must be 256"
    N = Q * B
    L = params["layer_nums"]

    # token tile: as large as possible (>=128 at production sizes), /8 aligned
    if token_tile is None:
        token_tile = min(128, N)
    TM = token_tile
    assert N % TM == 0 and TM % 8 == 0, "token tile must divide N and be /8"
    MT = N // TM

    reference_points = jax.nn.sigmoid(refpoints_unsigmoid)              # (Q,B,4)
    cat_vr = jnp.concatenate([valid_ratios, valid_ratios], axis=-1)     # (B,Lv,4)
    # reference_points_input[:, :, 0, :] (level 0) flattened to (N, 4)
    ref_in0 = (reference_points * cat_vr[None, :, 0, :]).reshape(N, 4)
    refpts_flat = reference_points.reshape(N, 4)
    x0 = tgt.reshape(N, H)

    rph = params["ref_point_head"]
    lyr = params["layers"]
    bbx = params["bbox_embed"]

    # first ref_point_head weight reshaped to (4,128,H) for the chunked matmul
    rw1s = rph["w1"].reshape(4, 128, H)

    inputs = (x0, ref_in0, refpts_flat, params["inv_dim_t"], params["phase"],
              rw1s, rph["b1"], rph["w2"], rph["b2"],
              lyr["w1"], lyr["b1"], lyr["w2"], lyr["b2"],
              bbx["w1"], bbx["b1"], bbx["w2"], bbx["b2"], bbx["w3"], bbx["b3"],
              params["norm_w"], params["norm_b"])

    in_specs = [
        _token_spec((N, H), TM), _token_spec((N, 4), TM), _token_spec((N, 4), TM),
        _const_spec((1, 128)), _const_spec((1, 128)),
        _const_spec(rw1s.shape), _const_spec(rph["b1"].shape),
        _const_spec(rph["w2"].shape), _const_spec(rph["b2"].shape),
        _layer_spec(lyr["w1"].shape), _layer_spec(lyr["b1"].shape),
        _layer_spec(lyr["w2"].shape), _layer_spec(lyr["b2"].shape),
        _layer_spec(bbx["w1"].shape), _layer_spec(bbx["b1"].shape),
        _layer_spec(bbx["w2"].shape), _layer_spec(bbx["b2"].shape),
        _layer_spec(bbx["w3"].shape), _layer_spec(bbx["b3"].shape),
        _const_spec(params["norm_w"].shape), _const_spec(params["norm_b"].shape),
    ]

    out_shape = (jax.ShapeDtypeStruct((L, N, H), jnp.float32),
                 jax.ShapeDtypeStruct((L, N, 4), jnp.float32))
    out_specs = [pl.BlockSpec((None, TM, H), lambda m, l: (l, m, 0)),
                 pl.BlockSpec((None, TM, 4), lambda m, l: (l, m, 0))]

    inter_stack, newref_stack = pl.pallas_call(
        _decoder_fused_kernel,
        out_shape=out_shape,
        grid_spec=pltpu.PrefetchScalarGridSpec(
            num_scalar_prefetch=0,
            grid=(MT, L),                              # (token-parallel, layer-seq)
            in_specs=in_specs,
            out_specs=out_specs,
            scratch_shapes=[pltpu.VMEM((TM, H), jnp.float32),    # carried `output`
                            pltpu.VMEM((TM, H), jnp.float32),    # query_pos cache
                            pltpu.VMEM((TM, 4), jnp.float32)]),  # inverse_sigmoid(ref)
        compiler_params=pltpu.CompilerParams(
            dimension_semantics=("parallel", "arbitrary"),
            vmem_limit_bytes=32 * 1024 * 1024),
    )(*inputs)

    intermediate = [inter_stack[l].reshape(Q, B, H) for l in range(L)]
    ref_points = [reference_points] + [newref_stack[l].reshape(Q, B, 4)
                                       for l in range(L)]
    # [ [itm.transpose(0,1)], [ref.transpose(0,1)] ]
    return ([jnp.transpose(x, (1, 0, 2)) for x in intermediate],
            [jnp.transpose(x, (1, 0, 2)) for x in ref_points])


# ----------------------------- pure-JAX reference ----------------------------

def _forward_reference(params, tgt, memory, refpoints_unsigmoid, valid_ratios):
    """Reference with the same bf16-operand / f32-accumulate matmul semantics."""
    Q, B, H = tgt.shape
    N = Q * B
    dim_t = params["dim_t"]
    scale = 2.0 * math.pi
    even = (jnp.arange(128) % 2) == 0

    def mm(a, w):  # bf16 mixed precision matmul, f32 accumulation
        return jnp.dot(a.astype(jnp.bfloat16), w,
                       preferred_element_type=jnp.float32)

    def sine(ref):
        def emb(c):
            p = (ref[:, c:c + 1] * scale) / dim_t
            return jnp.where(even[None, :], jnp.sin(p), jnp.cos(p))
        return jnp.concatenate([emb(1), emb(0), emb(2), emb(3)], axis=-1)

    output = tgt
    reference_points = jax.nn.sigmoid(refpoints_unsigmoid)
    ref_points = [reference_points]
    intermediate = []
    cat_vr = jnp.concatenate([valid_ratios, valid_ratios], axis=-1)
    rph = params["ref_point_head"]
    for layer_id in range(params["layer_nums"]):
        rin = (reference_points[:, :, None, :] * cat_vr[None])[:, :, 0, :].reshape(N, 4)
        qse = sine(rin)
        qp = mm(jnp.maximum(mm(qse, rph["w1"]) + rph["b1"], 0.0),
                rph["w2"]) + rph["b2"]
        lw1 = params["layers"]["w1"][layer_id]
        lb1 = params["layers"]["b1"][layer_id]
        lw2 = params["layers"]["w2"][layer_id]
        lb2 = params["layers"]["b2"][layer_id]
        xf = output.reshape(N, H)
        h = jnp.maximum(mm(xf + qp, lw1) + lb1, 0.0)
        xf = xf + mm(h, lw2) + lb2
        output = xf.reshape(Q, B, H)
        bw1 = params["bbox_embed"]["w1"][layer_id]
        bb1 = params["bbox_embed"]["b1"][layer_id]
        bw2 = params["bbox_embed"]["w2"][layer_id]
        bb2 = params["bbox_embed"]["b2"][layer_id]
        bw3 = params["bbox_embed"]["w3"][layer_id]
        bb3 = params["bbox_embed"]["b3"][layer_id]
        h = jnp.maximum(mm(xf, bw1) + bb1, 0.0)
        h = jnp.maximum(mm(h, bw2) + bb2, 0.0)
        delta = mm(h, bw3) + bb3
        r = jnp.clip(reference_points.reshape(N, 4), 0.0, 1.0)
        unsig = delta + jnp.log(jnp.maximum(r, 1e-4) / jnp.maximum(1.0 - r, 1e-4))
        ref_points.append(jax.nn.sigmoid(unsig).reshape(Q, B, 4))
        mean = jnp.mean(xf, axis=-1, keepdims=True)
        var = jnp.mean((xf - mean) ** 2, axis=-1, keepdims=True)
        normed = (xf - mean) * lax.rsqrt(var + 1e-5) * params["norm_w"] + params["norm_b"]
        intermediate.append(normed.reshape(Q, B, H))
    return ([jnp.transpose(x, (1, 0, 2)) for x in intermediate],
            [jnp.transpose(x, (1, 0, 2)) for x in ref_points])


# ----------------------------- main ------------------------------------------

if __name__ == "__main__":
    key = jax.random.PRNGKey(0)
    # hidden_inplanes must be 256: gen_sineembed hardcodes 128 dims per coord,
    # 4 coords -> 512 == 2 * hidden_inplanes (ref_point_head input dim).
    Q, B, H, Lv, S = 16, 2, 256, 2, 8
    layer_nums = 2

    k_params, k_tgt, k_mem, k_ref, k_vr = jax.random.split(key, 5)
    params = init_params(k_params, H, layer_nums)

    tgt = jax.random.normal(k_tgt, (Q, B, H), jnp.float32)
    memory = jax.random.normal(k_mem, (S, B, H), jnp.float32)   # unused by stand-in layer
    refpoints_unsigmoid = jax.random.normal(k_ref, (Q, B, 4), jnp.float32)
    valid_ratios = jax.random.uniform(k_vr, (B, Lv, 2), jnp.float32,
                                      minval=0.5, maxval=1.0)

    # token_tile=16 -> grid=(2, layer_nums): exercises the token-parallel axis
    # and the per-tile carry re-init even at this toy size.
    intermediate, ref_points = transformer_decoder_forward(
        params, tgt, memory, refpoints_unsigmoid, valid_ratios, token_tile=16)
    jax.block_until_ready(intermediate)
    jax.block_until_ready(ref_points)

    inter_ref, refs_ref = _forward_reference(
        params, tgt, memory, refpoints_unsigmoid, valid_ratios)
    for a, b in zip(intermediate + ref_points, inter_ref + refs_ref):
        assert a.shape == b.shape
        # kernel and reference use identical bf16-operand / f32-accumulate
        # matmul semantics; tolerance covers accumulation-order differences.
        assert jnp.allclose(a, b, rtol=1e-2, atol=1e-2), "kernel/reference mismatch"

    print("KERNEL_OK")
</pallas_src>

<mosaic_0001>
module attributes {stable_mosaic.version = 11 : i64} {
  func.func @_decoder_fused_kernel(%arg0: i32, %arg1: i32, %arg2: memref<16x256xf32, #tpu.memory_space<vmem>>, %arg3: memref<16x4xf32, #tpu.memory_space<vmem>>, %arg4: memref<16x4xf32, #tpu.memory_space<vmem>>, %arg5: memref<1x128xf32, #tpu.memory_space<vmem>>, %arg6: memref<1x128xf32, #tpu.memory_space<vmem>>, %arg7: memref<4x128x256xbf16, #tpu.memory_space<vmem>>, %arg8: memref<1x256xf32, #tpu.memory_space<vmem>>, %arg9: memref<256x256xbf16, #tpu.memory_space<vmem>>, %arg10: memref<1x256xf32, #tpu.memory_space<vmem>>, %arg11: memref<1x256x256xbf16, #tpu.memory_space<vmem>>, %arg12: memref<1x1x256xf32, #tpu.memory_space<vmem>>, %arg13: memref<1x256x256xbf16, #tpu.memory_space<vmem>>, %arg14: memref<1x1x256xf32, #tpu.memory_space<vmem>>, %arg15: memref<1x256x256xbf16, #tpu.memory_space<vmem>>, %arg16: memref<1x1x256xf32, #tpu.memory_space<vmem>>, %arg17: memref<1x256x256xbf16, #tpu.memory_space<vmem>>, %arg18: memref<1x1x256xf32, #tpu.memory_space<vmem>>, %arg19: memref<1x256x4xbf16, #tpu.memory_space<vmem>>, %arg20: memref<1x1x4xf32, #tpu.memory_space<vmem>>, %arg21: memref<1x256xf32, #tpu.memory_space<vmem>>, %arg22: memref<1x256xf32, #tpu.memory_space<vmem>>, %arg23: memref<1x16x256xf32, #tpu.memory_space<vmem>>, %arg24: memref<1x16x4xf32, #tpu.memory_space<vmem>>, %arg25: memref<16x256xf32, #tpu.memory_space<vmem>>, %arg26: memref<16x256xf32, #tpu.memory_space<vmem>>, %arg27: memref<16x4xf32, #tpu.memory_space<vmem>>) attributes {dimension_semantics = [#tpu.dimension_semantics<parallel>, #tpu.dimension_semantics<arbitrary>], iteration_bounds = array<i64: 2, 2>, scalar_prefetch = 0 : i64, scratch_operands = 3 : i64, tpu.core_type = #tpu.core_type<tc>, window_params = [{transform_indices = @transform_0, window_bounds = array<i64: 16, 256>}, {transform_indices = @transform_1, window_bounds = array<i64: 16, 4>}, {transform_indices = @transform_2, window_bounds = array<i64: 16, 4>}, {pipeline_mode = #tpu.pipeline_mode<synchronous>, transform_indices = @transform_3, window_bounds = array<i64: 1, 128>}, {pipeline_mode = #tpu.pipeline_mode<synchronous>, transform_indices = @transform_4, window_bounds = array<i64: 1, 128>}, {pipeline_mode = #tpu.pipeline_mode<synchronous>, transform_indices = @transform_5, window_bounds = array<i64: 4, 128, 256>}, {pipeline_mode = #tpu.pipeline_mode<synchronous>, transform_indices = @transform_6, window_bounds = array<i64: 1, 256>}, {pipeline_mode = #tpu.pipeline_mode<synchronous>, transform_indices = @transform_7, window_bounds = array<i64: 256, 256>}, {pipeline_mode = #tpu.pipeline_mode<synchronous>, transform_indices = @transform_8, window_bounds = array<i64: 1, 256>}, {transform_indices = @transform_9, window_bounds = array<i64: 1, 256, 256>}, {transform_indices = @transform_10, window_bounds = array<i64: 1, 1, 256>}, {transform_indices = @transform_11, window_bounds = array<i64: 1, 256, 256>}, {transform_indices = @transform_12, window_bounds = array<i64: 1, 1, 256>}, {transform_indices = @transform_13, window_bounds = array<i64: 1, 256, 256>}, {transform_indices = @transform_14, window_bounds = array<i64: 1, 1, 256>}, {transform_indices = @transform_15, window_bounds = array<i64: 1, 256, 256>}, {transform_indices = @transform_16, window_bounds = array<i64: 1, 1, 256>}, {transform_indices = @transform_17, window_bounds = array<i64: 1, 256, 4>}, {transform_indices = @transform_18, window_bounds = array<i64: 1, 1, 4>}, {pipeline_mode = #tpu.pipeline_mode<synchronous>, transform_indices = @transform_19, window_bounds = array<i64: 1, 256>}, {pipeline_mode = #tpu.pipeline_mode<synchronous>, transform_indices = @transform_20, window_bounds = array<i64: 1, 256>}, {transform_indices = @transform_21, window_bounds = array<i64: 1, 16, 256>}, {transform_indices = @transform_22, window_bounds = array<i64: 1, 16, 4>}]} {
    %c0_i32 = arith.constant 0 : i32
    %0 = arith.cmpi eq, %arg1, %c0_i32 : i32
    %1 = arith.extui %0 : i1 to i32
    %c0_i32_0 = arith.constant 0 : i32
    %2 = arith.cmpi ne, %1, %c0_i32_0 : i32
    scf.if %2 {
      %c0_63 = arith.constant 0 : index
      %c0_64 = arith.constant 0 : index
      %93 = vector.load %arg2[%c0_63, %c0_64] : memref<16x256xf32, #tpu.memory_space<vmem>>, vector<16x256xf32>
      %c0_65 = arith.constant 0 : index
      %c0_66 = arith.constant 0 : index
      %94 = vector.load %arg25[%c0_65, %c0_66] : memref<16x256xf32, #tpu.memory_space<vmem>>, vector<16x256xf32>
      tpu.vector_store %arg25[%c0_65, %c0_66], %93 {strides = array<i32>} : memref<16x256xf32, #tpu.memory_space<vmem>>, vector<16x256xf32>,
      %c0_67 = arith.constant 0 : index
      %c0_68 = arith.constant 0 : index
      %95 = vector.load %arg5[%c0_67, %c0_68] : memref<1x128xf32, #tpu.memory_space<vmem>>, vector<1x128xf32>
      %c0_69 = arith.constant 0 : index
      %c0_70 = arith.constant 0 : index
      %96 = vector.load %arg6[%c0_69, %c0_70] : memref<1x128xf32, #tpu.memory_space<vmem>>, vector<1x128xf32>
      %c0_71 = arith.constant 0 : index
      %c0_72 = arith.constant 0 : index
      %97 = vector.load %arg3[%c0_71, %c0_72] : memref<16x4xf32, #tpu.memory_space<vmem>>, vector<16x4xf32>
      %98 = vector.extract_strided_slice %97 {offsets = [0, 1], sizes = [16, 1], strides = [1, 1]} : vector<16x4xf32> to vector<16x1xf32>
      %99 = vector.broadcast %98 : vector<16x1xf32> to vector<16x128xf32>
      %100 = vector.broadcast %95 : vector<1x128xf32> to vector<16x128xf32>
      %101 = arith.mulf %99, %100 : vector<16x128xf32>
      %102 = vector.broadcast %96 : vector<1x128xf32> to vector<16x128xf32>
      %103 = arith.addf %101, %102 : vector<16x128xf32>
      %104 = math.sin %103 : vector<16x128xf32>
      %105 = arith.truncf %104 : vector<16x128xf32> to vector<16x128xbf16>
      %c0_73 = arith.constant 0 : index
      %c0_74 = arith.constant 0 : index
      %c0_75 = arith.constant 0 : index
      %106 = vector.load %arg7[%c0_73, %c0_74, %c0_75] : memref<4x128x256xbf16, #tpu.memory_space<vmem>>, vector<1x128x256xbf16>
      %107 = vector.shape_cast %106 : vector<1x128x256xbf16> to vector<128x256xbf16>
      %cst_76 = arith.constant dense<0.000000e+00> : vector<16x256xf32>
      %108 = tpu.matmul %105, %107, %cst_76 {dimension_numbers = #tpu.dot_dimension_numbers<[1], [0], [0], [1], [0, 0, 1, 1], [], []>} : vector<16x128xbf16>, vector<128x256xbf16>, vector<16x256xf32> -> vector<16x256xf32>
      %109 = vector.extract_strided_slice %97 {offsets = [0, 0], sizes = [16, 1], strides = [1, 1]} : vector<16x4xf32> to vector<16x1xf32>
      %110 = vector.broadcast %109 : vector<16x1xf32> to vector<16x128xf32>
      %111 = vector.broadcast %95 : vector<1x128xf32> to vector<16x128xf32>
      %112 = arith.mulf %110, %111 : vector<16x128xf32>
      %113 = vector.broadcast %96 : vector<1x128xf32> to vector<16x128xf32>
      %114 = arith.addf %112, %113 : vector<16x128xf32>
      %115 = math.sin %114 : vector<16x128xf32>
      %116 = arith.truncf %115 : vector<16x128xf32> to vector<16x128xbf16>
      %c1 = arith.constant 1 : index
      %c0_77 = arith.constant 0 : index
      %c0_78 = arith.constant 0 : index
      %117 = vector.load %arg7[%c1, %c0_77, %c0_78] : memref<4x128x256xbf16, #tpu.memory_space<vmem>>, vector<1x128x256xbf16>
      %118 = vector.shape_cast %117 : vector<1x128x256xbf16> to vector<128x256xbf16>
      %cst_79 = arith.constant dense<0.000000e+00> : vector<16x256xf32>
      %119 = tpu.matmul %116, %118, %cst_79 {dimension_numbers = #tpu.dot_dimension_numbers<[1], [0], [0], [1], [0, 0, 1, 1], [], []>} : vector<16x128xbf16>, vector<128x256xbf16>, vector<16x256xf32> -> vector<16x256xf32>
      %120 = arith.addf %108, %119 : vector<16x256xf32>
      %121 = vector.extract_strided_slice %97 {offsets = [0, 2], sizes = [16, 1], strides = [1, 1]} : vector<16x4xf32> to vector<16x1xf32>
      %122 = vector.broadcast %121 : vector<16x1xf32> to vector<16x128xf32>
      %123 = vector.broadcast %95 : vector<1x128xf32> to vector<16x128xf32>
      %124 = arith.mulf %122, %123 : vector<16x128xf32>
      %125 = vector.broadcast %96 : vector<1x128xf32> to vector<16x128xf32>
      %126 = arith.addf %124, %125 : vector<16x128xf32>
      %127 = math.sin %126 : vector<16x128xf32>
      %128 = arith.truncf %127 : vector<16x128xf32> to vector<16x128xbf16>
      %c2 = arith.constant 2 : index
      %c0_80 = arith.constant 0 : index
      %c0_81 = arith.constant 0 : index
      %129 = vector.load %arg7[%c2, %c0_80, %c0_81] : memref<4x128x256xbf16, #tpu.memory_space<vmem>>, vector<1x128x256xbf16>
      %130 = vector.shape_cast %129 : vector<1x128x256xbf16> to vector<128x256xbf16>
      %cst_82 = arith.constant dense<0.000000e+00> : vector<16x256xf32>
      %131 = tpu.matmul %128, %130, %cst_82 {dimension_numbers = #tpu.dot_dimension_numbers<[1], [0], [0], [1], [0, 0, 1, 1], [], []>} : vector<16x128xbf16>, vector<128x256xbf16>, vector<16x256xf32> -> vector<16x256xf32>
      %132 = arith.addf %120, %131 : vector<16x256xf32>
      %133 = vector.extract_strided_slice %97 {offsets = [0, 3], sizes = [16, 1], strides = [1, 1]} : vector<16x4xf32> to vector<16x1xf32>
      %134 = vector.broadcast %133 : vector<16x1xf32> to vector<16x128xf32>
      %135 = vector.broadcast %95 : vector<1x128xf32> to vector<16x128xf32>
      %136 = arith.mulf %134, %135 : vector<16x128xf32>
      %137 = vector.broadcast %96 : vector<1x128xf32> to vector<16x128xf32>
      %138 = arith.addf %136, %137 : vector<16x128xf32>
      %139 = math.sin %138 : vector<16x128xf32>
      %140 = arith.truncf %139 : vector<16x128xf32> to vector<16x128xbf16>
      %c3 = arith.constant 3 : index
      %c0_83 = arith.constant 0 : index
      %c0_84 = arith.constant 0 : index
      %141 = vector.load %arg7[%c3, %c0_83, %c0_84] : memref<4x128x256xbf16, #tpu.memory_space<vmem>>, vector<1x128x256xbf16>
      %142 = vector.shape_cast %141 : vector<1x128x256xbf16> to vector<128x256xbf16>
      %cst_85 = arith.constant dense<0.000000e+00> : vector<16x256xf32>
      %143 = tpu.matmul %140, %142, %cst_85 {dimension_numbers = #tpu.dot_dimension_numbers<[1], [0], [0], [1], [0, 0, 1, 1], [], []>} : vector<16x128xbf16>, vector<128x256xbf16>, vector<16x256xf32> -> vector<16x256xf32>
      %144 = arith.addf %132, %143 : vector<16x256xf32>
      %c0_86 = arith.constant 0 : index
      %c0_87 = arith.constant 0 : index
      %145 = vector.load %arg8[%c0_86, %c0_87] : memref<1x256xf32, #tpu.memory_space<vmem>>, vector<1x256xf32>
      %146 = vector.broadcast %145 : vector<1x256xf32> to vector<16x256xf32>
      %147 = arith.addf %144, %146 : vector<16x256xf32>
      %cst_88 = arith.constant 0.000000e+00 : f32
      %148 = vector.broadcast %cst_88 : f32 to vector<16x256xf32>
      %149 = arith.maximumf %147, %148 : vector<16x256xf32>
      %150 = arith.truncf %149 : vector<16x256xf32> to vector<16x256xbf16>
      %c0_89 = arith.constant 0 : index
      %c0_90 = arith.constant 0 : index
      %151 = vector.load %arg9[%c0_89, %c0_90] : memref<256x256xbf16, #tpu.memory_space<vmem>>, vector<256x256xbf16>
      %cst_91 = arith.constant dense<0.000000e+00> : vector<16x256xf32>
      %152 = tpu.matmul %150, %151, %cst_91 {dimension_numbers = #tpu.dot_dimension_numbers<[1], [0], [0], [1], [0, 0, 1, 1], [], []>} : vector<16x256xbf16>, vector<256x256xbf16>, vector<16x256xf32> -> vector<16x256xf32>
      %c0_92 = arith.constant 0 : index
      %c0_93 = arith.constant 0 : index
      %153 = vector.load %arg10[%c0_92, %c0_93] : memref<1x256xf32, #tpu.memory_space<vmem>>, vector<1x256xf32>
      %154 = vector.broadcast %153 : vector<1x256xf32> to vector<16x256xf32>
      %155 = arith.addf %152, %154 : vector<16x256xf32>
      %c0_94 = arith.constant 0 : index
      %c0_95 = arith.constant 0 : index
      %156 = vector.load %arg26[%c0_94, %c0_95] : memref<16x256xf32, #tpu.memory_space<vmem>>, vector<16x256xf32>
      tpu.vector_store %arg26[%c0_94, %c0_95], %155 {strides = array<i32>} : memref<16x256xf32, #tpu.memory_space<vmem>>, vector<16x256xf32>,
      %c0_96 = arith.constant 0 : index
      %c0_97 = arith.constant 0 : index
      %157 = vector.load %arg4[%c0_96, %c0_97] : memref<16x4xf32, #tpu.memory_space<vmem>>, vector<16x4xf32>
      %cst_98 = arith.constant 0.000000e+00 : f32
      %cst_99 = arith.constant 1.000000e+00 : f32
      %158 = vector.broadcast %cst_98 : f32 to vector<16x4xf32>
      %159 = arith.maximumf %158, %157 : vector<16x4xf32>
      %160 = vector.broadcast %cst_99 : f32 to vector<16x4xf32>
      %161 = arith.minimumf %160, %159 : vector<16x4xf32>
      %cst_100 = arith.constant 9.99999974E-5 : f32
      %162 = vector.broadcast %cst_100 : f32 to vector<16x4xf32>
      %163 = arith.maximumf %161, %162 : vector<16x4xf32>
      %cst_101 = arith.constant 1.000000e+00 : f32
      %164 = vector.broadcast %cst_101 : f32 to vector<16x4xf32>
      %165 = arith.subf %164, %161 : vector<16x4xf32>
      %cst_102 = arith.constant 9.99999974E-5 : f32
      %166 = vector.broadcast %cst_102 : f32 to vector<16x4xf32>
      %167 = arith.maximumf %165, %166 : vector<16x4xf32>
      %168 = arith.divf %163, %167 : vector<16x4xf32>
      %169 = math.log %168 : vector<16x4xf32>
      %c0_103 = arith.constant 0 : index
      %c0_104 = arith.constant 0 : index
      %170 = vector.load %arg27[%c0_103, %c0_104] : memref<16x4xf32, #tpu.memory_space<vmem>>, vector<16x4xf32>
      tpu.vector_store %arg27[%c0_103, %c0_104], %169 {strides = array<i32>} : memref<16x4xf32, #tpu.memory_space<vmem>>, vector<16x4xf32>,
    } else {
    }
    %c0 = arith.constant 0 : index
    %c0_1 = arith.constant 0 : index
    %3 = vector.load %arg25[%c0, %c0_1] : memref<16x256xf32, #tpu.memory_space<vmem>>, vector<16x256xf32>
    %c0_2 = arith.constant 0 : index
    %c0_3 = arith.constant 0 : index
    %4 = vector.load %arg26[%c0_2, %c0_3] : memref<16x256xf32, #tpu.memory_space<vmem>>, vector<16x256xf32>
    %5 = arith.addf %3, %4 : vector<16x256xf32>
    %6 = arith.truncf %5 : vector<16x256xf32> to vector<16x256xbf16>
    %c0_4 = arith.constant 0 : index
    %c0_5 = arith.constant 0 : index
    %c0_6 = arith.constant 0 : index
    %7 = vector.load %arg11[%c0_4, %c0_5, %c0_6] : memref<1x256x256xbf16, #tpu.memory_space<vmem>>, vector<1x256x256xbf16>
    %8 = vector.shape_cast %7 : vector<1x256x256xbf16> to vector<256x256xbf16>
    %cst = arith.constant dense<0.000000e+00> : vector<16x256xf32>
    %9 = tpu.matmul %6, %8, %cst {dimension_numbers = #tpu.dot_dimension_numbers<[1], [0], [0], [1], [0, 0, 1, 1], [], []>} : vector<16x256xbf16>, vector<256x256xbf16>, vector<16x256xf32> -> vector<16x256xf32>
    %c0_7 = arith.constant 0 : index
    %c0_8 = arith.constant 0 : index
    %c0_9 = arith.constant 0 : index
    %10 = vector.load %arg12[%c0_7, %c0_8, %c0_9] : memref<1x1x256xf32, #tpu.memory_space<vmem>>, vector<1x1x256xf32>
    %11 = vector.shape_cast %10 : vector<1x1x256xf32> to vector<1x256xf32>
    %12 = vector.broadcast %11 : vector<1x256xf32> to vector<16x256xf32>
    %13 = arith.addf %9, %12 : vector<16x256xf32>
    %cst_10 = arith.constant 0.000000e+00 : f32
    %14 = vector.broadcast %cst_10 : f32 to vector<16x256xf32>
    %15 = arith.maximumf %13, %14 : vector<16x256xf32>
    %16 = arith.truncf %15 : vector<16x256xf32> to vector<16x256xbf16>
    %c0_11 = arith.constant 0 : index
    %c0_12 = arith.constant 0 : index
    %c0_13 = arith.constant 0 : index
    %17 = vector.load %arg13[%c0_11, %c0_12, %c0_13] : memref<1x256x256xbf16, #tpu.memory_space<vmem>>, vector<1x256x256xbf16>
    %18 = vector.shape_cast %17 : vector<1x256x256xbf16> to vector<256x256xbf16>
    %cst_14 = arith.constant dense<0.000000e+00> : vector<16x256xf32>
    %19 = tpu.matmul %16, %18, %cst_14 {dimension_numbers = #tpu.dot_dimension_numbers<[1], [0], [0], [1], [0, 0, 1, 1], [], []>} : vector<16x256xbf16>, vector<256x256xbf16>, vector<16x256xf32> -> vector<16x256xf32>
    %20 = arith.addf %3, %19 : vector<16x256xf32>
    %c0_15 = arith.constant 0 : index
    %c0_16 = arith.constant 0 : index
    %c0_17 = arith.constant 0 : index
    %21 = vector.load %arg14[%c0_15, %c0_16, %c0_17] : memref<1x1x256xf32, #tpu.memory_space<vmem>>, vector<1x1x256xf32>
    %22 = vector.shape_cast %21 : vector<1x1x256xf32> to vector<1x256xf32>
    %23 = vector.broadcast %22 : vector<1x256xf32> to vector<16x256xf32>
    %24 = arith.addf %20, %23 : vector<16x256xf32>
    %c0_18 = arith.constant 0 : index
    %c0_19 = arith.constant 0 : index
    %25 = vector.load %arg25[%c0_18, %c0_19] : memref<16x256xf32, #tpu.memory_space<vmem>>, vector<16x256xf32>
    tpu.vector_store %arg25[%c0_18, %c0_19], %24 {strides = array<i32>} : memref<16x256xf32, #tpu.memory_space<vmem>>, vector<16x256xf32>,
    %26 = arith.truncf %24 : vector<16x256xf32> to vector<16x256xbf16>
    %c0_20 = arith.constant 0 : index
    %c0_21 = arith.constant 0 : index
    %c0_22 = arith.constant 0 : index
    %27 = vector.load %arg15[%c0_20, %c0_21, %c0_22] : memref<1x256x256xbf16, #tpu.memory_space<vmem>>, vector<1x256x256xbf16>
    %28 = vector.shape_cast %27 : vector<1x256x256xbf16> to vector<256x256xbf16>
    %cst_23 = arith.constant dense<0.000000e+00> : vector<16x256xf32>
    %29 = tpu.matmul %26, %28, %cst_23 {dimension_numbers = #tpu.dot_dimension_numbers<[1], [0], [0], [1], [0, 0, 1, 1], [], []>} : vector<16x256xbf16>, vector<256x256xbf16>, vector<16x256xf32> -> vector<16x256xf32>
    %c0_24 = arith.constant 0 : index
    %c0_25 = arith.constant 0 : index
    %c0_26 = arith.constant 0 : index
    %30 = vector.load %arg16[%c0_24, %c0_25, %c0_26] : memref<1x1x256xf32, #tpu.memory_space<vmem>>, vector<1x1x256xf32>
    %31 = vector.shape_cast %30 : vector<1x1x256xf32> to vector<1x256xf32>
    %32 = vector.broadcast %31 : vector<1x256xf32> to vector<16x256xf32>
    %33 = arith.addf %29, %32 : vector<16x256xf32>
    %cst_27 = arith.constant 0.000000e+00 : f32
    %34 = vector.broadcast %cst_27 : f32 to vector<16x256xf32>
    %35 = arith.maximumf %33, %34 : vector<16x256xf32>
    %36 = arith.truncf %35 : vector<16x256xf32> to vector<16x256xbf16>
    %c0_28 = arith.constant 0 : index
    %c0_29 = arith.constant 0 : index
    %c0_30 = arith.constant 0 : index
    %37 = vector.load %arg17[%c0_28, %c0_29, %c0_30] : memref<1x256x256xbf16, #tpu.memory_space<vmem>>, vector<1x256x256xbf16>
    %38 = vector.shape_cast %37 : vector<1x256x256xbf16> to vector<256x256xbf16>
    %cst_31 = arith.constant dense<0.000000e+00> : vector<16x256xf32>
    %39 = tpu.matmul %36, %38, %cst_31 {dimension_numbers = #tpu.dot_dimension_numbers<[1], [0], [0], [1], [0, 0, 1, 1], [], []>} : vector<16x256xbf16>, vector<256x256xbf16>, vector<16x256xf32> -> vector<16x256xf32>
    %c0_32 = arith.constant 0 : index
    %c0_33 = arith.constant 0 : index
    %c0_34 = arith.constant 0 : index
    %40 = vector.load %arg18[%c0_32, %c0_33, %c0_34] : memref<1x1x256xf32, #tpu.memory_space<vmem>>, vector<1x1x256xf32>
    %41 = vector.shape_cast %40 : vector<1x1x256xf32> to vector<1x256xf32>
    %42 = vector.broadcast %41 : vector<1x256xf32> to vector<16x256xf32>
    %43 = arith.addf %39, %42 : vector<16x256xf32>
    %cst_35 = arith.constant 0.000000e+00 : f32
    %44 = vector.broadcast %cst_35 : f32 to vector<16x256xf32>
    %45 = arith.maximumf %43, %44 : vector<16x256xf32>
    %46 = arith.truncf %45 : vector<16x256xf32> to vector<16x256xbf16>
    %c0_36 = arith.constant 0 : index
    %c0_37 = arith.constant 0 : index
    %c0_38 = arith.constant 0 : index
    %47 = vector.load %arg19[%c0_36, %c0_37, %c0_38] : memref<1x256x4xbf16, #tpu.memory_space<vmem>>, vector<1x256x4xbf16>
    %48 = vector.shape_cast %47 : vector<1x256x4xbf16> to vector<256x4xbf16>
    %cst_39 = arith.constant dense<0.000000e+00> : vector<16x4xf32>
    %49 = tpu.matmul %46, %48, %cst_39 {dimension_numbers = #tpu.dot_dimension_numbers<[1], [0], [0], [1], [0, 0, 1, 1], [], []>} : vector<16x256xbf16>, vector<256x4xbf16>, vector<16x4xf32> -> vector<16x4xf32>
    %c0_40 = arith.constant 0 : index
    %c0_41 = arith.constant 0 : index
    %c0_42 = arith.constant 0 : index
    %50 = vector.load %arg20[%c0_40, %c0_41, %c0_42] : memref<1x1x4xf32, #tpu.memory_space<vmem>>, vector<1x1x4xf32>
    %51 = vector.shape_cast %50 : vector<1x1x4xf32> to vector<1x4xf32>
    %52 = vector.broadcast %51 : vector<1x4xf32> to vector<16x4xf32>
    %53 = arith.addf %49, %52 : vector<16x4xf32>
    %c0_43 = arith.constant 0 : index
    %c0_44 = arith.constant 0 : index
    %54 = vector.load %arg27[%c0_43, %c0_44] : memref<16x4xf32, #tpu.memory_space<vmem>>, vector<16x4xf32>
    %55 = arith.addf %53, %54 : vector<16x4xf32>
    %cst_45 = arith.constant 0.000000e+00 : f32
    %56 = vector.broadcast %cst_45 : f32 to vector<16x4xf32>
    %57 = arith.subf %56, %55 : vector<16x4xf32>
    %58 = math.exp %57 : vector<16x4xf32>
    %cst_46 = arith.constant 1.000000e+00 : f32
    %59 = vector.broadcast %cst_46 : f32 to vector<16x4xf32>
    %60 = arith.addf %59, %58 : vector<16x4xf32>
    %cst_47 = arith.constant 1.000000e+00 : f32
    %61 = vector.broadcast %cst_47 : f32 to vector<16x4xf32>
    %62 = arith.divf %61, %60 : vector<16x4xf32>
    %c0_48 = arith.constant 0 : index
    %c0_49 = arith.constant 0 : index
    %c0_50 = arith.constant 0 : index
    %63 = vector.load %arg24[%c0_48, %c0_49, %c0_50] : memref<1x16x4xf32, #tpu.memory_space<vmem>>, vector<1x16x4xf32>
    %64 = vector.shape_cast %63 : vector<1x16x4xf32> to vector<16x4xf32>
    %65 = vector.shape_cast %62 : vector<16x4xf32> to vector<1x16x4xf32>
    tpu.vector_store %arg24[%c0_48, %c0_49, %c0_50], %65 {strides = array<i32>} : memref<1x16x4xf32, #tpu.memory_space<vmem>>, vector<1x16x4xf32>,
    %cst_51 = arith.constant dense<0.000000e+00> : vector<16xf32>
    %66 = vector.multi_reduction <add>, %24, %cst_51 [1] : vector<16x256xf32> to vector<16xf32>
    %67 = vector.shape_cast %66 : vector<16xf32> to vector<16x1xf32>
    %cst_52 = arith.constant 2.560000e+02 : f32
    %68 = vector.broadcast %cst_52 : f32 to vector<16x1xf32>
    %69 = arith.divf %67, %68 : vector<16x1xf32>
    %70 = vector.broadcast %69 : vector<16x1xf32> to vector<16x256xf32>
    %71 = arith.subf %24, %70 : vector<16x256xf32>
    %72 = arith.mulf %71, %71 : vector<16x256xf32>
    %cst_53 = arith.constant dense<0.000000e+00> : vector<16xf32>
    %73 = vector.multi_reduction <add>, %72, %cst_53 [1] : vector<16x256xf32> to vector<16xf32>
    %74 = vector.shape_cast %73 : vector<16xf32> to vector<16x1xf32>
    %cst_54 = arith.constant 2.560000e+02 : f32
    %75 = vector.broadcast %cst_54 : f32 to vector<16x1xf32>
    %76 = arith.divf %74, %75 : vector<16x1xf32>
    %77 = vector.broadcast %69 : vector<16x1xf32> to vector<16x256xf32>
    %78 = arith.subf %24, %77 : vector<16x256xf32>
    %cst_55 = arith.constant 9.99999974E-6 : f32
    %79 = vector.broadcast %cst_55 : f32 to vector<16x1xf32>
    %80 = arith.addf %76, %79 : vector<16x1xf32>
    %81 = math.rsqrt %80 : vector<16x1xf32>
    %82 = vector.broadcast %81 : vector<16x1xf32> to vector<16x256xf32>
    %83 = arith.mulf %78, %82 : vector<16x256xf32>
    %c0_56 = arith.constant 0 : index
    %c0_57 = arith.constant 0 : index
    %84 = vector.load %arg21[%c0_56, %c0_57] : memref<1x256xf32, #tpu.memory_space<vmem>>, vector<1x256xf32>
    %85 = vector.broadcast %84 : vector<1x256xf32> to vector<16x256xf32>
    %86 = arith.mulf %83, %85 : vector<16x256xf32>
    %c0_58 = arith.constant 0 : index
    %c0_59 = arith.constant 0 : index
    %87 = vector.load %arg22[%c0_58, %c0_59] : memref<1x256xf32, #tpu.memory_space<vmem>>, vector<1x256xf32>
    %88 = vector.broadcast %87 : vector<1x256xf32> to vector<16x256xf32>
    %89 = arith.addf %86, %88 : vector<16x256xf32>
    %c0_60 = arith.constant 0 : index
    %c0_61 = arith.constant 0 : index
    %c0_62 = arith.constant 0 : index
    %90 = vector.load %arg23[%c0_60, %c0_61, %c0_62] : memref<1x16x256xf32, #tpu.memory_space<vmem>>, vector<1x16x256xf32>
    %91 = vector.shape_cast %90 : vector<1x16x256xf32> to vector<16x256xf32>
    %92 = vector.shape_cast %89 : vector<16x256xf32> to vector<1x16x256xf32>
    tpu.vector_store %arg23[%c0_60, %c0_61, %c0_62], %92 {strides = array<i32>} : memref<1x16x256xf32, #tpu.memory_space<vmem>>, vector<1x16x256xf32>,
    return
  }
  func.func @transform_0(%arg0: i32, %arg1: i32) -> (i32, i32) {
    %c0_i32 = arith.constant 0 : i32
    %c0_i32_0 = arith.constant 0 : i32
    return %arg0, %c0_i32 : i32, i32
  }
  func.func @transform_1(%arg0: i32, %arg1: i32) -> (i32, i32) {
    %c0_i32 = arith.constant 0 : i32
    %c0_i32_0 = arith.constant 0 : i32
    return %arg0, %c0_i32 : i32, i32
  }
  func.func @transform_2(%arg0: i32, %arg1: i32) -> (i32, i32) {
    %c0_i32 = arith.constant 0 : i32
    %c0_i32_0 = arith.constant 0 : i32
    return %arg0, %c0_i32 : i32, i32
  }
  func.func @transform_3(%arg0: i32, %arg1: i32) -> (i32, i32) {
    %c0_i32 = arith.constant 0 : i32
    %c0_i32_0 = arith.constant 0 : i32
    %c0_i32_1 = arith.constant 0 : i32
    return %c0_i32, %c0_i32_0 : i32, i32
  }
  func.func @transform_4(%arg0: i32, %arg1: i32) -> (i32, i32) {
    %c0_i32 = arith.constant 0 : i32
    %c0_i32_0 = arith.constant 0 : i32
    %c0_i32_1 = arith.constant 0 : i32
    return %c0_i32, %c0_i32_0 : i32, i32
  }
  func.func @transform_5(%arg0: i32, %arg1: i32) -> (i32, i32, i32) {
    %c0_i32 = arith.constant 0 : i32
    %c0_i32_0 = arith.constant 0 : i32
    %c0_i32_1 = arith.constant 0 : i32
    %c0_i32_2 = arith.constant 0 : i32
    return %c0_i32, %c0_i32_0, %c0_i32_1 : i32, i32, i32
  }
  func.func @transform_6(%arg0: i32, %arg1: i32) -> (i32, i32) {
    %c0_i32 = arith.constant 0 : i32
    %c0_i32_0 = arith.constant 0 : i32
    %c0_i32_1 = arith.constant 0 : i32
    return %c0_i32, %c0_i32_0 : i32, i32
  }
  func.func @transform_7(%arg0: i32, %arg1: i32) -> (i32, i32) {
    %c0_i32 = arith.constant 0 : i32
    %c0_i32_0 = arith.constant 0 : i32
    %c0_i32_1 = arith.constant 0 : i32
    return %c0_i32, %c0_i32_0 : i32, i32
  }
  func.func @transform_8(%arg0: i32, %arg1: i32) -> (i32, i32) {
    %c0_i32 = arith.constant 0 : i32
    %c0_i32_0 = arith.constant 0 : i32
    %c0_i32_1 = arith.constant 0 : i32
    return %c0_i32, %c0_i32_0 : i32, i32
  }
  func.func @transform_9(%arg0: i32, %arg1: i32) -> (i32, i32, i32) {
    %c0_i32 = arith.constant 0 : i32
    %c0_i32_0 = arith.constant 0 : i32
    %c0_i32_1 = arith.constant 0 : i32
    return %arg1, %c0_i32, %c0_i32_0 : i32, i32, i32
  }
  func.func @transform_10(%arg0: i32, %arg1: i32) -> (i32, i32, i32) {
    %c0_i32 = arith.constant 0 : i32
    %c0_i32_0 = arith.constant 0 : i32
    %c0_i32_1 = arith.constant 0 : i32
    return %arg1, %c0_i32, %c0_i32_0 : i32, i32, i32
  }
  func.func @transform_11(%arg0: i32, %arg1: i32) -> (i32, i32, i32) {
    %c0_i32 = arith.constant 0 : i32
    %c0_i32_0 = arith.constant 0 : i32
    %c0_i32_1 = arith.constant 0 : i32
    return %arg1, %c0_i32, %c0_i32_0 : i32, i32, i32
  }
  func.func @transform_12(%arg0: i32, %arg1: i32) -> (i32, i32, i32) {
    %c0_i32 = arith.constant 0 : i32
    %c0_i32_0 = arith.constant 0 : i32
    %c0_i32_1 = arith.constant 0 : i32
    return %arg1, %c0_i32, %c0_i32_0 : i32, i32, i32
  }
  func.func @transform_13(%arg0: i32, %arg1: i32) -> (i32, i32, i32) {
    %c0_i32 = arith.constant 0 : i32
    %c0_i32_0 = arith.constant 0 : i32
    %c0_i32_1 = arith.constant 0 : i32
    return %arg1, %c0_i32, %c0_i32_0 : i32, i32, i32
  }
  func.func @transform_14(%arg0: i32, %arg1: i32) -> (i32, i32, i32) {
    %c0_i32 = arith.constant 0 : i32
    %c0_i32_0 = arith.constant 0 : i32
    %c0_i32_1 = arith.constant 0 : i32
    return %arg1, %c0_i32, %c0_i32_0 : i32, i32, i32
  }
  func.func @transform_15(%arg0: i32, %arg1: i32) -> (i32, i32, i32) {
    %c0_i32 = arith.constant 0 : i32
    %c0_i32_0 = arith.constant 0 : i32
    %c0_i32_1 = arith.constant 0 : i32
    return %arg1, %c0_i32, %c0_i32_0 : i32, i32, i32
  }
  func.func @transform_16(%arg0: i32, %arg1: i32) -> (i32, i32, i32) {
    %c0_i32 = arith.constant 0 : i32
    %c0_i32_0 = arith.constant 0 : i32
    %c0_i32_1 = arith.constant 0 : i32
    return %arg1, %c0_i32, %c0_i32_0 : i32, i32, i32
  }
  func.func @transform_17(%arg0: i32, %arg1: i32) -> (i32, i32, i32) {
    %c0_i32 = arith.constant 0 : i32
    %c0_i32_0 = arith.constant 0 : i32
    %c0_i32_1 = arith.constant 0 : i32
    return %arg1, %c0_i32, %c0_i32_0 : i32, i32, i32
  }
  func.func @transform_18(%arg0: i32, %arg1: i32) -> (i32, i32, i32) {
    %c0_i32 = arith.constant 0 : i32
    %c0_i32_0 = arith.constant 0 : i32
    %c0_i32_1 = arith.constant 0 : i32
    return %arg1, %c0_i32, %c0_i32_0 : i32, i32, i32
  }
  func.func @transform_19(%arg0: i32, %arg1: i32) -> (i32, i32) {
    %c0_i32 = arith.constant 0 : i32
    %c0_i32_0 = arith.constant 0 : i32
    %c0_i32_1 = arith.constant 0 : i32
    return %c0_i32, %c0_i32_0 : i32, i32
  }
  func.func @transform_20(%arg0: i32, %arg1: i32) -> (i32, i32) {
    %c0_i32 = arith.constant 0 : i32
    %c0_i32_0 = arith.constant 0 : i32
    %c0_i32_1 = arith.constant 0 : i32
    return %c0_i32, %c0_i32_0 : i32, i32
  }
  func.func @transform_21(%arg0: i32, %arg1: i32) -> (i32, i32, i32) {
    %c0_i32 = arith.constant 0 : i32
    %c0_i32_0 = arith.constant 0 : i32
    return %arg1, %arg0, %c0_i32 : i32, i32, i32
  }
  func.func @transform_22(%arg0: i32, %arg1: i32) -> (i32, i32, i32) {
    %c0_i32 = arith.constant 0 : i32
    %c0_i32_0 = arith.constant 0 : i32
    return %arg1, %arg0, %c0_i32 : i32, i32, i32
  }
}

</mosaic_0001>

<bundles_post_ra>
// kernel: tpu_custom_call.1
= control target key start
LH: loop header
LB: loop body
LE: loop exit
PB: predicated region body
PF: predicated region fallthrough
CT: control target
= control target key end

     0   :  { %s9465_s0 = inlined_call_operand.hbm [shape: f32[32,256], index: 0, kind: input, shape index: {}]   ;;  %s9466_s1 = inlined_call_operand.vmem [shape: f32[32,4], index: 1, kind: input, shape index: {}]   ;;  %s9467_s2 = inlined_call_operand.vmem [shape: f32[32,4], index: 2, kind: input, shape index: {}]   ;;  %s9468_s3 = inlined_call_operand.vmem [shape: f32[1,128], index: 3, kind: input, shape index: {}]   ;;  %s9469_s4 = inlined_call_operand.vmem [shape: f32[1,128], index: 4, kind: input, shape index: {}]   ;;  %s9470_s5 = inlined_call_operand.hbm [shape: bf16[4,128,256], index: 5, kind: input, shape index: {}]   ;;  %s9471_s6 = inlined_call_operand.vmem [shape: f32[1,256], index: 6, kind: input, shape index: {}]   ;;  %s9472_s7 = inlined_call_operand.vmem [shape: bf16[256,256], index: 7, kind: input, shape index: {}]   ;;  %s9473_s8 = inlined_call_operand.vmem [shape: f32[1,256], index: 8, kind: input, shape index: {}]   ;;  %s9474_s9 = inlined_call_operand.hbm [shape: bf16[2,256,256], index: 9, kind: input, shape index: {}]   ;;  %s9475_s10 = inlined_call_operand.vmem [shape: f32[2,1,256], index: 10, kind: input, shape index: {}]   ;;  %s9476_s11 = inlined_call_operand.hbm [shape: bf16[2,256,256], index: 11, kind: input, shape index: {}]   ;;  %s9477_s12 = inlined_call_operand.vmem [shape: f32[2,1,256], index: 12, kind: input, shape index: {}]   ;;  %s9478_s13 = inlined_call_operand.hbm [shape: bf16[2,256,256], index: 13, kind: input, shape index: {}]   ;;  %s9479_s14 = inlined_call_operand.vmem [shape: f32[2,1,256], index: 14, kind: input, shape index: {}]   ;;  %s9480_s15 = inlined_call_operand.hbm [shape: bf16[2,256,256], index: 15, kind: input, shape index: {}]   ;;  %s9481_s16 = inlined_call_operand.vmem [shape: f32[2,1,256], index: 16, kind: input, shape index: {}]   ;;  %s9482_s17 = inlined_call_operand.vmem [shape: bf16[2,256,4], index: 17, kind: input, shape index: {}]   ;;  %s9483_s18 = inlined_call_operand.vmem [shape: f32[2,1,4], index: 18, kind: input, shape index: {}]   ;;  %s9484_s19 = inlined_call_operand.vmem [shape: f32[1,256], index: 19, kind: input, shape index: {}]   ;;  %s9485_s20 = inlined_call_operand.vmem [shape: f32[1,256], index: 20, kind: input, shape index: {}]   ;;  %s9486_s21 = inlined_call_operand.hbm [shape: f32[2,32,256], index: 21, kind: output, shape index: {0}]   ;;  %s9487_s22 = inlined_call_operand.vmem [shape: f32[2,32,4], index: 22, kind: output, shape index: {1}]  }
   0x1   :  { %9618 = sst [smem:[#allocation106_spill]] %s9465_s0 }
   0x2   :  { %9619 = sst [smem:[#allocation107_spill]] %s9466_s1 }
   0x3   :  { %9620 = sst [smem:[#allocation108_spill]] %s9467_s2 }
   0x4   :  { %9621 = sst [smem:[#allocation109_spill]] %s9468_s3 }
   0x5   :  { %9622 = sst [smem:[#allocation110_spill]] %s9469_s4 }
   0x6   :  { %9623 = sst [smem:[#allocation111_spill]] %s9470_s5 }
   0x7   :  { %9624 = sst [smem:[#allocation112_spill]] %s9471_s6 }
   0x8   :  { %9625 = sst [smem:[#allocation113_spill]] %s9472_s7 }
   0x9   :  { %9626 = sst [smem:[#allocation114_spill]] %s9473_s8 }
   0xa   :  { %9627 = sst [smem:[#allocation115_spill]] %s9474_s9 }
   0xb   :  { %9628 = sst [smem:[#allocation116_spill]] %s9475_s10 }
   0xc   :  { %9629 = sst [smem:[#allocation117_spill]] %s9476_s11 }
   0xd   :  { %9630 = sst [smem:[#allocation118_spill]] %s9477_s12 }
   0xe   :  { %9631 = sst [smem:[#allocation119_spill]] %s9478_s13 }
   0xf   :  { %9632 = sst [smem:[#allocation120_spill]] %s9479_s14 }
  0x10   :  { %9633 = sst [smem:[#allocation121_spill]] %s9480_s15 }
  0x11   :  { %9634 = sst [smem:[#allocation122_spill]] %s9481_s16 }
  0x12   :  { %9635 = sst [smem:[#allocation123_spill]] %s9482_s17 }
  0x13   :  { %9636 = sst [smem:[#allocation124_spill]] %s9483_s18 }
  0x14   :  { %9637 = sst [smem:[#allocation125_spill]] %s9484_s19 }
  0x15   :  { %9638 = sst [smem:[#allocation126_spill]] %s9485_s20 }
  0x16   :  { %9639 = sst [smem:[#allocation127_spill]] %s9486_s21 }
  0x17   :  { %9640 = sst [smem:[#allocation128_spill]] %s9487_s22 }
  0x18   :  { %28 = vsyncpa [#allocation6], 0 }
  0x19   :  { %30 = vsyncpa [#allocation6 + $0x1], 0 }
  0x1a   :  { %31 = vsyncpa [#allocation9], 0 }
  0x1b   :  { %32 = vsyncpa [#allocation7], 0 }
  0x1c   :  { %34 = vsyncpa [#allocation7 + $0x1], 0  ;;  %s6853_s3 = smov 0   ;;  %s6855_s28 = smov 0  }
  0x1d   :  { %s6857_s29 = smov 0   ;;  %s6859_s30 = smov 0  }
  0x1e   :  { %s6861_s4 = smov 0   ;;  %s6863_s0 = smov 0  }
  0x1f   :  { %s6865_s23 = smov 0   ;;  %s6867_s1 = smov 0  }
  0x20   :  { %s6869_s5 = smov 0   ;;  %s6871_s24 = smov 0  }
  0x21   :  { %s6873_s6 = smov 0   ;;  %s6875_s25 = smov 0  }
  0x22   :  { %s6877_s26 = smov 0   ;;  %s6879_s2 = smov 0  }
  0x23 LB: > { %9641 = sst [smem:[#allocation19_spill]] %s6666_s3  ;;  %s49_s27 = sadd.s32 1, %s6710_s25  ;;  %s6718_s2 = sphi %s6879_s2, %s40_s2   ;;  %s6714_s26 = sphi %s6877_s26, %s9952_s26   ;;  %s6710_s25 = sphi %s6875_s25, %s9951_s25   ;;  %s6706_s6 = sphi %s6873_s6, %s9955_s6   ;;  %s6702_s24 = sphi %s6871_s24, %s9949_s24   ;;  %s6698_s5 = sphi %s6869_s5, %s9948_s5   ;;  %s6694_s1 = sphi %s6867_s1, %s9947_s1   ;;  %s6690_s23 = sphi %s6865_s23, %s9946_s23   ;;  %s6686_s0 = sphi %s6863_s0, %s9954_s0   ;;  %s6682_s4 = sphi %s6861_s4, %s9944_s4   ;;  %s6678_s30 = sphi %s6859_s30, %s9943_s30   ;;  %s6674_s29 = sphi %s6857_s29, %s9942_s29   ;;  %s6670_s28 = sphi %s6855_s28, %s9941_s28   ;;  %s6666_s3 = sphi %s6853_s3, %s9940_s3  }
  0x24   : > { %9642 = sst [smem:[#allocation20_spill]] %s6670_s28  ;;  %s52_s21 = sadd.s32 1, %s6714_s26 }
  0x25   : > { %9643 = sst [smem:[#allocation21_spill]] %s6674_s29  ;;  %p50_p0 = scmp.ge.s32.totalorder %s49_s27, 2 }
  0x26   : > { %9644 = sst [smem:[#allocation22_spill]] %s6682_s4  ;;  %s59_s20 = sadd.s32 1, %s6698_s5 }
  0x27   : > { %9645 = sst [smem:[#allocation23_spill]] %s6686_s0  ;;  %p66_p1 = scmp.ne.s32.totalorder %s6698_s5, %s6694_s1 }
  0x28   : > { %9646 = sst [smem:[#allocation24_spill]] %s6694_s1  ;;  %p67_p2 = scmp.eq.s32.totalorder %s6718_s2, 0 }
  0x29   : > { %9647 = sst [smem:[#allocation25_spill]] %s6698_s5  ;;  %s9957_s27 = smov (%p50_p0, %s49_s27), 0 }
  0x2a   : > { %9648 = sst [smem:[#allocation26_spill]] %s6702_s24  ;;  %s9959_s21 = smov (!%p50_p0, %s52_s21), %s6714_s26 }
  0x2b   : > { %9649 = sst [smem:[#allocation27_spill]] %s6706_s6  ;;  %p6934_p3 = por %p67_p2, %p66_p1 }
  0x2c   : > { %9650 = sst [smem:[#allocation28_spill]] %s6710_s25  ;;  %p72_p4 = scmp.ne.s32.totalorder %s6694_s1, %s6690_s23 }
  0x2d   : > { %9651 = sst [smem:[#allocation29_spill]] %s6714_s26  ;;  %p54_p5 = scmp.ge.s32.totalorder %s9959_s21, 2 }
  0x2e   : > { %9652 = sst [smem:[#allocation30_spill]] %s6718_s2  ;;  %s6942_s8 = ssub.s32 %s6710_s25, %s9957_s27 }
  0x2f   : > { %9653 = sst [smem:[#allocation31_spill]] %s9957_s27  ;;  %p261_p6 = scmp.eq.s32.totalorder %s6942_s8, 0 }
  0x30   : > { %s567_s7 = sadd.s32 1, %s6674_s29  ;;  %s9961_s21 = smov (%p54_p5, %s9959_s21), 0 }
  0x31   : > { %9655 = sst [smem:[#allocation32_spill]] %s9961_s21  ;;  %p6220_p7 = scmp.lt.s32.totalorder %s6718_s2, 4 }
  0x32   : > { %s56_s22 = ssub.s32 %s6714_s26, %s9961_s21  ;;  %s667_s18 = sand.u32 1, %s6718_s2  }
  0x33   : > { %p57_p8 = scmp.eq.s32.totalorder %s56_s22, 0  ;;  %s564_s17 = sor.u32 %s6942_s8, %s56_s22 }
  0x34   : > { %p565_p9 = scmp.eq.s32.totalorder %s564_s17, 0  ;;  %s669_s14 = sand.u32 1, %s6698_s5  }
  0x35   : > { %s6954_s16 = scalar_select %p57_p8, %s6698_s5, %s59_s20  }
  0x36   : > { %s6957_s27 = scalar_select %p565_p9, %s6674_s29, %s567_s7  }
  0x37   : > { %9656 = sst [smem:[#allocation33_spill]] %s6954_s16  ;;  %s5932_s12 = sshll.u32 %s6714_s26, 5 }
  0x38   : > { %9657 = sst [smem:[#allocation34_spill]] %s6957_s27  ;;  %s4902_s10 = sshll.u32 %s669_s14, 5 }
  0x39   : > { %s9658_s6 = sld [smem:[#allocation106_spill]]  ;;  %s671_s20 = scalar_lea.vmem [#allocation5], %s4902_s10 }
  0x3a   : > { %s680_s22 = sshll.u32 %s671_s20, 4  ;;  %p6200_p10 = pnand %p6220_p7, %p6934_p3  ;;  %s681_s22 = int_to_ptr.vmem [resolvable:$true] %s680_s22 }
  0x3b   : > { %s6968_s7 = scalar_lea.sflag [#allocation6], %s667_s18  ;;  %s6720_s26 = smov 256  }
  0x3c   : > { %s6721_s14 = smov 16   ;;  %s263_s16 = sadd.s32 1, %s6686_s0 }
  0x3d   : > { %p270_p11 = scmp.ne.s32.totalorder %s6686_s0, %s6682_s4  ;;  %s710_s10 = sand.u32 1, %s6686_s0  }
  0x3e   : > { %s6985_s18 = sshll.u32 %s710_s10, 8  ;;  %s9660_s9 = sld [smem:[#allocation115_spill]] }
  0x3f   : > { %s677_s15 = scalar_lea.hbm %s9658_s6, %s5932_s12  ;;  %p272_p12 = por %p270_p11, %p67_p2 }
  0x40   : > { %s678_s17 = sshll.u32 %s677_s15, 4  ;;  %s6983_s15 = sshll.u32 %s6710_s25, 8  ;;  %s679_s17 = int_to_ptr.hbm [resolvable:$true] %s678_s17 }
  0x41   : > { %6202 = dma.hbm_to_vmem [thread:$0]  (!%p6200_p10), %s679_s17, 512, %s681_s22, %s6968_s7, %s6720_s26, %s6720_s26, %s6721_s14  }
  0x42   : > { %s6977_s12 = scalar_select %p261_p6, %s6686_s0, %s263_s16  }
  0x43   : > { %s712_s16 = scalar_lea.vmem [#allocation10], %s6985_s18  ;;  %p6994_p13 = pnand %p6220_p7, %p272_p12 }
  0x44   : > { %9659 = sst [smem:[#allocation35_spill]] %s6977_s12  ;;  %s717_s24 = scalar_lea.hbm %s9660_s9, %s6983_s15 }
  0x45   : > { %s718_s8 = sshll.u32 %s717_s24, 4  ;;  %s720_s6 = sshll.u32 %s712_s16, 4  ;;  %s719_s8 = int_to_ptr.hbm [resolvable:$true] %s718_s8  ;;  %s721_s6 = int_to_ptr.vmem [resolvable:$true] %s720_s6 }
  0x46   : > { %s9662_s11 = sld [smem:[#allocation117_spill]]  ;;  %s9494_s10 = smov 128  }
  0x47   : > { %s9496_s19 = smov 8   ;;  %s741_s21 = scalar_lea.vmem [#allocation11], %s6985_s18 }
  0x48   : > { %6205 = dma.hbm_to_vmem [thread:$0]  (!%p6994_p13), %s719_s8, 4096, %s721_s6, %s6968_s7, %s9494_s10, %s9494_s10, %s9496_s19  }
  0x49   : > { %s749_s24 = sshll.u32 %s741_s21, 4  ;;  %s9663_s13 = sld [smem:[#allocation119_spill]]  ;;  %s750_s24 = int_to_ptr.vmem [resolvable:$true] %s749_s24 }
  0x4a   : > { %s770_s6 = scalar_lea.vmem [#allocation12], %s6985_s18  ;;  %s7027_s21 = sadd.s32 4294967295, %s6718_s2  }
  0x4b   : > { %s778_s20 = sshll.u32 %s770_s6, 4  ;;  %p73_p0 = scmp.eq.s32.totalorder %s7027_s21, 0  ;;  %s779_s20 = int_to_ptr.vmem [resolvable:$true] %s778_s20 }
  0x4c   : > { %s746_s22 = scalar_lea.hbm %s9662_s11, %s6983_s15  ;;  %p276_p1 = scmp.ne.s32.totalorder %s6682_s4, %s6678_s30 }
  0x4d   : > { %s747_s14 = sshll.u32 %s746_s22, 4  ;;  %p577_p2 = scmp.ne.s32.totalorder %s6674_s29, %s6670_s28  ;;  %s748_s14 = int_to_ptr.hbm [resolvable:$true] %s747_s14 }
  0x4e   : > { %6208 = dma.hbm_to_vmem [thread:$0]  (!%p6994_p13), %s748_s14, 4096, %s750_s24, %s6968_s7, %s9494_s10, %s9494_s10, %s9496_s19  }
  0x4f   : > { %s775_s8 = scalar_lea.hbm %s9663_s13, %s6983_s15  ;;  %s4898_s14 = sadd.s32 4294967294, %s6718_s2  }
  0x50   : > { %s776_s22 = sshll.u32 %s775_s8, 4  ;;  %p7040_p3 = por %p73_p0, %p72_p4  ;;  %s777_s22 = int_to_ptr.hbm [resolvable:$true] %s776_s22 }
  0x51   : > { %6211 = dma.hbm_to_vmem [thread:$0]  (!%p6994_p13), %s777_s22, 4096, %s779_s20, %s6968_s7, %s9494_s10, %s9494_s10, %s9496_s19  }
  0x52   : > { %p578_p5 = scmp.eq.s32.totalorder %s7027_s21, 3  ;;  %p7047_p6 = por %p276_p1, %p73_p0 }
  0x53   : > { %p583_p7 = scmp.ne.s32.totalorder %s6670_s28, %s6666_s3  ;;  %p584_p9 = scmp.eq.s32.totalorder %s4898_s14, 3 }
  0x54   : > { %p7053_p8 = por %p578_p5, %p577_p2  ;;  %p4899_p10 = scmp.ge.s32.totalorder %s6718_s2, 1 }
  0x55   : > { %p619_p4 = scmp.lt.s32.totalorder %s6718_s2, 5  ;;  %p7059_p11 = por %p584_p9, %p583_p7 }
  0x56   : > { %s9666_s17 = scalar_select %p7053_p8, 1, 0 }
  0x57   : > { %s9668_s30 = scalar_select %p7059_p11, 1, 0 }
  0x58   : > { %9667 = sst [smem:[#allocation36_spill]] %s9666_s17  ;;  %p7063_p12 = pnand %p4899_p10, %p619_p4 }
  0x59   : > { %9669 = sst [smem:[#allocation37_spill]] %s9668_s30  ;;  %s6724_s14 = smov [#allocation8]  }
  0x5a   : > { %s9671_s20 = sld [smem:[#allocation111_spill]]  ;;  %p6195_p1 = pneg %p7063_p12 }
  0x5b   : > { %s638_s10 = sshll.u32 %s6724_s14, 4  ;;  %s9672_s11 = sld [smem:[#allocation121_spill]]  ;;  %s639_s10 = int_to_ptr.vmem [resolvable:$true] %s638_s10 }
  0x5c   : > { %p6196_p2 = pnand %p6195_p1, %p73_p0  ;;  %s799_s5 = scalar_lea.vmem [#allocation13], %s6985_s18 }
  0x5d   : > { %s807_s12 = sshll.u32 %s799_s5, 4  ;;  %s9673_s0 = smov 8   ;;  %s808_s12 = int_to_ptr.vmem [resolvable:$true] %s807_s12 }
  0x5e   : > { %s9674_s8 = smov 128  }
  0x60   : > { %s636_s22 = sshll.u32 %s9671_s20, 4  ;;  %840 = sbr.rel (%p7063_p12) target bundleno = 1692 (0x69c), region = 104  ;;  %s637_s22 = int_to_ptr.hbm [resolvable:$true] %s636_s22 }
  0x61   : > { %s804_s13 = scalar_lea.hbm %s9672_s11, %s6983_s15 }
  0x62   : > { %s805_s25 = sshll.u32 %s804_s13, 4  ;;  %s806_s25 = int_to_ptr.hbm [resolvable:$true] %s805_s25 }
  0x63   : > { %6198 = dma.hbm_to_vmem [thread:$0]  (!%p6196_p2), %s637_s22, 8192, %s639_s10, [#allocation9], %s9674_s8, %s9674_s8, %s9673_s0  }
  0x64   : > { %6214 = dma.hbm_to_vmem [thread:$0]  (!%p6994_p13), %s806_s25, 4096, %s808_s12, %s6968_s7, %s9674_s8, %s9674_s8, %s9673_s0  }
  0x65   : > { %s842_s9 = sand.u32 1, %s7027_s21   ;;  %s844_s11 = sand.u32 1, %s6694_s1  }
  0x66   : > { %s4919_s13 = sshll.u32 %s844_s11, 5  ;;  %s843_s5 = scalar_lea.sflag [#allocation6], %s842_s9 }
  0x67   : > { %s7092_s15 = scalar_lea.vmem [#allocation5], %s4919_s13 }
  0x68   : > { %6649 = dma.done.wait (%p7040_p3), %s843_s5, 512  }
  0x69   : > { %6651 = vsyncadd (%p7040_p3), %s843_s5, 4294966784 }
  0x6a   : > { %6653 = dma.done.wait (%p73_p0), [#allocation9], 8192  }
  0x6b   : > { %6655 = vsyncadd (%p73_p0), [#allocation9], 4294959104  ;;  %s859_s0 = sand.u32 1, %s6682_s4  }
  0x6c   : > { %s4921_s25 = sshll.u32 %s859_s0, 8 }
  0x6d   : > { %s7103_s7 = scalar_lea.vmem [#allocation10], %s4921_s25 }
  0x6e   : > { %9675 = sst [smem:[#allocation38_spill]] %s7103_s7 }
  0x6f   : > { %6657 = dma.done.wait (%p7047_p6), %s843_s5, 16384  }
  0x70   : > { %6659 = vsyncadd (%p7047_p6), %s843_s5, 4294950912  ;;  %s9676_s12 = sld [smem:[#allocation27_spill]]  ;;  %s9501_s26 = sand.u32 1, %s6670_s28  }
  0x71   : > { %s9677_s18 = sld [smem:[#allocation26_spill]]  ;;  %s4925_s10 = sshll.u32 %s9501_s26, 5 }
  0x72   : > { %s9678_s6 = sld [smem:[#allocation107_spill]]  ;;  %s7164_s14 = scalar_lea.vmem [#allocation13], %s4921_s25 }
  0x73   : > { %s9679_s8 = sld [smem:[#allocation108_spill]]  ;;  %s7166_s3 = scalar_lea.vmem [#allocation14], %s4925_s10 }
  0x74   : > { %s9682_s22 = sld [smem:[#allocation120_spill]] }
  0x75   : > { %s9683_s29 = sld [smem:[#allocation122_spill]] }
  0x76   : > { %s4926_s19 = sshll.u32 %s9676_s12, 1  ;;  %s9684_s17 = sld [smem:[#allocation123_spill]] }
  0x77   : > { %p1018_p13 = scmp.lt.s32.totalorder %s4926_s19, 3  ;;  %p1029_p0 = scmp.lt.s32.totalorder %s9677_s18, 1 }
  0x78   : > { %s9685_s0 = sld [smem:[#allocation124_spill]]  ;;  %p4939_p3 = scmp.ne.s32.totalorder %s9677_s18, 0 }
  0x79   : > { %s9963_s19 = smov (!%p1018_p13, %s4926_s19), 3  ;;  %s9686_s27 = sld [smem:[#allocation128_spill]] }
  0x7a   : > { %s7115_s21 = scalar_select %p1029_p0, %s9677_s18, 1 }
  0x7b   : > { %s4927_s24 = sshll.u32 %s9963_s19, 3 }
  0x7c   : > { %s1021_s20 = scalar_lea.vmem %s9678_s6, %s4927_s24  ;;  %s7123_s9 = scalar_lea.vmem %s9679_s8, %s4927_s24 }
  0x7d   : > { %s7126_s11 = sshll.u32 %s7115_s21, 1  ;;  %s5937_s13 = sshll.u32 %s7115_s21, 7 }
  0x7e   : > { %s1040_s24 = scalar_lea.vmem %s9682_s22, %s7126_s11  ;;  %s1044_s30 = scalar_lea.vmem %s9683_s29, %s7126_s11 }
  0x7f   : > { %s7148_s28 = scalar_lea.vmem %s9684_s17, %s5937_s13  ;;  %s1052_s12 = scalar_lea.vmem %s9685_s0, %s7115_s21 }
  0x80   : > { %s4937_s26 = sshll.u32 %s7115_s21, 2  ;;  %s7160_s22 = scalar_lea.vmem [#allocation11], %s4921_s25 }
  0x81   : > { %s1060_s4 = sadd.s32 %s4937_s26, %s9963_s19  ;;  %s7162_s29 = scalar_lea.vmem [#allocation12], %s4921_s25 }
  0x82   : > { %s4938_s1 = sshll.u32 %s1060_s4, 3  ;;  %1067 = sbr.rel (%p4939_p3) target bundleno = 892 (0x37c), region = 132 }
  0x83   : > { %s7158_s6 = scalar_lea.vmem %s9686_s27, %s4938_s1 }
  0x87   : > { %v1078_v0 = vld [vmem:[%s1021_s20] sm:$0xff]  ;;  %v6725_v1 = vmov 3   ;;  %v9518_v2 = vmov 0   ;;  %v6727_v3 = vmov 1   ;;  %v1079_v4 = vld [vmem:[%s1021_s20 + $0x8] sm:$0xff]  ;;  %v6728_v5 = vmov 2  }
  0x88   : > { %6355 = vset.pattern.permute.xlu2 %v6725_v1  ;;  %6354 = vset.pattern.permute.xlu1 %v9518_v2  ;;  %s9687_s25 = sld [smem:[#allocation109_spill]]  ;;  %v9529_v24 = vmov 920167782   ;;  %v9523_v26 = vmov 1326507024  }
  0x89   : > { %6353 = vset.pattern.permute.xlu0 %v6727_v3  ;;  %2436 = vperm.xlu2 %6355, %v1078_v0   ;;  %s9688_s26 = sld [smem:[#allocation110_spill]]  ;;  %v9527_v31 = vmov 2475754826   ;;  %v9525_v33 = vmov 2131351028  }
  0x8a   : > { %1428 = vperm.xlu1 %6354, %v1078_v0   ;;  %1082 = vperm.xlu0 %6353, %v1078_v0   ;;  %v9552_v36 = vmov 2102212464   ;;  %v9520_v46 = vmov 683565275   ;;  %s9915_s19 = sld [smem:[#allocation113_spill]] }
  0x8b   : > { %s9916_s23 = sld [smem:[#allocation112_spill]] }
  0x8c   : > { %s9917_s0 = sld [smem:[#allocation114_spill]] }
  0x8e   : > { %v7173_v6 = vld [vmem:[%s9687_s25] ss:$0 sm:$0xff] }
  0x8f   : > { %v7178_v7 = vld [vmem:[%s9688_s26] ss:$0 sm:$0xff] }
  0x91   : > { %2440 = vperm.xlu2 %6355, %v1079_v4  }
  0x92   : > { %1432 = vperm.xlu1 %6354, %v1079_v4   ;;  %1087 = vperm.xlu0 %6353, %v1079_v4  }
  0x9a   : > { %6357 = vset.pattern.permute.xlu1 %v6728_v5  ;;  %6356 = vset.pattern.permute.xlu0 %v6728_v5 }
  0x9b   : > { %1988 = vperm.xlu1 %6357, %v1079_v4   ;;  %1984 = vperm.xlu0 %6356, %v1078_v0  }
  0xa3   : > { %6358 = vset.pattern.permute.xlu0 %v6725_v1 }
  0xe3   : > { %v2437_v8 = vpop.permute.xlu2 %2436 }
  0xe4   : > { %v2443_v9 = vmul.f32 %v7173_v6, %v2437_v8 }
  0xe6   : > { %v7182_v10 = vadd.f32 %v7178_v7, %v2443_v9 }
  0xe8   : > { %9689 = vst [vmem:[#allocation39_spill] sm:$0xff] %v7182_v10  ;;  %v2450_v11 = vand.u32 2139095040, %v7182_v10  ;;  %v9514_v23 = vand.u32 2147483647, %v7182_v10 }
  0xea   : > { %v2451_v12 = vshrl.u32 %v2450_v11, 23  ;;  %v2454_v30 = vand.u32 8388607, %v9514_v23 }
  0xeb   : > { %v2441_v13 = vpop.permute.xlu2 %2440 }
  0xec   : > { %v5150_v14 = vadd.s32 4294967169, %v2451_v12  ;;  %v2444_v15 = vmul.f32 %v7173_v6, %v2441_v13  ;;  %v2455_v44 = vor.u32 8388608, %v2454_v30 }
  0xee   : > { %v2457_v16 = vadd.s32 1, %v5150_v14  ;;  %v7187_v17 = vadd.f32 %v7178_v7, %v2444_v15  ;;  %v7231_v60 = vshll.u32 %v2455_v44, 8 }
  0xf0   : > { %9690 = vst [vmem:[#allocation40_spill] sm:$0xff] %v7187_v17  ;;  %vm2458_vm0 = vcmp.gt.s32.totalorder %v2457_v16, 0  ;;  %v2605_v19 = vand.u32 2139095040, %v7187_v17  ;;  %v9513_v45 = vand.u32 2147483647, %v7187_v17  ;;  %v7254_v12 = vand.u32 65535, %v7231_v60 }
  0xf1   : > { %v2459_v18 = vsel %vm2458_vm0, %v2457_v16, 0  ;;  %9691 = vst [vmem:[#allocation41_spill] sm:$0xff] %v7231_v60  ;;  %v7259_v14 = vshrl.u32 %v7231_v60, 16 }
  0xf2   : > { %v2461_v20 = vand.u32 31, %v2459_v18  ;;  %v2606_v22 = vshrl.u32 %v2605_v19, 23  ;;  %v7196_v29 = vshrl.u32 %v2459_v18, 5  ;;  %v2609_v58 = vand.u32 8388607, %v9513_v45  ;;  %9693 = vst [vmem:[#allocation43_spill] sm:$0xff] %v7254_v12 }
  0xf3   : > { %9695 = vst [vmem:[#allocation45_spill] sm:$0xff] %v7259_v14 }
  0xf4   : > { %v7190_v21 = vsub.s32 32, %v2461_v20  ;;  %v2476_v25 = vshll.u32 %v9529_v24, %v2461_v20  ;;  %v5153_v28 = vadd.s32 4294967169, %v2606_v22  ;;  %v2467_v32 = vshll.u32 %v9527_v31, %v2461_v20 }
  0xf5   : > { %v2470_v35 = vshll.u32 %v9525_v33, %v2461_v20  ;;  %v2473_v42 = vshll.u32 %v9552_v36, %v2461_v20  ;;  %vm2482_vm1 = vcmp.lt.s32.totalorder %v7196_v29, 4  ;;  %v2464_v47 = vshll.u32 %v9520_v46, %v2461_v20 }
  0xf6   : > { %v2477_v27 = vshrl.u32 %v9523_v26, %v7190_v21  ;;  %v2468_v34 = vshrl.u32 %v9525_v33, %v7190_v21  ;;  %v2471_v37 = vshrl.u32 %v9552_v36, %v7190_v21  ;;  %v2612_v38 = vadd.s32 1, %v5153_v28 }
  0xf7   : > { %v2474_v43 = vshrl.u32 %v9529_v24, %v7190_v21  ;;  %v2465_v51 = vshrl.u32 %v9527_v31, %v7190_v21  ;;  %vm2479_vm3 = vcmp.lt.s32.totalorder %v7196_v29, 1  ;;  %vm2481_vm4 = vcmp.lt.s32.totalorder %v7196_v29, 3 }
  0xf8   : > { %v2478_v39 = vor.u32 %v2477_v27, %v2476_v25  ;;  %vm2613_vm2 = vcmp.gt.s32.totalorder %v2612_v38, 0  ;;  %v7212_v48 = vor.u32 %v2468_v34, %v2467_v32  ;;  %v2472_v49 = vor.u32 %v2471_v37, %v2470_v35 }
  0xf9   : > { %v2614_v50 = vsel %vm2613_vm2, %v2612_v38, 0  ;;  %v2475_v53 = vor.u32 %v2474_v43, %v2473_v42  ;;  %vm2480_vm5 = vcmp.lt.s32.totalorder %v7196_v29, 2  ;;  %v7229_v59 = vor.u32 %v2465_v51, %v2464_v47 }
  0xfa   : > { %v2492_v52 = vsel %vm2482_vm1, %v2478_v39, 1326507024  ;;  %v2616_v54 = vand.u32 31, %v2614_v50  ;;  %v2491_v56 = vsel %vm2479_vm3, %v7212_v48, %v2472_v49  ;;  %v2610_v4 = vor.u32 8388608, %v2609_v58 }
  0xfb   : > { %v2493_v57 = vsel %vm2481_vm4, %v2475_v53, %v2492_v52  ;;  %v2488_v62 = vsel %vm2482_vm1, %v2475_v53, 920167782  ;;  %v2487_v9 = vsel %vm2479_vm3, %v7229_v59, %v7212_v48  ;;  %v7256_v13 = vshrl.u32 %v2614_v50, 5 }
  0xfc   : > { %v1429_v40 = vpop.permute.xlu1 %1428  ;;  %v1083_v41 = vpop.permute.xlu0 %1082  ;;  %v7233_v61 = vsub.s32 32, %v2616_v54  ;;  %v7239_v63 = vsel %vm2480_vm5, %v2491_v56, %v2493_v57  ;;  %v2631_v5 = vshll.u32 %v9529_v24, %v2616_v54  ;;  %v2489_v11 = vsel %vm2481_vm4, %v2472_v49, %v2488_v62 }
  0xfd   : > { %v1435_v55 = vmul.f32 %v7173_v6, %v1429_v40  ;;  %9694 = vst [vmem:[#allocation44_spill] sm:$0xff] %v7256_v13  ;;  %v9517_v15 = vshrl.u32 %v7239_v63, 16  ;;  %v2622_v16 = vshll.u32 %v9527_v31, %v2616_v54  ;;  %v1093_v18 = vmul.f32 %v7173_v6, %v1083_v41 }
  0xfe   : > { %v2632_v8 = vshrl.u32 %v9523_v26, %v7233_v61  ;;  %v2623_v19 = vshrl.u32 %v9525_v33, %v7233_v61  ;;  %v2625_v20 = vshll.u32 %v9525_v33, %v2616_v54  ;;  %v2626_v22 = vshrl.u32 %v9552_v36, %v7233_v61 }
  0xff   : > { %v7242_v0 = vadd.f32 %v7178_v7, %v1435_v55  ;;  %v7272_v27 = vsel %vm2482_vm1, %v2472_v49, 2102212464  ;;  %v7276_v28 = vsel %vm2480_vm5, %v2487_v9, %v2489_v11  ;;  %v7278_v32 = vshll.u32 %v2610_v4, 8 }
 0x100   : > { %9696 = vst [vmem:[#allocation46_spill] sm:$0xff] %v7276_v28  ;;  %v2633_v30 = vor.u32 %v2632_v8, %v2631_v5  ;;  %v2628_v34 = vshll.u32 %v9552_v36, %v2616_v54  ;;  %v2629_v35 = vshrl.u32 %v9529_v24, %v7233_v61  ;;  %vm2637_vm6 = vcmp.lt.s32.totalorder %v7256_v13, 4 }
 0x101   : > { %9692 = vst [vmem:[#allocation42_spill] sm:$0xff] %v7242_v0  ;;  %v1442_v25 = vand.u32 2139095040, %v7242_v0  ;;  %v2498_v38 = vand.u32 65535, %v7239_v63  ;;  %v7288_v39 = vmul.u32 %v9517_v15, %v7254_v12  ;;  %v7292_v41 = vadd.f32 %v7178_v7, %v1093_v18  ;;  %v5947_v0 = vld [vmem:[#allocation8 + $0x44] sm:$0xf0] }
 0x102   : > { %9697 = vst [vmem:[#allocation47_spill] sm:$0xff] %v7278_v32  ;;  %v7294_v42 = vor.u32 %v2623_v19, %v2622_v16  ;;  %v2627_v43 = vor.u32 %v2626_v22, %v2625_v20  ;;  %vm9617_vm7 = vcmp.lt.s32.totalorder %v7256_v13, 1  ;;  %vm9586_vm8 = vcmp.lt.s32.totalorder %v7256_v13, 3 }
 0x103   : > { %v1443_v37 = vshrl.u32 %v1442_v25, 23  ;;  %9698 = vst [vmem:[#allocation48_spill] sm:$0xff] %v7288_v39  ;;  %v2647_v44 = vsel %vm2637_vm6, %v2633_v30, 1326507024  ;;  %v1103_v49 = vand.u32 2139095040, %v7292_v41  ;;  %v2619_v52 = vshll.u32 %v9520_v46, %v2616_v54 }
 0x104   : > { %v1433_v1 = vpop.permute.xlu1 %1432  ;;  %v1088_v3 = vpop.permute.xlu0 %1087  ;;  %9699 = vst [vmem:[#allocation49_spill] sm:$0xff] %v7292_v41  ;;  %v2620_v53 = vshrl.u32 %v9527_v31, %v7233_v61  ;;  %v2630_v55 = vor.u32 %v2629_v35, %v2628_v34  ;;  %v7307_v58 = vmul.u32 %v2498_v38, %v7254_v12  ;;  %v9516_v62 = vshll.u32 %v7288_v39, 16 }
 0x105   : > { %9700 = vst [vmem:[#allocation50_spill] sm:$0xff] %v7294_v42  ;;  %v4946_v47 = vadd.s32 4294967169, %v1443_v37  ;;  %v1436_v50 = vmul.f32 %v7173_v6, %v1433_v1  ;;  %vm9585_vm9 = vcmp.lt.s32.totalorder %v7256_v13, 2  ;;  %v7312_v4 = vand.u32 65535, %v7278_v32 }
 0x106   : > { %v2646_v54 = vsel %vm9617_vm7, %v7294_v42, %v2627_v43  ;;  %v2648_v1 = vsel %vm9586_vm8, %v2630_v55, %v2647_v44  ;;  %v1104_v8 = vshrl.u32 %v1103_v49, 23  ;;  %v1094_v11 = vmul.f32 %v7173_v6, %v1088_v3 }
 0x107   : > { %9701 = vst [vmem:[#allocation51_spill] sm:$0xff] %v7312_v4  ;;  %v1449_v5 = vadd.s32 1, %v4946_v47  ;;  %v7320_v9 = vadd.f32 %v7178_v7, %v1436_v50  ;;  %v7325_v19 = vor.u32 %v2620_v53, %v2619_v52  ;;  %v2643_v20 = vsel %vm2637_vm6, %v2630_v55, 920167782 }
 0x108   : > { %v4940_v22 = vadd.s32 4294967169, %v1104_v8  ;;  %v7331_v25 = vsel %vm9585_vm9, %v2646_v54, %v2648_v1  ;;  %v7335_v3 = vadd.f32 %v7178_v7, %v1094_v11  ;;  %v7338_v35 = vmul.u32 %v2498_v38, %v7259_v14 }
 0x109   : > { %9702 = vst [vmem:[#allocation52_spill] sm:$0xff] %v7320_v9  ;;  %vm1450_vm10 = vcmp.gt.s32.totalorder %v1449_v5, 0  ;;  %v1597_v34 = vand.u32 2139095040, %v7320_v9  ;;  %vm7343_vm11 = vc.u32 %v7307_v58, %v9516_v62  ;;  %v2642_v38 = vsel %vm9617_vm7, %v7325_v19, %v7294_v42  ;;  %v5949_v9 = vld [vmem:[#allocation8 + $0x54] sm:$0xf0] }
 0x10a   : > { %9703 = vst [vmem:[#allocation53_spill] sm:$0xff] %v7325_v19  ;;  %v1451_v30 = vsel %vm1450_vm10, %v1449_v5, 0  ;;  %v1110_v44 = vadd.s32 1, %v4940_v22  ;;  %v1258_v49 = vand.u32 2139095040, %v7335_v3  ;;  %v2644_v53 = vsel %vm9586_vm8, %v2627_v43, %v2643_v20 }
 0x10b   : > { %9704 = vst [vmem:[#allocation54_spill] sm:$0xff] %v7331_v25  ;;  %v7347_v37 = vand.u32 31, %v1451_v30  ;;  %v1598_v47 = vshrl.u32 %v1597_v34, 23  ;;  %v7363_v55 = vshrl.u32 %v7278_v32, 16  ;;  %v7373_v5 = vsel %vm7343_vm11, 1, %v9518_v2 }
 0x10c   : > { %9705 = vst [vmem:[#allocation55_spill] sm:$0xff] %v7335_v3  ;;  %vm1111_vm12 = vcmp.gt.s32.totalorder %v1110_v44, 0  ;;  %v7377_v8 = vsel %vm2637_vm6, %v2627_v43, 2102212464  ;;  %v7405_v23 = vshrl.u32 %v1451_v30, 5  ;;  %v1068_v3 = vld [vmem:[%s7092_s15] sm:$0xff] }
 0x10d   : > { %v1989_v56 = vpop.permute.xlu1 %1988  ;;  %v1985_v57 = vpop.permute.xlu0 %1984  ;;  %9706 = vst [vmem:[#allocation56_spill] sm:$0xff] %v7338_v35  ;;  %v4949_v54 = vadd.s32 4294967169, %v1598_v47  ;;  %v1112_v11 = vsel %vm1111_vm12, %v1110_v44, 0  ;;  %v1465_v44 = vshll.u32 %v9552_v36, %v7347_v37  ;;  %v9735_v42 = vmov 2131351028  }
 0x10e   : > { %v1992_v16 = vmul.f32 %v7173_v6, %v1989_v56  ;;  %v1991_v18 = vmul.f32 %v7173_v6, %v1985_v57  ;;  %9711 = vst [vmem:[#allocation59_spill] sm:$0xff] %v7363_v55  ;;  %v9515_v56 = vshrl.u32 %v7331_v25, 16  ;;  %v7367_v57 = vsub.s32 32, %v7347_v37 }
 0x10f   : > { %9712 = vst [vmem:[#allocation60_spill] sm:$0xff] %v7373_v5  ;;  %v1604_v20 = vadd.s32 1, %v4949_v54  ;;  %v1468_v54 = vshll.u32 %v9529_v24, %v7347_v37  ;;  %v7407_v47 = vshrl.u32 %v1112_v11, 5  ;;  %vm1474_vm15 = vcmp.lt.s32.totalorder %v7405_v23, 4 }
 0x110   : > { %v7351_v50 = vadd.f32 %v7178_v7, %v1992_v16  ;;  %v7354_v52 = vadd.f32 %v7178_v7, %v1991_v18  ;;  %v1259_v7 = vshrl.u32 %v1258_v49, 23  ;;  %9713 = vst [vmem:[#allocation61_spill] sm:$0xff] %v7377_v8  ;;  %v7381_v16 = vsel %vm9585_vm9, %v2642_v38, %v2644_v53 }
 0x111   : > { %9714 = vst [vmem:[#allocation62_spill] sm:$0xff] %v7381_v16  ;;  %v7383_v18 = vand.u32 31, %v1112_v11  ;;  %v7389_v6 = vmul.u32 %v9515_v56, %v7312_v4  ;;  %v1466_v49 = vshrl.u32 %v9529_v24, %v7367_v57  ;;  %vm1605_vm13 = vcmp.gt.s32.totalorder %v1604_v20, 0 }
 0x112   : > { %9709 = vst [vmem:[#allocation57_spill] sm:$0xff] %v7351_v50  ;;  %v4943_v22 = vadd.s32 4294967169, %v1259_v7  ;;  %v2153_v43 = vand.u32 2139095040, %v7351_v50  ;;  %v9522_v53 = vand.u32 2147483647, %v7351_v50  ;;  %v1469_v7 = vshrl.u32 %v9523_v26, %v7367_v57 }
 0x113   : > { %9710 = vst [vmem:[#allocation58_spill] sm:$0xff] %v7354_v52  ;;  %v7398_v38 = vsub.s32 32, %v7383_v18  ;;  %v1606_v56 = vsel %vm1605_vm13, %v1604_v20, 0  ;;  %v7415_v62 = vor.u32 %v1466_v49, %v1465_v44  ;;  %v1126_v20 = vshll.u32 %v9552_v36, %v7383_v18 }
 0x114   : > { %9715 = vst [vmem:[#allocation63_spill] sm:$0xff] %v7383_v18  ;;  %v1265_v45 = vadd.s32 1, %v4943_v22  ;;  %v2154_v1 = vshrl.u32 %v2153_v43, 23  ;;  %v7413_v51 = vand.u32 31, %v1606_v56  ;;  %v2157_v30 = vand.u32 8388607, %v9522_v53 }
 0x115   : > { %9716 = vst [vmem:[#allocation64_spill] sm:$0xff] %v7389_v6  ;;  %v1127_v34 = vshrl.u32 %v9529_v24, %v7398_v38  ;;  %v1130_v40 = vshrl.u32 %v9523_v26, %v7398_v38  ;;  %v1470_v11 = vor.u32 %v1469_v7, %v1468_v54  ;;  %v1129_v22 = vshll.u32 %v9529_v24, %v7383_v18 }
 0x116   : > { %9717 = vst [vmem:[#allocation65_spill] sm:$0xff] %v7398_v38  ;;  %vm1266_vm14 = vcmp.gt.s32.totalorder %v1265_v45, 0  ;;  %v5083_v2 = vadd.s32 4294967169, %v2154_v1  ;;  %v7424_v43 = vsub.s32 32, %v7413_v51  ;;  %v7428_v49 = vshrl.u32 %v1606_v56, 5  ;;  %v1071_v38 = vld [vmem:[%s7092_s15 + $0x18] sm:$0xff] }
 0x117   : > { %9718 = vst [vmem:[#allocation66_spill] sm:$0xff] %v7405_v23  ;;  %v1267_v15 = vsel %vm1266_vm14, %v1265_v45, 0  ;;  %v7433_v1 = vor.u32 %v1127_v34, %v1126_v20  ;;  %v1131_v54 = vor.u32 %v1130_v40, %v1129_v22  ;;  %v7438_v53 = vsel %vm1474_vm15, %v7415_v62, 920167782 }
 0x118   : > { %9719 = vst [vmem:[#allocation67_spill] sm:$0xff] %v7407_v47  ;;  %v7430_v45 = vand.u32 31, %v1267_v15  ;;  %v2160_v7 = vadd.s32 1, %v5083_v2  ;;  %vm1135_vm0 = vcmp.lt.s32.totalorder %v7407_v47, 4  ;;  %v1621_v44 = vshrl.u32 %v9529_v24, %v7424_v43 }
 0x119   : > { %9720 = vst [vmem:[#allocation68_spill] sm:$0xff] %v7413_v51  ;;  %v2158_v56 = vor.u32 8388608, %v2157_v30  ;;  %v7445_v46 = vsel %vm1474_vm15, %v1470_v11, 1326507024  ;;  %v1620_v34 = vshll.u32 %v9552_v36, %v7413_v51  ;;  %v1624_v2 = vshrl.u32 %v9523_v26, %v7424_v43 }
 0x11a   : > { %9721 = vst [vmem:[#allocation69_spill] sm:$0xff] %v7415_v62  ;;  %vm2161_vm1 = vcmp.gt.s32.totalorder %v2160_v7, 0  ;;  %v1623_v40 = vshll.u32 %v9529_v24, %v7413_v51  ;;  %vm1629_vm2 = vcmp.lt.s32.totalorder %v7428_v49, 4  ;;  %v7455_v20 = vsub.s32 32, %v7430_v45 }
 0x11b   : > { %9722 = vst [vmem:[#allocation70_spill] sm:$0xff] %v7428_v49  ;;  %v2162_v30 = vsel %vm2161_vm1, %v2160_v7, 0  ;;  %v7460_v11 = vsel %vm1135_vm0, %v7433_v1, 920167782  ;;  %v7464_v22 = vsel %vm1135_vm0, %v1131_v54, 1326507024  ;;  %v7468_v31 = vor.u32 %v1621_v44, %v1620_v34 }
 0x11c   : > { %9723 = vst [vmem:[#allocation71_spill] sm:$0xff] %v7430_v45  ;;  %v7466_v26 = vshrl.u32 %v1267_v15, 5  ;;  %v2164_v33 = vand.u32 31, %v2162_v30  ;;  %v1281_v24 = vshll.u32 %v9552_v36, %v7430_v45  ;;  %v7472_v17 = vshrl.u32 %v2162_v30, 5 }
 0x11d   : > { %9724 = vst [vmem:[#allocation72_spill] sm:$0xff] %v7433_v1  ;;  %v7474_v7 = vshll.u32 %v2158_v56, 8  ;;  %v1625_v10 = vor.u32 %v1624_v2, %v1623_v40  ;;  %v9734_v50 = vmov 2475754826   ;;  %v9736_v15 = vmov 920167782  }
 0x11e   : > { %9725 = vst [vmem:[#allocation73_spill] sm:$0xff] %v7438_v53  ;;  %v7476_v32 = vsub.s32 32, %v2164_v33  ;;  %v2170_v16 = vshll.u32 %v9734_v50, %v2164_v33  ;;  %v2173_v54 = vshll.u32 %v9735_v42, %v2164_v33  ;;  %v1282_v8 = vshrl.u32 %v9736_v15, %v7455_v20  ;;  %v1070_v1 = vld [vmem:[%s7092_s15 + $0x10] sm:$0xff]  ;;  %v4988_v53 = vld [vmem:[#allocation8 + $0xc8] sm:$0xf0] }
 0x11f   : > { %9726 = vst [vmem:[#allocation74_spill] sm:$0xff] %v7445_v46  ;;  %v9737_v44 = vmov 1326507024   ;;  %v2176_v30 = vshll.u32 %v9552_v36, %v2164_v33  ;;  %v2179_v56 = vshll.u32 %v9736_v15, %v2164_v33  ;;  %v9738_v2 = vmov 683565275  }
 0x120   : > { %9727 = vst [vmem:[#allocation75_spill] sm:$0xff] %v7455_v20  ;;  %v1285_v34 = vshrl.u32 %v9737_v44, %v7455_v20  ;;  %v2167_v40 = vshll.u32 %v9738_v2, %v2164_v33  ;;  %v2168_v13 = vshrl.u32 %v9734_v50, %v7476_v32  ;;  %v2171_v19 = vshrl.u32 %v9735_v42, %v7476_v32  ;;  %v4996_v46 = vld [vmem:[#allocation8 + $0xd8] sm:$0xf0] }
 0x121   : > { %9728 = vst [vmem:[#allocation76_spill] sm:$0xff] %v7460_v11  ;;  %v2174_v5 = vshrl.u32 %v9552_v36, %v7476_v32  ;;  %v7496_v60 = vsel %vm1629_vm2, %v7468_v31, 920167782  ;;  %v2177_v35 = vshrl.u32 %v9736_v15, %v7476_v32  ;;  %v2180_v33 = vshrl.u32 %v9737_v44, %v7476_v32  ;;  %v1069_v11 = vld [vmem:[%s7092_s15 + $0x8] sm:$0xff] }
 0x122   : > { %9729 = vst [vmem:[#allocation77_spill] sm:$0xff] %v7464_v22  ;;  %vm2182_vm6 = vcmp.lt.s32.totalorder %v7472_v17, 1  ;;  %v7505_v6 = vsel %vm1629_vm2, %v1625_v10, 1326507024  ;;  %v7507_v20 = vor.u32 %v2171_v19, %v2170_v16  ;;  %vm2184_vm10 = vcmp.lt.s32.totalorder %v7472_v17, 3 }
 0x123   : > { %9730 = vst [vmem:[#allocation78_spill] sm:$0xff] %v7466_v26  ;;  %v2175_v36 = vor.u32 %v2174_v5, %v2173_v54  ;;  %v2178_v22 = vor.u32 %v2177_v35, %v2176_v30  ;;  %v2181_v47 = vor.u32 %v2180_v33, %v2179_v56  ;;  %vm2185_vm11 = vcmp.lt.s32.totalorder %v7472_v17, 4  ;;  %v5010_v5 = vld [vmem:[#allocation8 + $0xf0] sm:$0xf]  ;;  %v5969_v30 = vld [vmem:[#allocation8 + $0xf4] sm:$0xf0] }
 0x124   : > { %9731 = vst [vmem:[#allocation79_spill] sm:$0xff] %v7468_v31  ;;  %v1998_v18 = vand.u32 2139095040, %v7354_v52  ;;  %v7516_v41 = vor.u32 %v2168_v13, %v2167_v40  ;;  %vm2183_vm12 = vcmp.lt.s32.totalorder %v7472_v17, 2  ;;  %v1284_v35 = vshll.u32 %v9736_v15, %v7430_v45  ;;  %v5012_v45 = vld [vmem:[#allocation8 + $0xf8] sm:$0xf0] }
 0x125   : > { %9732 = vst [vmem:[#allocation80_spill] sm:$0xff] %v7472_v17  ;;  %v2194_v10 = vsel %vm2182_vm6, %v7507_v20, %v2175_v36  ;;  %v2191_v16 = vsel %vm2185_vm11, %v2178_v22, 920167782  ;;  %v2195_v13 = vsel %vm2185_vm11, %v2181_v47, 1326507024  ;;  %vm1290_vm13 = vcmp.lt.s32.totalorder %v7466_v26, 4 }
 0x126   : > { %9733 = vst [vmem:[#allocation81_spill] sm:$0xff] %v7474_v7  ;;  %v2196_v54 = vsel %vm2184_vm10, %v2178_v22, %v2195_v13  ;;  %v7532_v56 = vor.u32 %v1282_v8, %v1281_v24  ;;  %v1286_v40 = vor.u32 %v1285_v34, %v1284_v35  ;;  %v2192_v47 = vsel %vm2184_vm10, %v2175_v36, %v2191_v16  ;;  %v5953_v13 = vld [vmem:[#allocation8 + $0x74] sm:$0xf0]  ;;  %v5002_v31 = vld [vmem:[#allocation8 + $0xe0] sm:$0xf] }
 0x127   : > { %9739 = vst [vmem:[#allocation82_spill] sm:$0xff] %v7496_v60  ;;  %v7536_v33 = vsel %vm2183_vm12, %v2194_v10, %v2196_v54  ;;  %v9744_v24 = vand.u32 2147483647, %v7354_v52  ;;  %v7548_v22 = vand.u32 65535, %v7474_v7  ;;  %v5011_v10 = vor.u32 %v5969_v30, %v5010_v5  ;;  %v5076_v54 = vld [vmem:[#allocation8 + $0x78] sm:$0xf0] }
 0x128   : > { %9740 = vst [vmem:[#allocation83_spill] sm:$0xff] %v7505_v6  ;;  %v7553_v16 = vsel %vm1290_vm13, %v7532_v56, 920167782  ;;  %v9749_v5 = vshrl.u32 %v7536_v33, 16  ;;  %v5964_v6 = vld [vmem:[#allocation8 + $0xd4] sm:$0xf] }
 0x129   : > { %9741 = vst [vmem:[#allocation84_spill] sm:$0xff] %v7507_v20  ;;  %v2002_v8 = vand.u32 8388607, %v9744_v24  ;;  %v7557_v24 = vsel %vm1290_vm13, %v1286_v40, 1326507024  ;;  %1847 = vmatpush.bf16.msra.mxu0 %v5011_v10  ;;  %v9758_v51 = vmov 0  }
 0x12a   : > { %1072 = vst [vmem:[#allocation2 + $0x10] sm:$0xff] %v1068_v3  ;;  %v1999_v3 = vshrl.u32 %v1998_v18, 23  ;;  %v2190_v18 = vsel %vm2182_vm6, %v7516_v41, %v7507_v20  ;;  %v5967_v20 = vld [vmem:[#allocation8 + $0xe4] sm:$0xf0]  ;;  %v7570_v30 = vmul.u32 %v9749_v5, %v7548_v22  ;;  %v5004_v40 = vld [vmem:[#allocation8 + $0xe8] sm:$0xf0] }
 0x12b   : > { %9742 = vst [vmem:[#allocation85_spill] sm:$0xff] %v7516_v41  ;;  %v5950_v10 = vld [vmem:[#allocation8 + $0x64] sm:$0xf]  ;;  %v5068_v5 = vld [vmem:[#allocation8 + $0x68] sm:$0xf0] }
 0x12c   : > { %1073 = vst [vmem:[#allocation2] sm:$0xff] %v1069_v11  ;;  %v5968_v11 = vld [vmem:[#allocation8 + $0xf4] sm:$0xf]  ;;  %v5080_v19 = vadd.s32 4294967169, %v1999_v3  ;;  %v5071_v62 = vor.u32 %v5950_v10, %v5068_v5  ;;  %v9755_v23 = vshll.u32 %v7570_v30, 16 }
 0x12d   : > { %1074 = vst [vmem:[#allocation2 + $0x18] sm:$0xff] %v1070_v1  ;;  %v5074_v1 = vld [vmem:[#allocation8 + $0x70] sm:$0xf]  ;;  %v5015_v35 = vor.u32 %v5968_v11, %v5012_v45  ;;  %v5952_v3 = vld [vmem:[#allocation8 + $0x74] sm:$0xf]  ;;  %v2201_v45 = vand.u32 65535, %v7536_v33 }
 0x12e   : > { %1075 = vst [vmem:[#allocation2 + $0x8] sm:$0xff] %v1071_v38  ;;  %v2005_v34 = vadd.s32 1, %v5080_v19  ;;  %v7561_v38 = vsel %vm2183_vm12, %v2190_v18, %v2192_v47  ;;  %v7565_v19 = vshrl.u32 %v7474_v7, 16  ;;  %v5966_v11 = vld [vmem:[#allocation8 + $0xe4] sm:$0xf]  ;;  %v5075_v41 = vor.u32 %v5953_v13, %v5074_v1 }
 0x12f   : > { %9743 = vst [vmem:[#allocation86_spill] sm:$0xff] %v7532_v56  ;;  %1861 = vmatpush.bf16.msra.mxu1 %v5015_v35  ;;  %v5003_v18 = vor.u32 %v5967_v20, %v5002_v31  ;;  %v7574_v47 = vsel %vm2185_vm11, %v2175_v36, 2102212464  ;;  %v2003_v7 = vor.u32 8388608, %v2002_v8  ;;  %v5007_v1 = vor.u32 %v5966_v11, %v5004_v40  ;;  %v5948_v10 = vld [vmem:[#allocation8 + $0x54] sm:$0xf] }
 0x130   : > { %9745 = vst [vmem:[#allocation87_spill] sm:$0xff] %v7553_v16  ;;  %vm2006_vm14 = vcmp.gt.s32.totalorder %v2005_v34, 0  ;;  %v5079_v16 = vor.u32 %v5952_v3, %v5076_v54  ;;  %1955 = vmatpush.bf16.msra.mxu2 %v5075_v41  ;;  %v7584_v31 = vmul.u32 %v2201_v45, %v7565_v19  ;;  %v9753_v3 = vmov 2102212464   ;;  %v5066_v54 = vld [vmem:[#allocation8 + $0x60] sm:$0xf] }
 0x131   : > { %9746 = vst [vmem:[#allocation88_spill] sm:$0xff] %v7557_v24  ;;  %v2007_v52 = vsel %vm2006_vm14, %v2005_v34, 0  ;;  %v7578_v24 = vmul.u32 %v2201_v45, %v7548_v22  ;;  %1848 = vmatpush.bf16.msra.mxu0 %v5003_v18  ;;  %v7600_v18 = vshll.u32 %v2003_v7, 8  ;;  %v5965_v7 = vld [vmem:[#allocation8 + $0xd4] sm:$0xf0] }
 0x132   : > { %9747 = vst [vmem:[#allocation89_spill] sm:$0xff] %v7561_v38  ;;  %v2009_v56 = vand.u32 31, %v2007_v52  ;;  %v7581_v35 = vshrl.u32 %v2007_v52, 5  ;;  %1969 = vmatpush.bf16.msra.mxu3 %v5079_v16  ;;  %v5951_v16 = vld [vmem:[#allocation8 + $0x64] sm:$0xf0] }
 0x133   : > { %9748 = vst [vmem:[#allocation90_spill] sm:$0xff] %v7565_v19  ;;  %1862 = vmatpush.bf16.msra.mxu1 %v5007_v1  ;;  %v4994_v1 = vld [vmem:[#allocation8 + $0xd0] sm:$0xf]  ;;  %vm7617_vm9 = vc.u32 %v7578_v24, %v9755_v23  ;;  %v5060_v5 = vld [vmem:[#allocation8 + $0x58] sm:$0xf0] }
 0x134   : > { %9750 = vst [vmem:[#allocation91_spill] sm:$0xff] %v7570_v30  ;;  %v7586_v20 = vsub.s32 32, %v2009_v56  ;;  %v2012_v36 = vshll.u32 %v9738_v2, %v2009_v56  ;;  %v2015_v8 = vshll.u32 %v9734_v50, %v2009_v56  ;;  %v2018_v13 = vshll.u32 %v9735_v42, %v2009_v56 }
 0x135   : > { %9751 = vst [vmem:[#allocation92_spill] sm:$0xff] %v7574_v47  ;;  %v2021_v52 = vshll.u32 %v9753_v3, %v2009_v56  ;;  %v2024_v41 = vshll.u32 %v9736_v15, %v2009_v56  ;;  %vm2027_vm1 = vcmp.lt.s32.totalorder %v7581_v35, 1  ;;  %vm2029_vm11 = vcmp.lt.s32.totalorder %v7581_v35, 3 }
 0x136   : > { %9752 = vst [vmem:[#allocation93_spill] sm:$0xff] %v7584_v31  ;;  %v2013_v45 = vshrl.u32 %v9734_v50, %v7586_v20  ;;  %v2016_v11 = vshrl.u32 %v9735_v42, %v7586_v20  ;;  %v2019_v40 = vshrl.u32 %v9753_v3, %v7586_v20  ;;  %v2022_v34 = vshrl.u32 %v9736_v15, %v7586_v20  ;;  %v5050_v31 = vld [vmem:[#allocation8 + $0x40] sm:$0xf] }
 0x137   : > { %9754 = vst [vmem:[#allocation94_spill] sm:$0xff] %v7600_v18  ;;  %v2025_v56 = vshrl.u32 %v9737_v44, %v7586_v20  ;;  %vm2030_vm14 = vcmp.lt.s32.totalorder %v7581_v35, 4  ;;  %v5067_v15 = vor.u32 %v5951_v16, %v5066_v54  ;;  %v5058_v44 = vld [vmem:[#allocation8 + $0x50] sm:$0xf]  ;;  %vm2028_vm8 = vcmp.lt.s32.totalorder %v7581_v35, 2  ;;  %1970 = vmatpush.bf16.msra.mxu3 %v5071_v62 }
 0x138   : > { %v7608_v47 = vor.u32 %v2013_v45, %v2012_v36  ;;  %v7610_v17 = vor.u32 %v2016_v11, %v2015_v8  ;;  %v2020_v26 = vor.u32 %v2019_v40, %v2018_v13  ;;  %v2023_v60 = vor.u32 %v2022_v34, %v2021_v52  ;;  %v4986_v34 = vld [vmem:[#allocation8 + $0xc0] sm:$0xf]  ;;  %v5963_v13 = vld [vmem:[#allocation8 + $0xc4] sm:$0xf0]  ;;  %v5962_v16 = vld [vmem:[#allocation8 + $0xc4] sm:$0xf] }
 0x139   : > { %v2026_v49 = vor.u32 %v2025_v56, %v2024_v41  ;;  %1956 = vmatpush.bf16.msra.mxu2 %v5067_v15  ;;  %v4995_v54 = vor.u32 %v5965_v7, %v4994_v1  ;;  %v2463_v45 = vshrl.u32 %v9738_v2, %v7190_v21  ;;  %v4999_v56 = vor.u32 %v5964_v6, %v4996_v46  ;;  %v5946_v1 = vld [vmem:[#allocation8 + $0x44] sm:$0xf]  ;;  %v5052_v7 = vld [vmem:[#allocation8 + $0x48] sm:$0xf0]  ;;  %v4978_v6 = vld [vmem:[#allocation8 + $0xb0] sm:$0xf] }
 0x13a   : > { %v2035_v8 = vsel %vm2027_vm1, %v7608_v47, %v7610_v17  ;;  %v2036_v52 = vsel %vm2030_vm14, %v2023_v60, 920167782  ;;  %v2039_v23 = vsel %vm2027_vm1, %v7610_v17, %v2020_v26  ;;  %v7645_v62 = vand.u32 65535, %v7600_v18  ;;  %v5961_v36 = vld [vmem:[#allocation8 + $0xb4] sm:$0xf0] }
 0x13b   : > { %v2040_v41 = vsel %vm2030_vm14, %v2026_v49, 1326507024  ;;  %v2037_v11 = vsel %vm2029_vm11, %v2020_v26, %v2036_v52  ;;  %v7642_v49 = vsel %vm7617_vm9, 1, %v9758_v51  ;;  %1849 = vmatpush.bf16.msra.mxu0 %v4995_v54  ;;  %v5059_v21 = vor.u32 %v5949_v9, %v5058_v44  ;;  %1863 = vmatpush.bf16.msra.mxu1 %v4999_v56  ;;  %v5960_v54 = vld [vmem:[#allocation8 + $0xb4] sm:$0xf] }
 0x13c   : > { %v2041_v40 = vsel %vm2029_vm11, %v2023_v60, %v2040_v41  ;;  %9759 = vst [vmem:[#allocation95_spill] sm:$0xff] %v7642_v49  ;;  %v7649_v15 = vsel %vm2030_vm14, %v2020_v26, 2102212464  ;;  %v7653_v46 = vsel %vm2028_vm8, %v2035_v8, %v2037_v11  ;;  %v5063_v52 = vor.u32 %v5948_v10, %v5060_v5  ;;  %v4980_v49 = vld [vmem:[#allocation8 + $0xb8] sm:$0xf0] }
 0x13d   : > { %v7657_v60 = vsel %vm2028_vm8, %v2039_v23, %v2041_v40  ;;  %1957 = vmatpush.bf16.msra.mxu2 %v5059_v21  ;;  %v4987_v9 = vor.u32 %v5963_v13, %v4986_v34  ;;  %v4991_v44 = vor.u32 %v5962_v16, %v4988_v53  ;;  %v5051_v41 = vor.u32 %v5947_v0, %v5050_v31  ;;  %v5042_v26 = vld [vmem:[#allocation8 + $0x30] sm:$0xf]  ;;  %v5945_v11 = vld [vmem:[#allocation8 + $0x34] sm:$0xf0]  ;;  %v7666_v40 = vld [vmem:[#allocation8 + $0x34] sm:$0xf] }
 0x13e   : > { %v2483_v8 = vsel %vm2479_vm3, %v2463_v45, %v7229_v59  ;;  %v2485_v23 = vsel %vm2481_vm4, %v7212_v48, %v7272_v27  ;;  %v7668_v56 = vld [vmem:[#allocation8 + $0x38] sm:$0xf0]  ;;  %v7671_v53 = vshrl.u32 %v7600_v18, 16  ;;  %1971 = vmatpush.bf16.msra.mxu3 %v5063_v52  ;;  %v7674_v31 = vld [vmem:[#allocation8 + $0xa0] sm:$0xf]  ;;  %v5055_v27 = vor.u32 %v5946_v1, %v5052_v7 }
 0x13f   : > { %v7676_v10 = vld [vmem:[#allocation8 + $0xa4] sm:$0xf0]  ;;  %v7678_v59 = vld [vmem:[#allocation8 + $0xa4] sm:$0xf]  ;;  %1850 = vmatpush.bf16.msra.mxu0 %v4987_v9  ;;  %1864 = vmatpush.bf16.msra.mxu1 %v4991_v44  ;;  %v4979_v34 = vor.u32 %v5961_v36, %v4978_v6  ;;  %v7682_v13 = vld [vmem:[#allocation8 + $0xa8] sm:$0xf0]  ;;  %v7688_v45 = vsel %vm2480_vm5, %v2483_v8, %v2485_v23  ;;  %v4983_v5 = vor.u32 %v5960_v54, %v4980_v49 }
 0x140   : > { %v7684_v16 = vld [vmem:[#allocation8 + $0x20] sm:$0xf]  ;;  %9760 = vst [vmem:[#allocation96_spill] sm:$0xff] %v7688_v45  ;;  %v9761_v21 = vshrl.u32 %v7239_v63, 16  ;;  %v5043_v48 = vor.u32 %v5945_v11, %v5042_v26  ;;  %v7695_v9 = vld [vmem:[#allocation8 + $0x24] sm:$0xf0]  ;;  %v5047_v45 = vor.u32 %v7666_v40, %v7668_v56 }
 0x141   : > { %1958 = vmatpush.bf16.msra.mxu2 %v5051_v41  ;;  %v7697_v1 = vld [vmem:[#allocation8 + $0x24] sm:$0xf]  ;;  %v7699_v7 = vld [vmem:[#allocation8 + $0x28] sm:$0xf0]  ;;  %v9763_v6 = vshll.u32 %v7288_v39, 16  ;;  %v9765_v36 = vshrl.u32 %v7276_v28, 16  ;;  %v2011_v41 = vshrl.u32 %v9738_v2, %v7586_v20 }
 0x142   : > { %v7693_v52 = vmul.u32 %v9761_v21, %v7259_v14  ;;  %v9767_v49 = vand.u32 65535, %v7276_v28  ;;  %v7718_v54 = vld [vmem:[#allocation8 + $0x90] sm:$0xf]  ;;  %v7720_v26 = vld [vmem:[#allocation8 + $0x94] sm:$0xf0]  ;;  %v9770_v20 = vand.u32 65535, %v7331_v25  ;;  %1972 = vmatpush.bf16.msra.mxu3 %v5055_v27  ;;  %v4975_v27 = vor.u32 %v7678_v59, %v7682_v13 }
 0x143   : > { %v7704_v29 = vadd.s32 %v9763_v6, %v7307_v58  ;;  %v7709_v63 = vmul.u32 %v9765_v36, %v7254_v12  ;;  %v7722_v8 = vld [vmem:[#allocation8 + $0x94] sm:$0xf]  ;;  %v7724_v58 = vld [vmem:[#allocation8 + $0x98] sm:$0xf0]  ;;  %v7726_v23 = vld [vmem:[#allocation8 + $0x10] sm:$0xf]  ;;  %v7736_v36 = vshrl.u32 %v9738_v2, %v7233_v61  ;;  %1851 = vmatpush.bf16.msra.mxu0 %v4979_v34  ;;  %1865 = vmatpush.bf16.msra.mxu1 %v4983_v5 }
 0x144   : > { %9762 = vst [vmem:[#allocation97_spill] sm:$0xff] %v7693_v52  ;;  %v7714_v44 = vmul.u32 %v9767_v49, %v7259_v14  ;;  %v7728_v11 = vld [vmem:[#allocation8 + $0x14] sm:$0xf0]  ;;  %v7730_v21 = vld [vmem:[#allocation8 + $0x14] sm:$0xf]  ;;  %v7741_v49 = vmul.u32 %v9770_v20, %v7312_v4  ;;  %v9772_v0 = vmov %v9770_v20  ;;  %v9775_v4 = vshrl.u32 %v7536_v33, 16 }
 0x145   : > { %9764 = vst [vmem:[#allocation98_spill] sm:$0xff] %v7704_v29  ;;  %v7732_v6 = vld [vmem:[#allocation8 + $0x18] sm:$0xf0]  ;;  %v7746_v52 = vmul.u32 %v9772_v0, %v7363_v55  ;;  %v7750_v14 = vld [vmem:[#allocation8 + $0x80] sm:$0xf]  ;;  %v4971_v0 = vor.u32 %v7676_v10, %v7674_v31  ;;  %v9777_v31 = vand.u32 65535, %v7561_v38  ;;  %1959 = vmatpush.bf16.msra.mxu2 %v5043_v48  ;;  %v5035_v59 = vor.u32 %v7695_v9, %v7684_v16 }
 0x146   : > { %9766 = vst [vmem:[#allocation99_spill] sm:$0xff] %v7709_v63  ;;  %v7752_v28 = vld [vmem:[#allocation8 + $0x84] sm:$0xf0]  ;;  %v7754_v61 = vld [vmem:[#allocation8 + $0x84] sm:$0xf]  ;;  %v7773_v25 = vmul.u32 %v9775_v4, %v7565_v19  ;;  %v7803_v48 = vsel %vm2027_vm1, %v2011_v41, %v7608_v47  ;;  %v7809_v16 = vsel %vm2029_vm11, %v7610_v17, %v7649_v15  ;;  %v5039_v9 = vor.u32 %v7697_v1, %v7699_v7 }
 0x147   : > { %9768 = vst [vmem:[#allocation100_spill] sm:$0xff] %v7714_v44  ;;  %v7764_v20 = vld [vmem:[#allocation8 + $0x88] sm:$0xf0]  ;;  %v7766_v40 = vld [vmem:[#allocation8] sm:$0xf]  ;;  %v7783_v10 = vmul.u32 %v9777_v31, %v7565_v19  ;;  %1973 = vmatpush.bf16.msra.mxu3 %v5047_v45  ;;  %v4963_v47 = vor.u32 %v7720_v26, %v7718_v54  ;;  %v4967_v41 = vor.u32 %v7722_v8, %v7724_v58 }
 0x148   : > { %9769 = vst [vmem:[#allocation101_spill] sm:$0xff] %v7736_v36  ;;  %v7758_v36 = vshrl.u32 %v9738_v2, %v7476_v32  ;;  %v7768_v56 = vld [vmem:[#allocation8 + $0x4] sm:$0xf0]  ;;  %v9776_v32 = vshrl.u32 %v7561_v38, 16  ;;  %v7787_v34 = vld [vmem:[#allocation8 + $0x4] sm:$0xf]  ;;  %v5027_v17 = vor.u32 %v7728_v11, %v7726_v23  ;;  %v5031_v15 = vor.u32 %v7730_v21, %v7732_v6  ;;  %1852 = vmatpush.bf16.msra.mxu0 %v4971_v0 }
 0x149   : > { %9771 = vst [vmem:[#allocation102_spill] sm:$0xff] %v7741_v49  ;;  %v7789_v13 = vld [vmem:[#allocation8 + $0x8] sm:$0xf0]  ;;  %v7791_v4 = vld [vmem:[#allocation8 + $0x170] sm:$0xf]  ;;  %1866 = vmatpush.bf16.msra.mxu1 %v4975_v27  ;;  %v4955_v45 = vor.u32 %v7752_v28, %v7750_v14  ;;  %v4959_v54 = vor.u32 %v7754_v61, %v7764_v20  ;;  %v5019_v26 = vor.u32 %v7768_v56, %v7766_v40 }
 0x14a   : > { %9773 = vst [vmem:[#allocation103_spill] sm:$0xff] %v7746_v52  ;;  %v7778_v5 = vmul.u32 %v9776_v32, %v7548_v22  ;;  %v7793_v33 = vld [vmem:[#allocation8 + $0x174] sm:$0xf0]  ;;  %v9779_v32 = vshll.u32 %v7570_v30, 16  ;;  %v7813_v31 = vld [vmem:[#allocation8 + $0x174] sm:$0xf]  ;;  %1960 = vmatpush.bf16.msra.mxu2 %v5035_v59  ;;  %v1456_v14 = vshll.u32 %v9738_v2, %v7347_v37  ;;  %v1457_v28 = vshrl.u32 %v9734_v50, %v7367_v57 }
 0x14b   : > { %9774 = vst [vmem:[#allocation104_spill] sm:$0xff] %v7758_v36  ;;  %v7815_v12 = vld [vmem:[#allocation8 + $0x178] sm:$0xf0]  ;;  %v7827_v1 = vld [vmem:[#allocation8 + $0x1f4] sm:$0xf0]  ;;  %v1459_v61 = vshll.u32 %v9734_v50, %v7347_v37  ;;  %v1460_v0 = vshrl.u32 %v9735_v42, %v7367_v57  ;;  %v5023_v27 = vor.u32 %v7787_v34, %v7789_v13  ;;  %v5145_v20 = vor.u32 %v7793_v33, %v7791_v4  ;;  %v9780_v52 = vld [vmem:[#allocation68_spill] sm:$0xff] }
 0x14c   : > { %9778 = vst [vmem:[#allocation105_spill] sm:$0xff] %v7783_v10  ;;  %v7798_v55 = vadd.s32 %v9779_v32, %v7578_v24  ;;  %v7817_v24 = vld [vmem:[#allocation8 + $0x1f0] sm:$0xf]  ;;  %v7829_v7 = vld [vmem:[#allocation8 + $0x1f4] sm:$0xf]  ;;  %v1462_v44 = vshll.u32 %v9735_v42, %v7347_v37  ;;  %v1463_v63 = vshrl.u32 %v9753_v3, %v7367_v57  ;;  %1974 = vmatpush.bf16.msra.mxu3 %v5039_v9 }
 0x14d   : > { %v7831_v32 = vld [vmem:[#allocation8 + $0x1f8] sm:$0xf0]  ;;  %v7839_v8 = vld [vmem:[#allocation8 + $0x160] sm:$0xf]  ;;  %v7841_v58 = vld [vmem:[#allocation8 + $0x164] sm:$0xf0]  ;;  %v5149_v39 = vor.u32 %v7813_v31, %v7815_v12  ;;  %v5215_v34 = vor.u32 %v7827_v1, %v7817_v24  ;;  %v1455_v37 = vshrl.u32 %v9738_v2, %v7367_v57  ;;  %1853 = vmatpush.bf16.msra.mxu0 %v4963_v47  ;;  %1867 = vmatpush.bf16.msra.mxu1 %v4967_v41 }
 0x14e   : > { %v7843_v23 = vld [vmem:[#allocation8 + $0x164] sm:$0xf]  ;;  %v7845_v11 = vld [vmem:[#allocation8 + $0x168] sm:$0xf0]  ;;  %v7847_v21 = vld [vmem:[#allocation8 + $0x1e0] sm:$0xf]  ;;  %v5219_v13 = vor.u32 %v7829_v7, %v7831_v32  ;;  %v5137_v12 = vor.u32 %v7841_v58, %v7839_v8  ;;  %v1612_v7 = vshrl.u32 %v9734_v50, %v7424_v43  ;;  %1961 = vmatpush.bf16.msra.mxu2 %v5027_v17  ;;  %v1458_v58 = vor.u32 %v1457_v28, %v1456_v14 }
 0x14f   : > { %v7849_v6 = vld [vmem:[#allocation8 + $0x1e4] sm:$0xf0]  ;;  %v7863_v40 = vld [vmem:[#allocation8 + $0x1e4] sm:$0xf]  ;;  %v7865_v56 = vld [vmem:[#allocation8 + $0x1e8] sm:$0xf0]  ;;  %v5141_v9 = vor.u32 %v7843_v23, %v7845_v11  ;;  %v1461_v23 = vor.u32 %v1460_v0, %v1459_v61  ;;  %v1464_v49 = vor.u32 %v1463_v63, %v1462_v44  ;;  %v1614_v14 = vshll.u32 %v9734_v50, %v9780_v52 }
 0x150   : > { %v7867_v59 = vld [vmem:[#allocation8 + $0x150] sm:$0xf]  ;;  %v7879_v4 = vld [vmem:[#allocation8 + $0x154] sm:$0xf0]  ;;  %v7881_v33 = vld [vmem:[#allocation8 + $0x154] sm:$0xf]  ;;  %v5207_v57 = vor.u32 %v7849_v6, %v7847_v21  ;;  %v1611_v21 = vshll.u32 %v9738_v2, %v9780_v52  ;;  %1975 = vmatpush.bf16.msra.mxu3 %v5031_v15  ;;  %v1615_v28 = vshrl.u32 %v9735_v42, %v7424_v43 }
 0x151   : > { %v7883_v29 = vld [vmem:[#allocation8 + $0x158] sm:$0xf0]  ;;  %v7891_v31 = vld [vmem:[#allocation8 + $0x1d0] sm:$0xf]  ;;  %v7893_v24 = vld [vmem:[#allocation8 + $0x1d4] sm:$0xf0]  ;;  %1854 = vmatpush.bf16.msra.mxu0 %v4955_v45  ;;  %1868 = vmatpush.bf16.msra.mxu1 %v4959_v54 }
 0x152   : > { %v7895_v1 = vld [vmem:[#allocation8 + $0x1d4] sm:$0xf]  ;;  %v7903_v41 = vld [vmem:[#allocation8 + $0x1d8] sm:$0xf0]  ;;  %v7905_v32 = vld [vmem:[#allocation8 + $0x140] sm:$0xf]  ;;  %v7927_v15 = vor.u32 %v1612_v7, %v1611_v21  ;;  %1962 = vmatpush.bf16.msra.mxu2 %v5019_v26 }
 0x153   : > { %v7907_v8 = vld [vmem:[#allocation8 + $0x144] sm:$0xf0]  ;;  %v9781_v47 = vld [vmem:[#allocation42_spill] sm:$0xff]  ;;  %v1476_v45 = vsel %vm1474_vm15, %v1464_v49, 2102212464  ;;  %v9783_v7 = vld [vmem:[#allocation73_spill] sm:$0xff] }
 0x154   : > { %v9610_v30 = vand.u32 2147483647, %v9781_v47  ;;  %v9782_v6 = vld [vmem:[#allocation66_spill] sm:$0xff]  ;;  %1976 = vmatpush.bf16.msra.mxu3 %v5023_v27  ;;  %v5122_v61 = vld [vmem:[#allocation8 + $0x148] sm:$0xf0]  ;;  %v9786_v17 = vld [vmem:[#allocation69_spill] sm:$0xff] }
 0x155   : > { %2403 = vmatpush.bf16.msrb.mxu0 %v5145_v20  ;;  %vm1471_vm3 = vcmp.lt.s32.totalorder %v9782_v6, 1  ;;  %vm1472_vm4 = vcmp.lt.s32.totalorder %v9782_v6, 2  ;;  %vm1473_vm5 = vcmp.lt.s32.totalorder %v9782_v6, 3  ;;  %2417 = vmatpush.bf16.msrb.mxu1 %v5149_v39  ;;  %v9784_v20 = vld [vmem:[#allocation52_spill] sm:$0xff]  ;;  %v9785_v63 = vld [vmem:[#allocation74_spill] sm:$0xff] }
 0x156   : > { %v1446_v0 = vand.u32 8388607, %v9610_v30  ;;  %2855 = vmatpush.bf16.msrb.mxu2 %v5215_v34  ;;  %v1479_v54 = vsel %vm1471_vm3, %v1458_v58, %v1461_v23  ;;  %v1481_v26 = vsel %vm1473_vm5, %v1464_v49, %v9783_v7  ;;  %v5978_v30 = vld [vmem:[#allocation8 + $0x144] sm:$0xf]  ;;  %v1483_v34 = vsel %vm1471_vm3, %v1461_v23, %v1464_v49  ;;  %v5190_v36 = vld [vmem:[#allocation8 + $0x1c0] sm:$0xf] }
 0x157   : > { %v1482_v39 = vsel %vm1472_vm4, %v1479_v54, %v1481_v26  ;;  %v1485_v11 = vsel %vm1473_vm5, %v9786_v17, %v9785_v63  ;;  %v5995_v7 = vld [vmem:[#allocation8 + $0x1c4] sm:$0xf0]  ;;  %v5994_v10 = vld [vmem:[#allocation8 + $0x1c4] sm:$0xf]  ;;  %v1475_v27 = vsel %vm1471_vm3, %v1455_v37, %v1458_v58  ;;  %v1617_v54 = vshll.u32 %v9735_v42, %v9780_v52  ;;  %v5192_v26 = vld [vmem:[#allocation8 + $0x1c8] sm:$0xf0] }
 0x158   : > { %v1447_v44 = vor.u32 8388608, %v1446_v0  ;;  %2869 = vmatpush.bf16.msrb.mxu3 %v5219_v13  ;;  %v1486_v0 = vsel %vm1472_vm4, %v1483_v34, %v1485_v11  ;;  %v1618_v49 = vshrl.u32 %v9753_v3, %v7424_v43  ;;  %v1477_v13 = vsel %vm1473_vm5, %v1461_v23, %v1476_v45 }
 0x159   : > { %2404 = vmatpush.bf16.msrb.mxu0 %v5137_v12  ;;  %v1490_v63 = vand.u32 65535, %v1486_v0  ;;  %v1491_v21 = vshrl.u32 %v1486_v0, 16  ;;  %2418 = vmatpush.bf16.msrb.mxu1 %v5141_v9  ;;  %v1512_v37 = vand.u32 65535, %v1482_v39  ;;  %v1513_v58 = vshrl.u32 %v1482_v39, 16 }
 0x15a   : > { %v7960_v17 = vshll.u32 %v1447_v44, 8  ;;  %2856 = vmatpush.bf16.msrb.mxu2 %v5207_v57  ;;  %v9787_v11 = vand.u32 2147483647, %v9784_v20  ;;  %v7964_v52 = vor.u32 %v1615_v28, %v1614_v14  ;;  %v5125_v18 = vor.u32 %v5978_v30, %v5122_v61  ;;  %v9790_v28 = vld [vmem:[#allocation70_spill] sm:$0xff] }
 0x15b   : > { %v5191_v19 = vor.u32 %v5995_v7, %v5190_v36  ;;  %v9788_v23 = vor.u32 %v7863_v40, %v7865_v56  ;;  %v5195_v44 = vor.u32 %v5994_v10, %v5192_v26  ;;  %v7973_v9 = vsel %vm1472_vm4, %v1475_v27, %v1477_v13 }
 0x15c   : > { %v1601_v34 = vand.u32 8388607, %v9787_v11  ;;  %v1488_v12 = vand.u32 65535, %v7960_v17  ;;  %v1489_v38 = vshrl.u32 %v7960_v17, 16  ;;  %v7975_v45 = vor.u32 %v1618_v49, %v1617_v54 }
 0x15d   : > { %2870 = vmatpush.bf16.msrb.mxu3 %v9788_v23  ;;  %v9789_v30 = vor.u32 %v7879_v4, %v7867_v59  ;;  %vm1626_vm9 = vcmp.lt.s32.totalorder %v9790_v28, 1  ;;  %vm1627_vm15 = vcmp.lt.s32.totalorder %v9790_v28, 2  ;;  %v9791_v10 = vor.u32 %v7881_v33, %v7883_v29 }
 0x15e   : > { %v1602_v57 = vor.u32 8388608, %v1601_v34  ;;  %v1493_v36 = vmul.u32 %v1491_v21, %v1488_v12  ;;  %v1494_v14 = vmul.u32 %v1490_v63, %v1489_v38  ;;  %v9792_v40 = vor.u32 %v7893_v24, %v7891_v31 }
 0x15f   : > { %2405 = vmatpush.bf16.msrb.mxu0 %v9789_v30  ;;  %2419 = vmatpush.bf16.msrb.mxu1 %v9791_v10  ;;  %v1515_v56 = vmul.u32 %v1513_v58, %v1488_v12  ;;  %v1516_v6 = vmul.u32 %v1512_v37, %v1489_v38  ;;  %vm1628_vm1 = vcmp.lt.s32.totalorder %v9790_v28, 3  ;;  %v1634_v59 = vsel %vm1626_vm9, %v7927_v15, %v7964_v52 }
 0x160   : > { %2857 = vmatpush.bf16.msrb.mxu2 %v9792_v40  ;;  %v1492_v4 = vmul.u32 %v1490_v63, %v1488_v12  ;;  %v1495_v61 = vmul.u32 %v1491_v21, %v1489_v38  ;;  %v1496_v39 = vshll.u32 %v1493_v36, 16  ;;  %v1514_v7 = vmul.u32 %v1512_v37, %v1488_v12  ;;  %v9795_v37 = vld [vmem:[#allocation82_spill] sm:$0xff] }
 0x161   : > { %v9793_v29 = vor.u32 %v7895_v1, %v7903_v41  ;;  %v1497_v33 = vshrl.u32 %v1493_v36, 16  ;;  %v1498_v31 = vshll.u32 %v1494_v14, 16  ;;  %v1518_v24 = vshll.u32 %v1515_v56, 16 }
 0x162   : > { %v7996_v27 = vshll.u32 %v1602_v57, 8  ;;  %v9794_v0 = vor.u32 %v7907_v8, %v7905_v32  ;;  %v1499_v54 = vshrl.u32 %v1494_v14, 16  ;;  %vm1500_vm11 = vc.u32 %v1492_v4, %v1496_v39  ;;  %v9796_v57 = vld [vmem:[#allocation83_spill] sm:$0xff] }
 0x163   : > { %2871 = vmatpush.bf16.msrb.mxu3 %v9793_v29  ;;  %v1502_v49 = vadd.s32 %v1496_v39, %v1492_v4  ;;  %v1517_v26 = vmul.u32 %v1513_v58, %v1489_v38  ;;  %2420 = vmatpush.bf16.msrb.mxu1 %v5125_v18  ;;  %v1501_v21 = vsel %vm1500_vm11, 1, %v9758_v51  ;;  %v1520_v13 = vshll.u32 %v1516_v6, 16 }
 0x164   : > { %2406 = vmatpush.bf16.msrb.mxu0 %v9794_v0  ;;  %2858 = vmatpush.bf16.msrb.mxu2 %v5191_v19  ;;  %vm1522_vm14 = vc.u32 %v1514_v7, %v1518_v24  ;;  %v1524_v1 = vadd.s32 %v1518_v24, %v1514_v7  ;;  %v1503_v41 = vadd.s32 %v1501_v21, %v1495_v61  ;;  %v1519_v38 = vshrl.u32 %v1515_v56, 16 }
 0x165   : > { %vm1504_vm3 = vc.u32 %v1502_v49, %v1498_v31  ;;  %v1523_v63 = vsel %vm1522_vm14, 1, %v9758_v51  ;;  %v1636_v32 = vsel %vm1628_vm1, %v7975_v45, %v9795_v37  ;;  %v1638_v34 = vsel %vm1626_vm9, %v7964_v52, %v7975_v45 }
 0x166   : > { %v1505_v8 = vsel %vm1504_vm3, 1, %v9758_v51  ;;  %v1525_v18 = vadd.s32 %v1523_v63, %v1517_v26  ;;  %vm1526_vm4 = vc.u32 %v1524_v1, %v1520_v13  ;;  %v1637_v11 = vsel %vm1627_vm15, %v1634_v59, %v1636_v32 }
 0x167   : > { %2872 = vmatpush.bf16.msrb.mxu3 %v5195_v44  ;;  %v1507_v19 = vadd.s32 %v1505_v8, %v1503_v41  ;;  %v1527_v58 = vsel %vm1526_vm4, 1, %v9758_v51  ;;  %v1521_v12 = vshrl.u32 %v1516_v6, 16  ;;  %v9797_v44 = vld [vmem:[#allocation79_spill] sm:$0xff]  ;;  %v1643_v36 = vand.u32 65535, %v7996_v27 }
 0x168   : > { %v1529_v23 = vadd.s32 %v1527_v58, %v1525_v18  ;;  %v1640_v30 = vsel %vm1628_vm1, %v9797_v44, %v9796_v57  ;;  %v1667_v40 = vand.u32 65535, %v1637_v11  ;;  %v1668_v56 = vshrl.u32 %v1637_v11, 16 }
 0x169   : > { %v1508_v14 = vadd.s32 %v1507_v19, %v1497_v33  ;;  %v1641_v10 = vsel %vm1627_vm15, %v1638_v34, %v1640_v30  ;;  %v1644_v4 = vshrl.u32 %v7996_v27, 16  ;;  %v9798_v6 = vand.u32 65535, %v7657_v60 }
 0x16a   : > { %v1530_v59 = vadd.s32 %v1529_v23, %v1519_v38  ;;  %v1645_v61 = vand.u32 65535, %v1641_v10  ;;  %v1646_v39 = vshrl.u32 %v1641_v10, 16  ;;  %v8030_v31 = vadd.s32 %v1524_v1, %v1520_v13 }
 0x16b   : > { %v8026_v7 = vmul.u32 %v9798_v6, %v7645_v62  ;;  %v8028_v29 = vadd.s32 %v1508_v14, %v1499_v54  ;;  %v1670_v33 = vmul.u32 %v1668_v56, %v1643_v36  ;;  %v1671_v26 = vmul.u32 %v1667_v40, %v1644_v4 }
 0x16c   : > { %v1531_v24 = vadd.s32 %v1530_v59, %v1521_v12  ;;  %v1648_v0 = vmul.u32 %v1646_v39, %v1643_v36  ;;  %v1649_v49 = vmul.u32 %v1645_v61, %v1644_v4  ;;  %v1532_v21 = vmul.u32 %v7960_v17, %v7973_v9  ;;  %v9799_v59 = vld [vmem:[#allocation49_spill] sm:$0xff] }
 0x16d   : > { %vm1534_vm5 = vc.u32 %v8028_v29, %v8030_v31  ;;  %v1610_v41 = vshrl.u32 %v9738_v2, %v7424_v43  ;;  %v1631_v54 = vsel %vm1629_vm2, %v7975_v45, 2102212464  ;;  %v1647_v1 = vmul.u32 %v1645_v61, %v1643_v36 }
 0x16e   : > { %v1535_v13 = vadd.s32 1, %v1531_v24  ;;  %v1651_v63 = vshll.u32 %v1648_v0, 16  ;;  %v1669_v37 = vmul.u32 %v1667_v40, %v1643_v36  ;;  %v1650_v32 = vmul.u32 %v1646_v39, %v1644_v4 }
 0x16f   : > { %v1653_v8 = vshll.u32 %v1649_v49, 16  ;;  %v1672_v38 = vmul.u32 %v1668_v56, %v1644_v4  ;;  %v1673_v18 = vshll.u32 %v1670_v33, 16  ;;  %v1675_v9 = vshll.u32 %v1671_v26, 16 }
 0x170   : > { %v1536_v19 = vsel %vm1534_vm5, %v1535_v13, %v1531_v24  ;;  %vm1655_vm11 = vc.u32 %v1647_v1, %v1651_v63  ;;  %v1657_v17 = vadd.s32 %v1651_v63, %v1647_v1  ;;  %v1630_v45 = vsel %vm1626_vm9, %v1610_v41, %v7927_v15 }
 0x171   : > { %v1537_v58 = vadd.s32 %v1536_v19, %v1532_v21  ;;  %v1656_v11 = vsel %vm1655_vm11, 1, %v9758_v51  ;;  %vm1677_vm14 = vc.u32 %v1669_v37, %v1673_v18  ;;  %v1679_v43 = vadd.s32 %v1673_v18, %v1669_v37  ;;  %v9803_v18 = vld [vmem:[#allocation65_spill] sm:$0xff] }
 0x172   : > { %v1658_v34 = vadd.s32 %v1656_v11, %v1650_v32  ;;  %vm1659_vm2 = vc.u32 %v1657_v17, %v1653_v8  ;;  %v1678_v12 = vsel %vm1677_vm14, 1, %v9758_v51  ;;  %v1632_v30 = vsel %vm1628_vm1, %v7964_v52, %v1631_v54 }
 0x173   : > { %v1538_v23 = vadd.s32 536870912, %v1537_v58  ;;  %v1660_v57 = vsel %vm1659_vm2, 1, %v9758_v51  ;;  %v1680_v44 = vadd.s32 %v1678_v12, %v1672_v38  ;;  %vm1681_vm3 = vc.u32 %v1679_v43, %v1675_v9 }
 0x174   : > { %v1652_v36 = vshrl.u32 %v1648_v0, 16  ;;  %v1662_v14 = vadd.s32 %v1660_v57, %v1658_v34  ;;  %v1682_v10 = vsel %vm1681_vm3, 1, %v9758_v51  ;;  %v1674_v15 = vshrl.u32 %v1670_v33, 16 }
 0x175   : > { %v8051_v40 = vshrl.u32 %v1538_v23, 30  ;;  %v1684_v56 = vadd.s32 %v1682_v10, %v1680_v44  ;;  %v9616_v4 = vand.u32 2147483647, %v9799_v59  ;;  %v9800_v61 = vshrl.u32 %v7657_v60, 16 }
 0x176   : > { %v8062_v24 = vmul.u32 %v9798_v6, %v7671_v53  ;;  %v1654_v52 = vshrl.u32 %v1649_v49, 16  ;;  %v1663_v0 = vadd.s32 %v1662_v14, %v1652_v36  ;;  %v1676_v54 = vshrl.u32 %v1671_v26, 16 }
 0x177   : > { %v8057_v39 = vmul.u32 %v9800_v61, %v7645_v62  ;;  %v9801_v21 = vmov %v9800_v61  ;;  %v1540_v33 = vshll.u32 %v8051_v40, 30  ;;  %v1685_v13 = vadd.s32 %v1684_v56, %v1674_v15  ;;  %v9807_v61 = vld [vmem:[#allocation67_spill] sm:$0xff] }
 0x178   : > { %v8067_v41 = vmul.u32 %v9801_v21, %v7671_v53  ;;  %v9802_v1 = vand.u32 65535, %v7653_v46  ;;  %v1633_v37 = vsel %vm1627_vm15, %v1630_v45, %v1632_v30  ;;  %v8077_v32 = vadd.s32 %v1663_v0, %v1654_v52  ;;  %v9806_v45 = vld [vmem:[#allocation63_spill] sm:$0xff]  ;;  %v9809_v21 = vld [vmem:[#allocation77_spill] sm:$0xff] }
 0x179   : > { %v8079_v49 = vadd.s32 %v1679_v43, %v1675_v9  ;;  %v1541_v8 = vsub.s32 %v1537_v58, %v1540_v33  ;;  %v1686_v60 = vadd.s32 %v1685_v13, %v1676_v54  ;;  %v1107_v38 = vand.u32 8388607, %v9616_v4  ;;  %v9810_v33 = vld [vmem:[#allocation72_spill] sm:$0xff] }
 0x17a   : > { %v8073_v63 = vmul.u32 %v9802_v1, %v7645_v62  ;;  %v1121_v26 = vshrl.u32 %v9735_v42, %v9803_v18  ;;  %v9804_v19 = vshrl.u32 %v7653_v46, 16  ;;  %v9805_v28 = vmov %v9802_v1 }
 0x17b   : > { %v8093_v11 = vmul.u32 %v9805_v28, %v7671_v53  ;;  %vm1689_vm9 = vc.u32 %v8077_v32, %v8079_v49  ;;  %v1118_v9 = vshrl.u32 %v9734_v50, %v9803_v18  ;;  %vm1542_vm15 = vcmp.lt.s32.totalorder %v1541_v8, 0 }
 0x17c   : > { %v8088_v17 = vmul.u32 %v9804_v19, %v7645_v62  ;;  %v1543_v58 = vsub.s32 0, %v1541_v8  ;;  %v1690_v43 = vadd.s32 1, %v1686_v60  ;;  %v1120_v34 = vshll.u32 %v9734_v50, %v9806_v45 }
 0x17d   : > { %v1687_v62 = vmul.u32 %v7996_v27, %v1633_v37  ;;  %v1117_v12 = vshll.u32 %v9738_v2, %v9806_v45  ;;  %v1123_v23 = vshll.u32 %v9735_v42, %v9806_v45  ;;  %v1124_v57 = vshrl.u32 %v9753_v3, %v9803_v18 }
 0x17e   : > { %v1544_v44 = vsel %vm1542_vm15, %v1543_v58, %v1541_v8  ;;  %v1691_v30 = vsel %vm1689_vm9, %v1690_v43, %v1686_v60  ;;  %v1108_v36 = vor.u32 8388608, %v1107_v38  ;;  %v8108_v14 = vor.u32 %v1121_v26, %v1120_v34 }
 0x17f   : > { %v1545_v10 = vclz %v1544_v44  ;;  %v1692_v15 = vadd.s32 %v1691_v30, %v1687_v62  ;;  %v1125_v56 = vor.u32 %v1124_v57, %v1123_v23  ;;  %vm1134_vm1 = vcmp.lt.s32.totalorder %v9807_v61, 3 }
 0x180   : > { %v2052_v27 = vshll.u32 %v8057_v39, 16  ;;  %v9808_v6 = vmov %v9804_v19  ;;  %v8117_v0 = vor.u32 %v1118_v9, %v1117_v12  ;;  %v1146_v54 = vsel %vm1134_vm1, %v9810_v33, %v9809_v21  ;;  %v9811_v9 = vld [vmem:[#allocation76_spill] sm:$0xff] }
 0x181   : > { %v8115_v52 = vmul.u32 %v9808_v6, %v7671_v53  ;;  %vm1441_vm4 = vcmp.lt.s32.totalorder %v9781_v47, 0  ;;  %v4947_v13 = vadd.s32 4294967294, %v1545_v10  ;;  %v1693_v1 = vadd.s32 536870912, %v1692_v15 }
 0x182   : > { %vm1132_vm5 = vcmp.lt.s32.totalorder %v9807_v61, 1  ;;  %v1563_v37 = vsub.s32 4, %v8051_v40  ;;  %vm1133_vm11 = vcmp.lt.s32.totalorder %v9807_v61, 2  ;;  %v8130_v53 = vshll.u32 %v1108_v36, 8 }
 0x183   : > { %v1144_v46 = vsel %vm1132_vm5, %v8108_v14, %v1125_v56  ;;  %v1533_v60 = vadd.s32 %v8030_v31, %v8028_v29  ;;  %vm4948_vm14 = vcmp.lt.s32.totalorder %v4947_v13, 0  ;;  %v8134_v38 = vshrl.u32 %v1693_v1, 30 }
 0x184   : > { %v1147_v26 = vsel %vm1133_vm11, %v1144_v46, %v1146_v54  ;;  %v1548_v19 = vsel %vm4948_vm14, 0, %v4947_v13  ;;  %v1140_v28 = vsel %vm1132_vm5, %v8117_v0, %v8108_v14  ;;  %v1142_v58 = vsel %vm1134_vm1, %v1125_v56, %v9811_v9 }
 0x185   : > { %v1151_v43 = vand.u32 65535, %v1147_v26  ;;  %v1549_v45 = vsub.s32 32, %v1548_v19  ;;  %v1553_v34 = vsub.s32 4294967266, %v1548_v19  ;;  %v1695_v29 = vshll.u32 %v8134_v38, 30 }
 0x186   : > { %v1150_v31 = vshrl.u32 %v8130_v53, 16  ;;  %v1550_v62 = vshll.u32 %v1541_v8, %v1548_v19  ;;  %v1564_v12 = vsel %vm1441_vm4, %v1563_v37, %v8051_v40  ;;  %v1149_v23 = vand.u32 65535, %v8130_v53 }
 0x187   : > { %v1152_v57 = vshrl.u32 %v1147_v26, 16  ;;  %v1551_v44 = vshrl.u32 %v1533_v60, %v1549_v45  ;;  %v1554_v30 = vadd.s32 127, %v1553_v34  ;;  %v1696_v36 = vsub.s32 %v1692_v15, %v1695_v29 }
 0x188   : > { %v8151_v10 = vmul.u32 %v1151_v43, %v1150_v31  ;;  %v9812_v6 = vand.u32 2147483647, %v9781_v47  ;;  %v1116_v8 = vshrl.u32 %v9738_v2, %v9803_v18  ;;  %v1143_v40 = vsel %vm1133_vm11, %v1140_v28, %v1142_v58 }
 0x189   : > { %v1154_v33 = vmul.u32 %v1152_v57, %v1149_v23  ;;  %v1552_v54 = vor.u32 %v1551_v44, %v1550_v62  ;;  %v1555_v13 = vshll.u32 %v1554_v30, 23  ;;  %vm1697_vm3 = vcmp.lt.s32.totalorder %v1696_v36, 0 }
 0x18a   : > { %vm8155_vm2 = vcmp.le.f32.partialorder %v9812_v6, 0.7853982  ;;  %v1698_v1 = vsub.s32 0, %v1696_v36  ;;  %v1137_v37 = vsel %vm1135_vm0, %v1125_v56, 2102212464  ;;  %v1153_v46 = vmul.u32 %v1151_v43, %v1149_v23 }
 0x18b   : > { %v1566_v15 = vsel %vm8155_vm2, 0, %v1564_v12  ;;  %v1157_v60 = vshll.u32 %v1154_v33, 16  ;;  %v1556_v26 = vor.u32 4788187, %v1555_v13  ;;  %v1156_v9 = vmul.u32 %v1152_v57, %v1150_v31 }
 0x18c   : > { %v1699_v19 = vsel %vm1697_vm3, %v1698_v1, %v1696_v36  ;;  %v1159_v18 = vshll.u32 %v8151_v10, 16  ;;  %v1174_v58 = vshrl.u32 %v1143_v40, 16  ;;  %v1559_v29 = vcvt.s32.f32 %v1552_v54 }
 0x18d   : > { %v1700_v45 = vclz %v1699_v19  ;;  %vm1161_vm9 = vc.u32 %v1153_v46, %v1157_v60  ;;  %v1163_v28 = vadd.s32 %v1157_v60, %v1153_v46  ;;  %v1557_v34 = vand.u32 2147483647, %v1556_v26 }
 0x18e   : > { %v1162_v62 = vsel %vm1161_vm9, 1, %v9758_v51  ;;  %v1173_v44 = vand.u32 65535, %v1143_v40  ;;  %vm1596_vm15 = vcmp.lt.s32.totalorder %v9784_v20, 0  ;;  %v1176_v43 = vmul.u32 %v1174_v58, %v1149_v23 }
 0x18f   : > { %v4950_v12 = vadd.s32 4294967294, %v1700_v45  ;;  %v1164_v56 = vadd.s32 %v1162_v62, %v1156_v9  ;;  %vm1165_vm0 = vc.u32 %v1163_v28, %v1159_v18  ;;  %v1560_v30 = vmul.f32 %v1559_v29, %v1557_v34 }
 0x190   : > { %v1583_v6 = vadd.s32 3, %v1566_v15  ;;  %v1688_v57 = vadd.s32 %v8079_v49, %v8077_v32  ;;  %v1136_v13 = vsel %vm1132_vm5, %v1116_v8, %v8117_v0  ;;  %v1718_v54 = vsub.s32 4, %v8134_v38 }
 0x191   : > { %vm4951_vm14 = vcmp.lt.s32.totalorder %v4950_v12, 0  ;;  %v1138_v40 = vsel %vm1134_vm1, %v8108_v14, %v1137_v37  ;;  %v1166_v1 = vsel %vm1165_vm0, 1, %v9758_v51  ;;  %v1561_v46 = vxor.u32 2147483648, %v1560_v30 }
 0x192   : > { %v9815_v60 = vand.u32 2147483647, %v9784_v20  ;;  %v1703_v32 = vsel %vm4951_vm14, 0, %v4950_v12  ;;  %v1177_v49 = vmul.u32 %v1173_v44, %v1150_v31  ;;  %v1179_v26 = vshll.u32 %v1176_v43, 16 }
 0x193   : > { %v1704_v0 = vsub.s32 32, %v1703_v32  ;;  %v1708_v8 = vsub.s32 4294967266, %v1703_v32  ;;  %v1168_v19 = vadd.s32 %v1166_v1, %v1164_v56  ;;  %v1175_v9 = vmul.u32 %v1173_v44, %v1149_v23 }
 0x194   : > { %vm8182_vm3 = vcmp.le.f32.partialorder %v9815_v60, 0.7853982  ;;  %v1562_v18 = vsel %vm1441_vm4, %v1561_v46, %v1560_v30  ;;  %v1705_v14 = vshll.u32 %v1696_v36, %v1703_v32  ;;  %v1158_v37 = vshrl.u32 %v1154_v33, 16 }
 0x195   : > { %v1178_v45 = vmul.u32 %v1174_v58, %v1150_v31  ;;  %v1565_v28 = vsel %vm8155_vm2, %v9781_v47, %v1562_v18  ;;  %v1706_v34 = vshrl.u32 %v1688_v57, %v1704_v0  ;;  %v1709_v29 = vadd.s32 127, %v1708_v8 }
 0x196   : > { %vm1183_vm1 = vc.u32 %v1175_v9, %v1179_v26  ;;  %v1567_v62 = vmul.f32 %v1565_v28, %v1565_v28  ;;  %v1181_v12 = vshll.u32 %v1177_v49, 16  ;;  %v1185_v4 = vadd.s32 %v1179_v26, %v1175_v9 }
 0x197   : > { %v1184_v60 = vsel %vm1183_vm1, 1, %v9758_v51  ;;  %v1707_v56 = vor.u32 %v1706_v34, %v1705_v14  ;;  %v1710_v23 = vshll.u32 %v1709_v29, 23  ;;  %v1169_v44 = vadd.s32 %v1168_v19, %v1158_v37 }
 0x198   : > { %v1186_v1 = vadd.s32 %v1184_v60, %v1178_v45  ;;  %v1568_v30 = vmul.f32 -0.001358992, %v1567_v62  ;;  %v1575_v36 = vmul.f32 -0.00019511016, %v1567_v62  ;;  %v1719_v31 = vsel %vm1596_vm15, %v1718_v54, %v8134_v38 }
 0x199   : > { %vm1187_vm4 = vc.u32 %v1185_v4, %v1181_v12  ;;  %v1711_v21 = vor.u32 4788187, %v1710_v23  ;;  %v1139_v33 = vsel %vm1133_vm11, %v1136_v13, %v1138_v40  ;;  %v1160_v58 = vshrl.u32 %v8151_v10, 16 }
 0x19a   : > { %v1188_v57 = vsel %vm1187_vm4, 1, %v9758_v51  ;;  %v1569_v46 = vadd.f32 0.041655596, %v1568_v30  ;;  %v1576_v32 = vadd.f32 0.008332121, %v1575_v36  ;;  %v1180_v26 = vshrl.u32 %v1176_v43, 16 }
 0x19b   : > { %v1190_v0 = vadd.s32 %v1188_v57, %v1186_v1  ;;  %v1712_v8 = vand.u32 2147483647, %v1711_v21  ;;  %v1714_v19 = vcvt.s32.f32 %v1707_v56  ;;  %v1721_v9 = vsel %vm8182_vm3, 0, %v1719_v31  ;;  %v9820_v56 = vld [vmem:[#allocation55_spill] sm:$0xff] }
 0x19c   : > { %v8201_v18 = vadd.s32 %v1169_v44, %v1160_v58  ;;  %v1570_v38 = vmul.f32 %v1569_v46, %v1567_v62  ;;  %v1577_v54 = vmul.f32 %v1576_v32, %v1567_v62  ;;  %v1182_v14 = vshrl.u32 %v1177_v49, 16  ;;  %v9822_v31 = vld [vmem:[#allocation71_spill] sm:$0xff] }
 0x19d   : > { %v1191_v61 = vadd.s32 %v1190_v0, %v1180_v26  ;;  %vm8206_vm5 = vc.u32 %v8026_v7, %v2052_v27  ;;  %v8210_v43 = vand.u32 3, %v1583_v6  ;;  %v1715_v13 = vmul.f32 %v1714_v19, %v1712_v8  ;;  %v9821_v6 = vld [vmem:[#allocation75_spill] sm:$0xff] }
 0x19e   : > { %v8212_v40 = vadd.s32 %v1185_v4, %v1181_v12  ;;  %v1571_v37 = vadd.f32 -0.4999988, %v1570_v38  ;;  %v1578_v45 = vadd.f32 -0.16666654, %v1577_v54  ;;  %v1738_v34 = vadd.s32 3, %v1721_v9 }
 0x19f   : > { %v1192_v29 = vadd.s32 %v1191_v61, %v1182_v14  ;;  %v1716_v60 = vxor.u32 2147483648, %v1715_v13  ;;  %v1193_v49 = vmul.u32 %v8130_v53, %v1139_v33  ;;  %v1255_v23 = vand.u32 2147483647, %v9820_v56 }
 0x1a0   : > { %vm1195_vm11 = vc.u32 %v8201_v18, %v8212_v40  ;;  %v1572_v44 = vmul.f32 %v1571_v37, %v1567_v62  ;;  %v1579_v1 = vmul.f32 %v1578_v45, %v1567_v62  ;;  %v1276_v36 = vshrl.u32 %v9735_v42, %v9821_v6  ;;  %v9823_v45 = vld [vmem:[#allocation78_spill] sm:$0xff] }
 0x1a1   : > { %v1196_v30 = vadd.s32 1, %v1192_v29  ;;  %v1717_v4 = vsel %vm1596_vm15, %v1716_v60, %v1715_v13  ;;  %v1273_v12 = vshrl.u32 %v9734_v50, %v9821_v6  ;;  %v1275_v53 = vshll.u32 %v9734_v50, %v9822_v31 }
 0x1a2   : > { %v1279_v21 = vshrl.u32 %v9753_v3, %v9821_v6  ;;  %v1580_v33 = vadd.f32 1.0, %v1579_v1  ;;  %v8231_v62 = vsel %vm8182_vm3, %v9784_v20, %v1717_v4  ;;  %v1278_v57 = vshll.u32 %v9735_v42, %v9822_v31  ;;  %v9825_v4 = vld [vmem:[#allocation86_spill] sm:$0xff] }
 0x1a3   : > { %v1197_v58 = vsel %vm1195_vm11, %v1196_v30, %v1192_v29  ;;  %v1722_v46 = vmul.f32 %v8231_v62, %v8231_v62  ;;  %v1262_v50 = vand.u32 8388607, %v1255_v23  ;;  %v1272_v3 = vshll.u32 %v9738_v2, %v9822_v31 }
 0x1a4   : > { %v1198_v32 = vadd.s32 %v1197_v58, %v1193_v49  ;;  %v1573_v26 = vadd.f32 1.0, %v1572_v44  ;;  %v1581_v0 = vmul.f32 %v1580_v33, %v1565_v28  ;;  %v8241_v8 = vor.u32 %v1276_v36, %v1275_v53  ;;  %v9824_v36 = vld [vmem:[#allocation88_spill] sm:$0xff]  ;;  %v9826_v58 = vld [vmem:[#allocation87_spill] sm:$0xff] }
 0x1a5   : > { %v1280_v15 = vor.u32 %v1279_v21, %v1278_v57  ;;  %v8246_v19 = vsel %vm8206_vm5, 1, %v9758_v51  ;;  %v1723_v42 = vmul.f32 -0.001358992, %v1722_v46  ;;  %v1730_v9 = vmul.f32 -0.00019511016, %v1722_v46 }
 0x1a6   : > { %v1199_v38 = vadd.s32 536870912, %v1198_v32  ;;  %vm1585_vm2 = vcmp.lt.s32.totalorder %v8210_v43, 2  ;;  %vm1586_vm9 = vcmp.eq.s32.totalorder %v8210_v43, 0  ;;  %v1587_v54 = vxor.u32 2147483648, %v1581_v0 }
 0x1a7   : > { %v8250_v14 = vand.u32 3, %v1738_v34  ;;  %v1274_v61 = vor.u32 %v1273_v12, %v1272_v3  ;;  %v1724_v28 = vadd.f32 0.041655596, %v1723_v42  ;;  %v1731_v13 = vadd.f32 0.008332121, %v1730_v9 }
 0x1a8   : > { %v8252_v37 = vshrl.u32 %v1199_v38, 30  ;;  %vm1287_vm15 = vcmp.lt.s32.totalorder %v9823_v45, 1  ;;  %vm1589_vm0 = vcmp.eq.s32.totalorder %v8210_v43, 2  ;;  %v1590_v10 = vxor.u32 2147483648, %v1573_v26 }
 0x1a9   : > { %v1263_v29 = vor.u32 8388608, %v1262_v50  ;;  %v1299_v60 = vsel %vm1287_vm15, %v8241_v8, %v1280_v15  ;;  %v1725_v49 = vmul.f32 %v1724_v28, %v1722_v46  ;;  %v1732_v44 = vmul.f32 %v1731_v13, %v1722_v46 }
 0x1aa   : > { %v1201_v34 = vshll.u32 %v8252_v37, 30  ;;  %vm1289_vm14 = vcmp.lt.s32.totalorder %v9823_v45, 3  ;;  %vm1582_vm3 = vweird.f32 %v9781_v47  ;;  %v1588_v1 = vsel %vm1586_vm9, %v1573_v26, %v1587_v54 }
 0x1ab   : > { %vm1288_vm1 = vcmp.lt.s32.totalorder %v9823_v45, 2  ;;  %v1295_v30 = vsel %vm1287_vm15, %v1274_v61, %v8241_v8  ;;  %v1301_v12 = vsel %vm1289_vm14, %v9825_v4, %v9824_v36  ;;  %v1726_v31 = vadd.f32 -0.4999988, %v1725_v49 }
 0x1ac   : > { %v1733_v53 = vadd.f32 -0.16666654, %v1732_v44  ;;  %vm1744_vm4 = vcmp.eq.s32.totalorder %v8250_v14, 2  ;;  %v8273_v21 = vsub.s32 %v1198_v32, %v1201_v34  ;;  %v1302_v33 = vsel %vm1288_vm1, %v1299_v60, %v1301_v12 }
 0x1ad   : > { %vm1741_vm5 = vcmp.eq.s32.totalorder %v8250_v14, 0  ;;  %v1297_v57 = vsel %vm1289_vm14, %v1280_v15, %v9826_v58  ;;  %v8281_v50 = vshll.u32 %v1263_v29, 8  ;;  %v1306_v3 = vand.u32 65535, %v1302_v33 }
 0x1ae   : > { %v1307_v26 = vshrl.u32 %v1302_v33, 16  ;;  %v1727_v42 = vmul.f32 %v1726_v31, %v1722_v46  ;;  %v1734_v9 = vmul.f32 %v1733_v53, %v1722_v46  ;;  %vm1740_vm11 = vcmp.lt.s32.totalorder %v8250_v14, 2 }
 0x1af   : > { %vm1203_vm9 = vcmp.lt.s32.totalorder %v8273_v21, 0  ;;  %v1204_v32 = vsub.s32 0, %v8273_v21  ;;  %v1591_v38 = vsel %vm1589_vm0, %v1590_v10, %v1581_v0  ;;  %vm1737_vm7 = vweird.f32 %v9784_v20 }
 0x1b0   : > { %v1271_v54 = vshrl.u32 %v9738_v2, %v9821_v6  ;;  %v1304_v28 = vand.u32 65535, %v8281_v50  ;;  %v1305_v13 = vshrl.u32 %v8281_v50, 16  ;;  %v1592_v46 = vsel %vm1585_vm2, %v1588_v1, %v1591_v38 }
 0x1b1   : > { %v1728_v29 = vadd.f32 1.0, %v1727_v42  ;;  %v1735_v60 = vadd.f32 1.0, %v1734_v9  ;;  %v1205_v49 = vsel %vm1203_vm9, %v1204_v32, %v8273_v21  ;;  %v1298_v0 = vsel %vm1288_vm1, %v1295_v30, %v1297_v57 }
 0x1b2   : > { %v1206_v44 = vclz %v1205_v49  ;;  %v1309_v10 = vmul.u32 %v1307_v26, %v1304_v28  ;;  %v8298_v34 = vmul.u32 %v1306_v3, %v1305_v13  ;;  %v1194_v36 = vadd.s32 %v8212_v40, %v8201_v18 }
 0x1b3   : > { %v1736_v2 = vmul.f32 %v1735_v60, %v8231_v62  ;;  %v1745_v6 = vxor.u32 2147483648, %v1728_v29  ;;  %v1291_v43 = vsel %vm1287_vm15, %v1271_v54, %v1274_v61  ;;  %v1292_v4 = vsel %vm1290_vm13, %v1280_v15, 2102212464 }
 0x1b4   : > { %v4941_v1 = vadd.s32 4294967294, %v1206_v44  ;;  %v1308_v12 = vmul.u32 %v1306_v3, %v1304_v28  ;;  %v1312_v31 = vshll.u32 %v1309_v10, 16  ;;  %v1593_v30 = vsel %vm1582_vm3, nan, %v1592_v46 }
 0x1b5   : > { %v1742_v53 = vxor.u32 2147483648, %v1736_v2  ;;  %v1311_v33 = vmul.u32 %v1307_v26, %v1305_v13  ;;  %v1328_v58 = vand.u32 65535, %v1298_v0  ;;  %v1746_v62 = vsel %vm1744_vm4, %v1745_v6, %v1736_v2 }
 0x1b6   : > { %vm4942_vm2 = vcmp.lt.s32.totalorder %v4941_v1, 0  ;;  %v1314_v18 = vshll.u32 %v8298_v34, 16  ;;  %vm1316_vm0 = vc.u32 %v1308_v12, %v1312_v31  ;;  %v1318_v57 = vadd.s32 %v1312_v31, %v1308_v12 }
 0x1b7   : > { %v1743_v40 = vsel %vm1741_vm5, %v1728_v29, %v1742_v53  ;;  %v1209_v61 = vsel %vm4942_vm2, 0, %v4941_v1  ;;  %v1317_v15 = vsel %vm1316_vm0, 1, %v9758_v51  ;;  %v1329_v38 = vshrl.u32 %v1298_v0, 16 }
 0x1b8   : > { %v1747_v47 = vsel %vm1740_vm11, %v1743_v40, %v1746_v62  ;;  %v1210_v3 = vsub.s32 32, %v1209_v61  ;;  %v1211_v26 = vshll.u32 %v8273_v21, %v1209_v61  ;;  %v1214_v42 = vsub.s32 4294967266, %v1209_v61 }
 0x1b9   : > { %v1748_v9 = vsel %vm1737_vm7, nan, %v1747_v47  ;;  %v1319_v32 = vadd.s32 %v1317_v15, %v1311_v33  ;;  %vm1320_vm13 = vc.u32 %v1318_v57, %v1314_v18  ;;  %v1293_v14 = vsel %vm1289_vm14, %v8241_v8, %v1292_v4 }
 0x1ba   : > { %v1749_v54 = vpack.c.bf16 %v1748_v9, %v1593_v30  ;;  %v1212_v46 = vshrl.u32 %v1194_v36, %v1210_v3  ;;  %v1215_v29 = vadd.s32 127, %v1214_v42  ;;  %v1321_v60 = vsel %vm1320_vm13, 1, %v9758_v51 }
 0x1bb   : > { %v1323_v49 = vadd.s32 %v1321_v60, %v1319_v32  ;;  %v1331_v44 = vmul.u32 %v1329_v38, %v1304_v28  ;;  %v1332_v2 = vmul.u32 %v1328_v58, %v1305_v13  ;;  %v2054_v21 = vshll.u32 %v8062_v24, 16 }
 0x1bc   : > { %1855 = vmatmul.bf16.vlgmr.msra.gmra.mxu0 %v1749_v54  ;;  %1869 = vmatmul.bf16.vlgmr.msra.gmra.mxu1 %v1749_v54  ;;  %v1213_v20 = vor.u32 %v1212_v46, %v1211_v26  ;;  %v1216_v6 = vshll.u32 %v1215_v29, 23  ;;  %v1313_v1 = vshrl.u32 %v1309_v10, 16  ;;  %v2058_v0 = vadd.s32 %v2052_v27, %v8026_v7 }
 0x1bd   : > { %v2059_v36 = vadd.s32 %v8246_v19, %v8067_v41  ;;  %v1330_v12 = vmul.u32 %v1328_v58, %v1304_v28  ;;  %v1334_v31 = vshll.u32 %v1331_v44, 16  ;;  %v9827_v8 = vand.u32 2147483647, %v9799_v59 }
 0x1be   : > { %vm1102_vm15 = vcmp.lt.s32.totalorder %v9799_v59, 0  ;;  %v1217_v30 = vor.u32 4788187, %v1216_v6  ;;  %v1294_v10 = vsel %vm1288_vm1, %v1291_v43, %v1293_v14  ;;  %v1324_v53 = vadd.s32 %v1323_v49, %v1313_v1 }
 0x1bf   : > { %vm8332_vm7 = vcmp.le.f32.partialorder %v9827_v8, 0.7853982  ;;  %v1333_v33 = vmul.u32 %v1329_v38, %v1305_v13  ;;  %v1336_v7 = vshll.u32 %v1332_v2, 16  ;;  %vm1338_vm14 = vc.u32 %v1330_v12, %v1334_v31 }
 0x1c0   : > { %v1340_v27 = vadd.s32 %v1334_v31, %v1330_v12  ;;  %v1218_v41 = vand.u32 2147483647, %v1217_v30  ;;  %v1220_v19 = vcvt.s32.f32 %v1213_v20  ;;  %v1315_v28 = vshrl.u32 %v8298_v34, 16  ;;  %v9830_v20 = vld [vmem:[#allocation93_spill] sm:$0xff]  ;;  %v9834_v31 = vld [vmem:[#allocation95_spill] sm:$0xff] }
 0x1c1   : > { %v1339_v58 = vsel %vm1338_vm14, 1, %v9758_v51  ;;  %v1335_v62 = vshrl.u32 %v1331_v44, 16  ;;  %v2074_v40 = vshll.u32 %v8088_v17, 16  ;;  %v1337_v45 = vshrl.u32 %v1332_v2, 16 }
 0x1c2   : > { %v1341_v18 = vadd.s32 %v1339_v58, %v1333_v33  ;;  %vm1342_vm3 = vc.u32 %v1340_v27, %v1336_v7  ;;  %v1221_v61 = vmul.f32 %v1220_v19, %v1218_v41  ;;  %v8342_v15 = vadd.s32 %v1324_v53, %v1315_v28  ;;  %v9837_v28 = vld [vmem:[#allocation90_spill] sm:$0xff] }
 0x1c3   : > { %v1343_v13 = vsel %vm1342_vm3, 1, %v9758_v51  ;;  %v2053_v57 = vshrl.u32 %v8057_v39, 16  ;;  %v2055_v47 = vshrl.u32 %v8062_v24, 16  ;;  %v2076_v34 = vshll.u32 %v8093_v11, 16 }
 0x1c4   : > { %v1345_v43 = vadd.s32 %v1343_v13, %v1341_v18  ;;  %v1222_v3 = vxor.u32 2147483648, %v1221_v61  ;;  %vm2060_vm1 = vc.u32 %v2058_v0, %v2054_v21  ;;  %vm2078_vm4 = vc.u32 %v8073_v63, %v2074_v40  ;;  %v9839_v18 = vld [vmem:[#allocation94_spill] sm:$0xff] }
 0x1c5   : > { %v2080_v26 = vadd.s32 %v2074_v40, %v8073_v63  ;;  %v8350_v42 = vadd.s32 %v1340_v27, %v1336_v7  ;;  %v2061_v32 = vsel %vm2060_vm1, 1, %v9758_v51  ;;  %v2079_v38 = vsel %vm2078_vm4, 1, %v9758_v51  ;;  %v9835_v7 = vld [vmem:[#allocation89_spill] sm:$0xff] }
 0x1c6   : > { %v1346_v9 = vadd.s32 %v1345_v43, %v1335_v62  ;;  %v1223_v39 = vsel %vm1102_vm15, %v1222_v3, %v1221_v61  ;;  %v2063_v54 = vadd.s32 %v2061_v32, %v2059_v36  ;;  %v2081_v24 = vadd.s32 %v2079_v38, %v8115_v52  ;;  %v9840_v61 = vld [vmem:[#allocation105_spill] sm:$0xff]  ;;  %v9842_v32 = vld [vmem:[#allocation104_spill] sm:$0xff] }
 0x1c7   : > { %vm2082_vm5 = vc.u32 %v2080_v26, %v2076_v34  ;;  %v8360_v46 = vsel %vm8332_vm7, %v9799_v59, %v1223_v39  ;;  %v2075_v29 = vshrl.u32 %v8088_v17, 16  ;;  %vm1350_vm11 = vc.u32 %v8342_v15, %v8350_v42 }
 0x1c8   : > { %v1347_v63 = vadd.s32 %v1346_v9, %v1337_v45  ;;  %v2083_v60 = vsel %vm2082_vm5, 1, %v9758_v51  ;;  %v8366_v14 = vmul.f32 %v8360_v46, %v8360_v46  ;;  %v2064_v49 = vadd.s32 %v2063_v54, %v2053_v57  ;;  %v9841_v9 = vld [vmem:[#allocation85_spill] sm:$0xff]  ;;  %v9844_v54 = vld [vmem:[#allocation92_spill] sm:$0xff] }
 0x1c9   : > { %v2085_v52 = vadd.s32 %v2083_v60, %v2081_v24  ;;  %v1348_v44 = vmul.u32 %v8281_v50, %v1294_v10  ;;  %v2077_v21 = vshrl.u32 %v8093_v11, 16  ;;  %v9831_v6 = vshll.u32 %v9830_v20, 16  ;;  %v9845_v24 = vld [vmem:[#allocation84_spill] sm:$0xff] }
 0x1ca   : > { %v1351_v2 = vadd.s32 1, %v1347_v63  ;;  %v1229_v1 = vmul.f32 -0.001358992, %v8366_v14  ;;  %v1236_v0 = vmul.f32 -0.00019511016, %v8366_v14  ;;  %v8381_v36 = vadd.s32 %v2064_v49, %v2055_v47 }
 0x1cb   : > { %vm8375_vm9 = vc.u32 %v7798_v55, %v9831_v6  ;;  %v2086_v12 = vadd.s32 %v2085_v52, %v2075_v29  ;;  %v2214_v50 = vadd.s32 %v9834_v31, %v7773_v25  ;;  %v8385_v30 = vadd.s32 %v2080_v26, %v2076_v34  ;;  %v9846_v52 = vld [vmem:[#allocation91_spill] sm:$0xff] }
 0x1cc   : > { %v1352_v8 = vsel %vm1350_vm11, %v1351_v2, %v1347_v63  ;;  %v2229_v11 = vshll.u32 %v7778_v5, 16  ;;  %v2034_v55 = vsel %vm2028_vm8, %v7803_v48, %v7809_v16  ;;  %v1237_v10 = vadd.f32 0.008332121, %v1236_v0 }
 0x1cd   : > { %v1353_v53 = vadd.s32 %v1352_v8, %v1348_v44  ;;  %v2087_v33 = vadd.s32 %v2086_v12, %v2077_v21  ;;  %v9836_v27 = vand.u32 65535, %v9835_v7  ;;  %v1230_v19 = vadd.f32 0.041655596, %v1229_v1 }
 0x1ce   : > { %vm2090_vm2 = vc.u32 %v8381_v36, %v8385_v30  ;;  %v2216_v25 = vsel %vm8375_vm9, 1, %v9758_v51  ;;  %v9838_v58 = vshrl.u32 %v9835_v7, 16  ;;  %v1238_v48 = vmul.f32 %v1237_v10, %v8366_v14 }
 0x1cf   : > { %v2225_v41 = vmul.u32 %v9836_v27, %v7548_v22  ;;  %v1354_v16 = vadd.s32 536870912, %v1353_v53  ;;  %v2091_v62 = vadd.s32 1, %v2087_v33  ;;  %v2088_v40 = vmul.u32 %v9839_v18, %v2034_v55 }
 0x1d0   : > { %v2228_v35 = vmul.u32 %v9838_v58, %v9837_v28  ;;  %v2231_v22 = vshll.u32 %v9840_v61, 16  ;;  %v1224_v13 = vsub.s32 4, %v8252_v37  ;;  %v2218_v47 = vadd.s32 %v2216_v25, %v2214_v50 }
 0x1d1   : > { %vm2233_vm8 = vc.u32 %v2225_v41, %v2229_v11  ;;  %v2235_v45 = vadd.s32 %v2229_v11, %v2225_v41  ;;  %v1355_v43 = vshrl.u32 %v1354_v16, 30  ;;  %v2092_v57 = vsel %vm2090_vm2, %v2091_v62, %v2087_v33  ;;  %v9850_v62 = vld [vmem:[#allocation64_spill] sm:$0xff] }
 0x1d2   : > { %v1231_v34 = vmul.f32 %v1230_v19, %v8366_v14  ;;  %v2093_v3 = vadd.s32 %v2092_v57, %v2088_v40  ;;  %v2234_v26 = vsel %vm2233_vm8, 1, %v9758_v51  ;;  %v2186_v39 = vsel %vm2182_vm6, %v9842_v32, %v9841_v9  ;;  %v9852_v40 = vld [vmem:[#allocation102_spill] sm:$0xff]  ;;  %v9855_v57 = vld [vmem:[#allocation81_spill] sm:$0xff] }
 0x1d3   : > { %vm2237_vm0 = vc.u32 %v2235_v45, %v2231_v22  ;;  %v2188_v63 = vsel %vm2184_vm10, %v9845_v24, %v9844_v54  ;;  %v1239_v29 = vadd.f32 -0.16666654, %v1238_v48  ;;  %v1356_v60 = vshll.u32 %v1355_v43, 30 }
 0x1d4   : > { %v2094_v49 = vadd.s32 536870912, %v2093_v3  ;;  %v2208_v44 = vshrl.u32 %v9846_v52, 16  ;;  %v2236_v2 = vadd.s32 %v2234_v26, %v2228_v35  ;;  %v2238_v21 = vsel %vm2237_vm0, 1, %v9758_v51  ;;  %v9847_v35 = vld [vmem:[#allocation103_spill] sm:$0xff]  ;;  %v9858_v52 = vld [vmem:[#allocation98_spill] sm:$0xff] }
 0x1d5   : > { %v1225_v6 = vsel %vm1102_vm15, %v1224_v13, %v8252_v37  ;;  %v1357_v17 = vsub.s32 %v1353_v53, %v1356_v60  ;;  %v1379_v1 = vsub.s32 4, %v1355_v43  ;;  %v2230_v0 = vshrl.u32 %v7778_v5, 16 }
 0x1d6   : > { %v1232_v12 = vadd.f32 -0.4999988, %v1231_v34  ;;  %v8423_v31 = vshrl.u32 %v2094_v49, 30  ;;  %v2219_v50 = vadd.s32 %v2218_v47, %v2208_v44  ;;  %v2240_v8 = vadd.s32 %v2238_v21, %v2236_v2  ;;  %v9856_v49 = vld [vmem:[#allocation56_spill] sm:$0xff] }
 0x1d7   : > { %v2189_v11 = vsel %vm2183_vm12, %v2186_v39, %v2188_v63  ;;  %v1240_v55 = vmul.f32 %v1239_v29, %v8366_v14  ;;  %vm1358_vm6 = vcmp.lt.s32.totalorder %v1357_v17, 0  ;;  %v1359_v10 = vsub.s32 0, %v1357_v17 }
 0x1d8   : > { %vm1257_vm10 = vcmp.lt.s32.totalorder %v9820_v56, 0  ;;  %v2096_v37 = vshll.u32 %v8423_v31, 30  ;;  %v2210_v53 = vshrl.u32 %v9830_v20, 16  ;;  %v2241_v33 = vadd.s32 %v2240_v8, %v2230_v0 }
 0x1d9   : > { %v1227_v5 = vsel %vm8332_vm7, 0, %v1225_v6  ;;  %v1360_v7 = vsel %vm1358_vm6, %v1359_v10, %v1357_v17  ;;  %v1380_v27 = vsel %vm1257_vm10, %v1379_v1, %v1355_v43  ;;  %v2232_v41 = vshrl.u32 %v9840_v61, 16  ;;  %v5104_v1 = vld [vmem:[#allocation8 + $0x120] sm:$0xf] }
 0x1da   : > { %v1233_v19 = vmul.f32 %v1232_v12, %v8366_v14  ;;  %v1361_v25 = vclz %v1360_v7  ;;  %v8437_v28 = vsub.s32 %v2093_v3, %v2096_v37  ;;  %v8439_v58 = vadd.s32 %v2219_v50, %v2210_v53  ;;  %v9859_v50 = vld [vmem:[#allocation48_spill] sm:$0xff]  ;;  %v9860_v37 = vld [vmem:[#allocation99_spill] sm:$0xff] }
 0x1db   : > { %v1241_v20 = vadd.f32 1.0, %v1240_v55  ;;  %vm8444_vm12 = vcmp.le.f32.partialorder %v1255_v23, 0.7853982  ;;  %v2242_v16 = vadd.s32 %v2241_v33, %v2232_v41  ;;  %v9851_v18 = vshll.u32 %v9850_v62, 16  ;;  %v5176_v55 = vld [vmem:[#allocation8 + $0x1a8] sm:$0xf0] }
 0x1dc   : > { %v4944_v61 = vadd.s32 4294967294, %v1361_v25  ;;  %v1382_v13 = vsel %vm8444_vm12, 0, %v1380_v27  ;;  %v8457_v43 = vadd.s32 %v2235_v45, %v2231_v22  ;;  %v2243_v47 = vmul.u32 %v9855_v57, %v2189_v11  ;;  %v9861_v27 = vld [vmem:[#allocation100_spill] sm:$0xff]  ;;  %v9863_v25 = vld [vmem:[#allocation46_spill] sm:$0xff]  ;;  %v9868_v57 = vld [vmem:[#allocation41_spill] sm:$0xff] }
 0x1dd   : > { %vm8451_vm13 = vc.u32 %v9852_v40, %v9851_v18  ;;  %v1244_v23 = vadd.s32 3, %v1227_v5  ;;  %vm2098_vm7 = vcmp.lt.s32.totalorder %v8437_v28, 0  ;;  %v2099_v34 = vsub.s32 0, %v8437_v28  ;;  %v9865_v18 = vld [vmem:[#allocation45_spill] sm:$0xff] }
 0x1de   : > { %v8462_v3 = vadd.f32 1.0, %v1233_v19  ;;  %vm4945_vm15 = vcmp.lt.s32.totalorder %v4944_v61, 0  ;;  %vm2245_vm14 = vc.u32 %v8439_v58, %v8457_v43  ;;  %v2246_v26 = vadd.s32 1, %v2242_v16  ;;  %v9862_v19 = vld [vmem:[#allocation43_spill] sm:$0xff] }
 0x1df   : > { %v8467_v9 = vmul.f32 %v1241_v20, %v8360_v46  ;;  %v1364_v32 = vsel %vm4945_vm15, 0, %v4944_v61  ;;  %v1399_v22 = vadd.s32 3, %v1382_v13  ;;  %v2100_v45 = vsel %vm2098_vm7, %v2099_v34, %v8437_v28  ;;  %v9867_v13 = vld [vmem:[#allocation96_spill] sm:$0xff]  ;;  %v5977_v34 = vld [vmem:[#allocation8 + $0x134] sm:$0xf0] }
 0x1e0   : > { %v1349_v38 = vadd.s32 %v8350_v42, %v8342_v15  ;;  %v1365_v39 = vsub.s32 32, %v1364_v32  ;;  %v1369_v54 = vsub.s32 4294967266, %v1364_v32  ;;  %v2101_v24 = vclz %v2100_v45 }
 0x1e1   : > { %v8475_v63 = vsel %vm8451_vm13, 1, %v9758_v51  ;;  %v1366_v29 = vshll.u32 %v1357_v17, %v1364_v32  ;;  %v2247_v60 = vsel %vm2245_vm14, %v2246_v26, %v2242_v16  ;;  %v9857_v46 = vshll.u32 %v9856_v49, 16  ;;  %v5976_v26 = vld [vmem:[#allocation8 + $0x134] sm:$0xf] }
 0x1e2   : > { %v1367_v44 = vshrl.u32 %v1349_v38, %v1365_v39  ;;  %v1370_v2 = vadd.s32 127, %v1369_v54  ;;  %v5081_v21 = vadd.s32 4294967294, %v2101_v24  ;;  %v8480_v6 = vadd.s32 %v2247_v60, %v2243_v47  ;;  %v9869_v32 = vld [vmem:[#allocation97_spill] sm:$0xff]  ;;  %v5114_v24 = vld [vmem:[#allocation8 + $0x138] sm:$0xf0] }
 0x1e3   : > { %vm2512_vm3 = vc.u32 %v9858_v52, %v9857_v46  ;;  %v8482_v15 = vand.u32 3, %v1244_v23  ;;  %v8486_v0 = vand.u32 3, %v1399_v22  ;;  %v2505_v8 = vshrl.u32 %v9859_v50, 16  ;;  %v5112_v23 = vld [vmem:[#allocation8 + $0x130] sm:$0xf]  ;;  %v9870_v22 = vld [vmem:[#allocation60_spill] sm:$0xff] }
 0x1e4   : > { %v1368_v12 = vor.u32 %v1367_v44, %v1366_v29  ;;  %v1371_v17 = vshll.u32 %v1370_v2, 23  ;;  %vm5082_vm1 = vcmp.lt.s32.totalorder %v5081_v21, 0  ;;  %v2513_v10 = vsel %vm2512_vm3, 1, %v9758_v51  ;;  %v5182_v29 = vld [vmem:[#allocation8 + $0x1b0] sm:$0xf]  ;;  %v9873_v52 = vld [vmem:[#allocation44_spill] sm:$0xff] }
 0x1e5   : > { %v8489_v11 = vsel %vm5082_vm1, 0, %v5081_v21  ;;  %v2526_v53 = vshll.u32 %v9860_v37, 16  ;;  %v8496_v7 = vadd.s32 536870912, %v8480_v6  ;;  %v2528_v41 = vshll.u32 %v9861_v27, 16  ;;  %v9871_v60 = vld [vmem:[#allocation53_spill] sm:$0xff]  ;;  %v9876_v21 = vld [vmem:[#allocation50_spill] sm:$0xff] }
 0x1e6   : > { %v1372_v33 = vor.u32 4788187, %v1371_v17  ;;  %v2105_v5 = vsub.s32 32, %v8489_v11  ;;  %v9864_v20 = vand.u32 65535, %v9863_v25  ;;  %v9866_v14 = vshrl.u32 %v9863_v25, 16  ;;  %v9872_v46 = vld [vmem:[#allocation101_spill] sm:$0xff] }
 0x1e7   : > { %v2511_v45 = vadd.s32 %v9870_v22, %v9869_v32  ;;  %v1375_v39 = vcvt.s32.f32 %v1368_v12  ;;  %v5113_v54 = vor.u32 %v5977_v34, %v5112_v23  ;;  %vm9874_vm4 = vcmp.lt.s32.totalorder %v9873_v52, 1  ;;  %v9875_v2 = vld [vmem:[#allocation61_spill] sm:$0xff]  ;;  %v9879_v25 = vld [vmem:[#allocation54_spill] sm:$0xff]  ;;  %v9881_v34 = vld [vmem:[#allocation51_spill] sm:$0xff] }
 0x1e8   : > { %v8502_v16 = vmul.u32 %v9864_v20, %v9862_v19  ;;  %v8507_v61 = vmul.u32 %v9866_v14, %v9865_v18  ;;  %v1373_v38 = vand.u32 2147483647, %v1372_v33  ;;  %v8517_v44 = vsel %vm9874_vm4, %v9872_v46, %v9871_v60  ;;  %v9878_v19 = vld [vmem:[#allocation59_spill] sm:$0xff]  ;;  %v5993_v18 = vld [vmem:[#allocation8 + $0x1b4] sm:$0xf0] }
 0x1e9   : > { %vm9877_vm5 = vcmp.lt.s32.totalorder %v9873_v52, 3  ;;  %v9880_v20 = vshrl.u32 %v9879_v25, 16  ;;  %v5117_v12 = vor.u32 %v5976_v26, %v5114_v24  ;;  %v5992_v14 = vld [vmem:[#allocation8 + $0x1b4] sm:$0xf]  ;;  %v5184_v23 = vld [vmem:[#allocation8 + $0x1b8] sm:$0xf0]  ;;  %2407 = vmatpush.bf16.msrb.mxu0 %v5113_v54  ;;  %v5183_v46 = vor.u32 %v5993_v18, %v5182_v29 }
 0x1ea   : > { %v8523_v17 = vsel %vm9877_vm5, %v9876_v21, %v9875_v2  ;;  %v9882_v32 = vld [vmem:[#allocation62_spill] sm:$0xff]  ;;  %v1376_v60 = vmul.f32 %v1375_v39, %v1373_v38  ;;  %v5187_v48 = vor.u32 %v5992_v14, %v5184_v23  ;;  %v5975_v2 = vld [vmem:[#allocation8 + $0x124] sm:$0xf0]  ;;  %v5974_v21 = vld [vmem:[#allocation8 + $0x124] sm:$0xf]  ;;  %v9887_v42 = vshll.u32 %v9850_v62, 16 }
 0x1eb   : > { %v2658_v33 = vmul.u32 %v9880_v20, %v9878_v19  ;;  %v9883_v22 = vand.u32 65535, %v9882_v32  ;;  %v9884_v25 = vshrl.u32 %v9882_v32, 16  ;;  %2421 = vmatpush.bf16.msrb.mxu1 %v5117_v12  ;;  %v5105_v39 = vor.u32 %v5975_v2, %v5104_v1  ;;  %v5106_v54 = vld [vmem:[#allocation8 + $0x128] sm:$0xf0]  ;;  %v5174_v29 = vld [vmem:[#allocation8 + $0x1a0] sm:$0xf]  ;;  %2859 = vmatpush.bf16.msrb.mxu2 %v5183_v46 }
 0x1ec   : > { %v5991_v18 = vld [vmem:[#allocation8 + $0x1a4] sm:$0xf0]  ;;  %v1377_v14 = vxor.u32 2147483648, %v1376_v60  ;;  %2873 = vmatpush.bf16.msrb.mxu3 %v5187_v48  ;;  %v5109_v23 = vor.u32 %v5974_v21, %v5106_v54  ;;  %v8552_v32 = vadd.s32 %v9887_v42, %v9852_v40  ;;  %vm1247_vm11 = vcmp.eq.s32.totalorder %v8482_v15, 0  ;;  %v5973_v12 = vld [vmem:[#allocation8 + $0x114] sm:$0xf0] }
 0x1ed   : > { %v8531_v47 = vmul.u32 %v9883_v22, %v9881_v34  ;;  %v8536_v20 = vmul.u32 %v9884_v25, %v9881_v34  ;;  %v9885_v26 = vmov %v9883_v22  ;;  %v9886_v22 = vmov %v9884_v25  ;;  %v5990_v25 = vld [vmem:[#allocation8 + $0x1a4] sm:$0xf]  ;;  %v5972_v2 = vld [vmem:[#allocation8 + $0x114] sm:$0xf]  ;;  %2408 = vmatpush.bf16.msrb.mxu0 %v5105_v39  ;;  %v5098_v42 = vld [vmem:[#allocation8 + $0x118] sm:$0xf0] }
 0x1ee   : > { %v8541_v24 = vmul.u32 %v9885_v26, %v9878_v19  ;;  %v8546_v38 = vmul.u32 %v9886_v22, %v9878_v19  ;;  %v5175_v34 = vor.u32 %v5991_v18, %v5174_v29  ;;  %v2109_v26 = vsub.s32 4294967266, %v8489_v11  ;;  %v5096_v19 = vld [vmem:[#allocation8 + $0x110] sm:$0xf]  ;;  %v5088_v18 = vld [vmem:[#allocation8 + $0x100] sm:$0xf] }
 0x1ef   : > { %v5179_v1 = vor.u32 %v5990_v25, %v5176_v55  ;;  %v2515_v22 = vadd.s32 %v2513_v10, %v2511_v45  ;;  %v8558_v48 = vadd.s32 %v2526_v53, %v8502_v16  ;;  %v8561_v46 = vadd.s32 %v8475_v63, %v2658_v33  ;;  %v5166_v54 = vld [vmem:[#allocation8 + $0x190] sm:$0xf]  ;;  %v5989_v55 = vld [vmem:[#allocation8 + $0x194] sm:$0xf0]  ;;  %2422 = vmatpush.bf16.msrb.mxu1 %v5109_v23  ;;  %v5988_v63 = vld [vmem:[#allocation8 + $0x194] sm:$0xf] }
 0x1f0   : > { %v1378_v21 = vsel %vm1257_vm10, %v1377_v14, %v1376_v60  ;;  %v5097_v40 = vor.u32 %v5973_v12, %v5096_v19  ;;  %v2089_v29 = vadd.s32 %v8385_v30, %v8381_v36  ;;  %v5101_v45 = vor.u32 %v5972_v2, %v5098_v42  ;;  %v5168_v33 = vld [vmem:[#allocation8 + $0x198] sm:$0xf0]  ;;  %2860 = vmatpush.bf16.msrb.mxu2 %v5175_v34  ;;  %v5971_v14 = vld [vmem:[#allocation8 + $0x104] sm:$0xf0]  ;;  %v5970_v23 = vld [vmem:[#allocation8 + $0x104] sm:$0xf] }
 0x1f1   : > { %v8570_v10 = vsel %vm8444_vm12, %v9820_v56, %v1378_v21  ;;  %v2106_v60 = vshll.u32 %v8437_v28, %v8489_v11  ;;  %v8576_v39 = vadd.s32 %v8457_v43, %v8439_v58  ;;  %2874 = vmatpush.bf16.msrb.mxu3 %v5179_v1  ;;  %v5167_v30 = vor.u32 %v5989_v55, %v5166_v54  ;;  %v5090_v25 = vld [vmem:[#allocation8 + $0x108] sm:$0xf0]  ;;  %v5158_v19 = vld [vmem:[#allocation8 + $0x180] sm:$0xf]  ;;  %v5987_v12 = vld [vmem:[#allocation8 + $0x184] sm:$0xf0] }
 0x1f2   : > { %v8580_v36 = vmul.f32 %v8570_v10, %v8570_v10  ;;  %v5171_v4 = vor.u32 %v5988_v63, %v5168_v33  ;;  %vm1250_vm9 = vcmp.eq.s32.totalorder %v8482_v15, 2  ;;  %v5986_v28 = vld [vmem:[#allocation8 + $0x184] sm:$0xf]  ;;  %v2107_v58 = vshrl.u32 %v2089_v29, %v2105_v5  ;;  %2409 = vmatpush.bf16.msrb.mxu0 %v5097_v40 }
 0x1f3   : > { %v2516_v43 = vadd.s32 %v2515_v22, %v2505_v8  ;;  %vm8590_vm2 = vc.u32 %v8502_v16, %v2526_v53  ;;  %vm8597_vm8 = vc.u32 %v8558_v48, %v2528_v41  ;;  %vm1246_vm0 = vcmp.lt.s32.totalorder %v8482_v15, 2  ;;  %v5160_v53 = vld [vmem:[#allocation8 + $0x188] sm:$0xf0]  ;;  %2423 = vmatpush.bf16.msrb.mxu1 %v5101_v45 }
 0x1f4   : > { %v1384_v11 = vmul.f32 -0.001358992, %v8580_v36  ;;  %v1391_v50 = vmul.f32 -0.00019511016, %v8580_v36  ;;  %v5089_v8 = vor.u32 %v5971_v14, %v5088_v18  ;;  %v5093_v5 = vor.u32 %v5970_v23, %v5090_v25  ;;  %2861 = vmatpush.bf16.msrb.mxu2 %v5167_v30 }
 0x1f5   : > { %v5159_v16 = vor.u32 %v5987_v12, %v5158_v19  ;;  %v5163_v2 = vor.u32 %v5986_v28, %v5160_v53  ;;  %v2110_v22 = vadd.s32 127, %v2109_v26  ;;  %v8605_v21 = vshrl.u32 %v8496_v7, 30  ;;  %2875 = vmatpush.bf16.msrb.mxu3 %v5171_v4  ;;  %v9892_v7 = vld [vmem:[#allocation58_spill] sm:$0xff] }
 0x1f6   : > { %v1385_v42 = vadd.f32 0.041655596, %v1384_v11  ;;  %v1392_v54 = vadd.f32 0.008332121, %v1391_v50  ;;  %v2531_v55 = vsel %vm8590_vm2, 1, %v9758_v51  ;;  %v2535_v40 = vsel %vm8597_vm8, 1, %v9758_v51  ;;  %2410 = vmatpush.bf16.msrb.mxu0 %v5089_v8 }
 0x1f7   : > { %v2108_v29 = vor.u32 %v2107_v58, %v2106_v60  ;;  %v2111_v45 = vshll.u32 %v2110_v22, 23  ;;  %v2251_v63 = vshll.u32 %v8605_v21, 30  ;;  %v2533_v26 = vadd.s32 %v2531_v55, %v8507_v61  ;;  %2424 = vmatpush.bf16.msrb.mxu1 %v5093_v5 }
 0x1f8   : > { %vm1997_vm6 = vcmp.lt.s32.totalorder %v9892_v7, 0  ;;  %vm1243_vm10 = vweird.f32 %v9799_v59  ;;  %v9893_v33 = vxor.u32 2147483648, %v8467_v9  ;;  %v1386_v30 = vmul.f32 %v1385_v42, %v8580_v36  ;;  %2862 = vmatpush.bf16.msrb.mxu2 %v5159_v16 }
 0x1f9   : > { %v1393_v4 = vmul.f32 %v1392_v54, %v8580_v36  ;;  %v2527_v60 = vshrl.u32 %v9860_v37, 16  ;;  %v9894_v61 = vand.u32 2147483647, %v9892_v7  ;;  %v2112_v23 = vor.u32 4788187, %v2111_v45  ;;  %2876 = vmatpush.bf16.msrb.mxu3 %v5163_v2 }
 0x1fa   : > { %v1249_v18 = vsel %vm1247_vm11, %v8462_v3, %v9893_v33  ;;  %v8632_v25 = vsub.s32 %v8480_v6, %v2251_v63  ;;  %v9897_v19 = vshrl.u32 %v9856_v49, 16  ;;  %v2537_v28 = vadd.s32 %v2535_v40, %v2533_v26 }
 0x1fb   : > { %vm8627_vm12 = vcmp.le.f32.partialorder %v9894_v61, 0.7853982  ;;  %v1387_v58 = vadd.f32 -0.4999988, %v1386_v30  ;;  %v1394_v34 = vadd.f32 -0.16666654, %v1393_v4  ;;  %v8642_v1 = vadd.s32 %v8558_v48, %v2528_v41 }
 0x1fc   : > { %v8636_v12 = vadd.s32 %v2516_v43, %v9897_v19  ;;  %v2529_v37 = vshrl.u32 %v9861_v27, 16  ;;  %v2113_v11 = vand.u32 2147483647, %v2112_v23  ;;  %v2115_v50 = vcvt.s32.f32 %v2108_v29 }
 0x1fd   : > { %vm2253_vm13 = vcmp.lt.s32.totalorder %v8632_v25, 0  ;;  %v2254_v49 = vsub.s32 0, %v8632_v25  ;;  %v9898_v6 = vxor.u32 2147483648, %v8462_v3  ;;  %v1388_v8 = vmul.f32 %v1387_v58, %v8580_v36 }
 0x1fe   : > { %v1395_v5 = vmul.f32 %v1394_v34, %v8580_v36  ;;  %v2538_v27 = vadd.s32 %v2537_v28, %v2527_v60  ;;  %vm1398_vm7 = vweird.f32 %v9820_v56  ;;  %vm1401_vm15 = vcmp.lt.s32.totalorder %v8486_v0, 2 }
 0x1ff   : > { %v1252_v43 = vsel %vm1250_vm9, %v9898_v6, %v8467_v9  ;;  %v2116_v48 = vmul.f32 %v2115_v50, %v2113_v11  ;;  %v2255_v53 = vsel %vm2253_vm13, %v2254_v49, %v8632_v25  ;;  %v1389_v16 = vadd.f32 1.0, %v1388_v8 }
 0x200   : > { %v1253_v41 = vsel %vm1246_vm0, %v1249_v18, %v1252_v43  ;;  %v1396_v3 = vadd.f32 1.0, %v1395_v5  ;;  %v2256_v2 = vclz %v2255_v53  ;;  %v2539_v22 = vadd.s32 %v2538_v27, %v2529_v37 }
 0x201   : > { %vm1402_vm14 = vcmp.eq.s32.totalorder %v8486_v0, 0  ;;  %v2117_v9 = vxor.u32 2147483648, %v2116_v48  ;;  %vm2542_vm3 = vc.u32 %v8636_v12, %v8642_v1  ;;  %v9899_v15 = vshll.u32 %v9847_v35, 16 }
 0x202   : > { %v1397_v36 = vmul.f32 %v1396_v3, %v8570_v10  ;;  %v1406_v42 = vxor.u32 2147483648, %v1389_v16  ;;  %v5084_v54 = vadd.s32 4294967294, %v2256_v2  ;;  %v2543_v55 = vadd.s32 1, %v2539_v22 }
 0x203   : > { %vm2667_vm1 = vc.u32 %v8552_v32, %v9899_v15  ;;  %v1254_v40 = vsel %vm1243_vm10, nan, %v1253_v41  ;;  %vm1405_vm4 = vcmp.eq.s32.totalorder %v8486_v0, 2  ;;  %v2118_v29 = vsel %vm1997_vm6, %v2117_v9, %v2116_v48 }
 0x204   : > { %v2660_v45 = vshrl.u32 %v9850_v62, 16  ;;  %v1403_v63 = vxor.u32 2147483648, %v1397_v36  ;;  %v8674_v32 = vsel %vm8627_vm12, %v9892_v7, %v2118_v29  ;;  %vm5085_vm5 = vcmp.lt.s32.totalorder %v5084_v54, 0 }
 0x205   : > { %v2668_v10 = vsel %vm2667_vm1, 1, %v9758_v51  ;;  %v8679_v59 = vmul.f32 %v8674_v32, %v8674_v32  ;;  %v2259_v26 = vsel %vm5085_vm5, 0, %v5084_v54  ;;  %v2544_v33 = vsel %vm2542_vm3, %v2543_v55, %v2539_v22 }
 0x206   : > { %v2681_v62 = vshll.u32 %v8536_v20, 16  ;;  %v1404_v18 = vsel %vm1402_vm14, %v1389_v16, %v1403_v63  ;;  %v1407_v30 = vsel %vm1405_vm4, %v1406_v42, %v1397_v36  ;;  %v2260_v4 = vsub.s32 32, %v2259_v26  ;;  %v9902_v42 = vld [vmem:[#allocation57_spill] sm:$0xff] }
 0x207   : > { %v2264_v60 = vsub.s32 4294967266, %v2259_v26  ;;  %v1408_v61 = vsel %vm1401_vm15, %v1404_v18, %v1407_v30  ;;  %v2124_v23 = vmul.f32 -0.001358992, %v8679_v59  ;;  %v2131_v19 = vmul.f32 -0.00019511016, %v8679_v59 }
 0x208   : > { %v9900_v28 = vmul.u32 %v9868_v57, %v9867_v13  ;;  %v1409_v34 = vsel %vm1398_vm7, nan, %v1408_v61  ;;  %v2261_v37 = vshll.u32 %v8632_v25, %v2259_v26  ;;  %v2262_v11 = vshrl.u32 %v8576_v39, %v2260_v4 }
 0x209   : > { %v2265_v50 = vadd.s32 127, %v2264_v60  ;;  %v1410_v49 = vpack.c.bf16 %v1409_v34, %v1254_v40  ;;  %v2132_v6 = vadd.f32 0.008332121, %v2131_v19  ;;  %v2670_v43 = vadd.s32 %v2668_v10, %v8561_v46  ;;  %v9906_v19 = vld [vmem:[#allocation47_spill] sm:$0xff] }
 0x20a   : > { %v2545_v58 = vadd.s32 %v2544_v33, %v9900_v28  ;;  %v2263_v8 = vor.u32 %v2262_v11, %v2261_v37  ;;  %v2683_v27 = vshll.u32 %v8541_v24, 16  ;;  %vm2685_vm11 = vc.u32 %v8531_v47, %v2681_v62 }
 0x20b   : > { %v2266_v5 = vshll.u32 %v2265_v50, 23  ;;  %1963 = vmatmul.bf16.vlgmr.msra.gmra.mxu2 %v1410_v49  ;;  %1977 = vmatmul.bf16.vlgmr.msra.gmra.mxu3 %v1410_v49  ;;  %v2125_v56 = vadd.f32 0.041655596, %v2124_v23  ;;  %v2133_v13 = vmul.f32 %v2132_v6, %v8679_v59  ;;  %v2686_v39 = vsel %vm2685_vm11, 1, %v9758_v51 }
 0x20c   : > { %v2546_v0 = vadd.s32 536870912, %v2545_v58  ;;  %v2687_v41 = vadd.s32 %v2681_v62, %v8531_v47  ;;  %vm9901_vm9 = vcmp.lt.s32.totalorder %v9873_v52, 2  ;;  %v2119_v48 = vsub.s32 4, %v8423_v31 }
 0x20d   : > { %v2267_v25 = vor.u32 4788187, %v2266_v5  ;;  %v2641_v46 = vsel %vm9901_vm9, %v8517_v44, %v8523_v17  ;;  %v2270_v53 = vcvt.s32.f32 %v2263_v8  ;;  %v2134_v3 = vadd.f32 -0.16666654, %v2133_v13 }
 0x20e   : > { %v8702_v57 = vshrl.u32 %v2546_v0, 30  ;;  %v2688_v22 = vadd.s32 %v2686_v39, %v8546_v38  ;;  %vm2689_vm2 = vc.u32 %v2687_v41, %v2683_v27  ;;  %v2126_v9 = vmul.f32 %v2125_v56, %v8679_v59 }
 0x20f   : > { %v2268_v2 = vand.u32 2147483647, %v2267_v25  ;;  %v2662_v47 = vshrl.u32 %v9847_v35, 16  ;;  %v2671_v36 = vadd.s32 %v2670_v43, %v2660_v45  ;;  %vm2152_vm8 = vcmp.lt.s32.totalorder %v9902_v42, 0 }
 0x210   : > { %v2548_v16 = vshll.u32 %v8702_v57, 30  ;;  %v2682_v44 = vshrl.u32 %v8536_v20, 16  ;;  %v2690_v17 = vsel %vm2689_vm2, 1, %v9758_v51  ;;  %v2120_v54 = vsel %vm1997_vm6, %v2119_v48, %v8423_v31 }
 0x211   : > { %v2271_v52 = vmul.f32 %v2270_v53, %v2268_v2  ;;  %v9903_v38 = vand.u32 2147483647, %v9902_v42  ;;  %v2135_v40 = vmul.f32 %v2134_v3, %v8679_v59  ;;  %v2274_v45 = vsub.s32 4, %v8605_v21 }
 0x212   : > { %v2549_v15 = vsub.s32 %v2545_v58, %v2548_v16  ;;  %v2692_v20 = vadd.s32 %v2690_v17, %v2688_v22  ;;  %v2127_v63 = vadd.f32 -0.4999988, %v2126_v9  ;;  %v8729_v10 = vadd.s32 %v2671_v36, %v2662_v47 }
 0x213   : > { %vm8723_vm0 = vcmp.le.f32.partialorder %v9903_v38, 0.7853982  ;;  %v2272_v29 = vxor.u32 2147483648, %v2271_v52  ;;  %v2684_v31 = vshrl.u32 %v8541_v24, 16  ;;  %v8734_v62 = vadd.s32 %v2687_v41, %v2683_v27 }
 0x214   : > { %vm2550_vm10 = vcmp.lt.s32.totalorder %v2549_v15, 0  ;;  %v2551_v35 = vsub.s32 0, %v2549_v15  ;;  %v2693_v18 = vadd.s32 %v2692_v20, %v2682_v44  ;;  %v2122_v4 = vsel %vm8627_vm12, 0, %v2120_v54 }
 0x215   : > { %v2273_v26 = vsel %vm2152_vm8, %v2272_v29, %v2271_v52  ;;  %v2136_v60 = vadd.f32 1.0, %v2135_v40  ;;  %v2695_v28 = vmul.u32 %v9906_v19, %v2641_v46  ;;  %v2128_v24 = vmul.f32 %v2127_v63, %v8679_v59 }
 0x216   : > { %v2552_v51 = vsel %vm2550_vm10, %v2551_v35, %v2549_v15  ;;  %v2276_v30 = vsel %vm8723_vm0, %v9902_v42, %v2273_v26  ;;  %v2275_v58 = vsel %vm2152_vm8, %v2274_v45, %v8605_v21  ;;  %v2694_v34 = vadd.s32 %v2693_v18, %v2684_v31 }
 0x217   : > { %v2553_v33 = vclz %v2552_v51  ;;  %v2278_v61 = vmul.f32 %v2276_v30, %v2276_v30  ;;  %vm2697_vm13 = vc.u32 %v8729_v10, %v8734_v62  ;;  %v2139_v14 = vadd.s32 3, %v2122_v4  ;;  %v9907_v51 = vld [vmem:[#allocation39_spill] sm:$0xff] }
 0x218   : > { %v2541_v50 = vadd.s32 %v8642_v1, %v8636_v12  ;;  %v2698_v6 = vadd.s32 1, %v2694_v34  ;;  %v2137_v0 = vmul.f32 %v2136_v60, %v8674_v32  ;;  %v2129_v5 = vadd.f32 1.0, %v2128_v24 }
 0x219   : > { %v5151_v23 = vadd.s32 4294967294, %v2553_v33  ;;  %v2279_v37 = vmul.f32 -0.001358992, %v2278_v61  ;;  %v2286_v11 = vmul.f32 -0.00019511016, %v2278_v61  ;;  %v2277_v21 = vsel %vm8723_vm0, 0, %v2275_v58 }
 0x21a   : > { %v2699_v56 = vsel %vm2697_vm13, %v2698_v6, %v2694_v34  ;;  %v2140_v46 = vand.u32 3, %v2139_v14  ;;  %v2143_v1 = vxor.u32 2147483648, %v2137_v0  ;;  %v2294_v3 = vadd.s32 3, %v2277_v21 }
 0x21b   : > { %vm5152_vm6 = vcmp.lt.s32.totalorder %v5151_v23, 0  ;;  %v2280_v59 = vadd.f32 0.041655596, %v2279_v37  ;;  %v2287_v43 = vadd.f32 0.008332121, %v2286_v11  ;;  %v2700_v41 = vadd.s32 %v2699_v56, %v2695_v28 }
 0x21c   : > { %v2556_v49 = vsel %vm5152_vm6, 0, %v5151_v23  ;;  %v2146_v9 = vxor.u32 2147483648, %v2129_v5  ;;  %vm2141_vm12 = vcmp.lt.s32.totalorder %v2140_v46, 2  ;;  %vm2142_vm7 = vcmp.eq.s32.totalorder %v2140_v46, 0 }
 0x21d   : > { %v2557_v8 = vsub.s32 32, %v2556_v49  ;;  %v2561_v27 = vsub.s32 4294967266, %v2556_v49  ;;  %v2281_v13 = vmul.f32 %v2280_v59, %v2278_v61  ;;  %v2288_v39 = vmul.f32 %v2287_v43, %v2278_v61 }
 0x21e   : > { %v2558_v48 = vshll.u32 %v2549_v15, %v2556_v49  ;;  %v2701_v32 = vadd.s32 536870912, %v2700_v41  ;;  %v2144_v17 = vsel %vm2142_vm7, %v2129_v5, %v2143_v1  ;;  %vm2145_vm15 = vcmp.eq.s32.totalorder %v2140_v46, 2 }
 0x21f   : > { %v2559_v25 = vshrl.u32 %v2541_v50, %v2557_v8  ;;  %v2562_v12 = vadd.s32 127, %v2561_v27  ;;  %v2282_v53 = vadd.f32 -0.4999988, %v2281_v13  ;;  %v2289_v16 = vadd.f32 -0.16666654, %v2288_v39 }
 0x220   : > { %v8753_v52 = vshrl.u32 %v2701_v32, 30  ;;  %v2295_v55 = vand.u32 3, %v2294_v3  ;;  %v2147_v29 = vsel %vm2145_vm15, %v2146_v9, %v2137_v0  ;;  %vm2449_vm14 = vcmp.lt.s32.totalorder %v9907_v51, 0 }
 0x221   : > { %v2560_v2 = vor.u32 %v2559_v25, %v2558_v48  ;;  %v2563_v22 = vshll.u32 %v2562_v12, 23  ;;  %v2283_v47 = vmul.f32 %v2282_v53, %v2278_v61  ;;  %v2290_v36 = vmul.f32 %v2289_v16, %v2278_v61 }
 0x222   : > { %v2703_v15 = vshll.u32 %v8753_v52, 30  ;;  %vm2138_vm3 = vweird.f32 %v9892_v7  ;;  %v2148_v31 = vsel %vm2141_vm12, %v2144_v17, %v2147_v29  ;;  %vm2293_vm1 = vweird.f32 %v9902_v42 }
 0x223   : > { %v2564_v44 = vor.u32 4788187, %v2563_v22  ;;  %v2284_v54 = vadd.f32 1.0, %v2283_v47  ;;  %v2291_v38 = vadd.f32 1.0, %v2290_v36  ;;  %v2567_v40 = vcvt.s32.f32 %v2560_v2  ;;  %v6030_v2 = vld [vmem:[%s9915_s19 + $0xe4] sm:$0xf] }
 0x224   : > { %v2704_v63 = vsub.s32 %v2700_v41, %v2703_v15  ;;  %vm2296_vm5 = vcmp.lt.s32.totalorder %v2295_v55, 2  ;;  %vm2297_vm11 = vcmp.eq.s32.totalorder %v2295_v55, 0  ;;  %vm2300_vm9 = vcmp.eq.s32.totalorder %v2295_v55, 2 }
 0x225   : > { %v2565_v35 = vand.u32 2147483647, %v2564_v44  ;;  %v2292_v45 = vmul.f32 %v2291_v38, %v2276_v30  ;;  %v2301_v20 = vxor.u32 2147483648, %v2284_v54  ;;  %v2149_v60 = vsel %vm2138_vm3, nan, %v2148_v31 }
 0x226   : > { %vm2705_vm4 = vcmp.lt.s32.totalorder %v2704_v63, 0  ;;  %v2706_v18 = vsub.s32 0, %v2704_v63  ;;  %v9908_v28 = vand.u32 2147483647, %v9907_v51  ;;  %v2696_v0 = vadd.s32 %v8734_v62, %v8729_v10  ;;  %v9911_v62 = vld [vmem:[#allocation40_spill] sm:$0xff] }
 0x227   : > { %v2568_v26 = vmul.f32 %v2567_v40, %v2565_v35  ;;  %v2298_v33 = vxor.u32 2147483648, %v2292_v45  ;;  %v2302_v61 = vsel %vm2300_vm9, %v2301_v20, %v2292_v45  ;;  %v2571_v53 = vsub.s32 4, %v8702_v57 }
 0x228   : > { %v2707_v23 = vsel %vm2705_vm4, %v2706_v18, %v2704_v63  ;;  %vm8762_vm2 = vcmp.le.f32.partialorder %v9908_v28, 0.7853982  ;;  %vm2604_vm0 = vcmp.lt.s32.totalorder %v9911_v62, 0  ;;  %v9912_v3 = vand.u32 2147483647, %v9911_v62 }
 0x229   : > { %v2569_v4 = vxor.u32 2147483648, %v2568_v26  ;;  %v2299_v30 = vsel %vm2297_vm11, %v2284_v54, %v2298_v33  ;;  %v2708_v58 = vclz %v2707_v23  ;;  %v2572_v9 = vsel %vm2449_vm14, %v2571_v53, %v8702_v57  ;;  %v5334_v53 = vld [vmem:[%s9915_s19 + $0xe0] sm:$0xf] }
 0x22a   : > { %v2303_v19 = vsel %vm2296_vm5, %v2299_v30, %v2302_v61  ;;  %vm8779_vm10 = vcmp.le.f32.partialorder %v9912_v3, 0.7853982  ;;  %v2726_v47 = vsub.s32 4, %v8753_v52  ;;  %v2574_v54 = vsel %vm8762_vm2, 0, %v2572_v9  ;;  %v5272_v3 = vld [vmem:[%s9915_s19 + $0x68] sm:$0xf0] }
 0x22b   : > { %v2570_v24 = vsel %vm2449_vm14, %v2569_v4, %v2568_v26  ;;  %v2304_v34 = vsel %vm2293_vm1, nan, %v2303_v19  ;;  %v5154_v50 = vadd.s32 4294967294, %v2708_v58  ;;  %v2591_v57 = vadd.s32 3, %v2574_v54  ;;  %v5336_v9 = vld [vmem:[%s9915_s19 + $0xe8] sm:$0xf0] }
 0x22c   : > { %v2573_v37 = vsel %vm8762_vm2, %v9907_v51, %v2570_v24  ;;  %v2305_v11 = vpack.c.bf16 %v2304_v34, %v2149_v60  ;;  %v2727_v35 = vsel %vm2604_vm0, %v2726_v47, %v8753_v52  ;;  %vm2590_vm3 = vweird.f32 %v9907_v51  ;;  %v5342_v51 = vld [vmem:[%s9915_s19 + $0xf0] sm:$0xf] }
 0x22d   : > { %v2575_v14 = vmul.f32 %v2573_v37, %v2573_v37  ;;  %vm5155_vm8 = vcmp.lt.s32.totalorder %v5154_v50, 0  ;;  %v2592_v60 = vand.u32 3, %v2591_v57  ;;  %vm2745_vm1 = vweird.f32 %v9911_v62  ;;  %v5254_v57 = vld [vmem:[%s9915_s19 + $0x40] sm:$0xf] }
 0x22e   : > { %2411 = vmatmul.bf16.vlgmr.msrb.gmra.mxu0 %v2305_v11  ;;  %2425 = vmatmul.bf16.vlgmr.msrb.gmra.mxu1 %v2305_v11  ;;  %v2711_v6 = vsel %vm5155_vm8, 0, %v5154_v50  ;;  %v5339_v47 = vor.u32 %v6030_v2, %v5336_v9  ;;  %v5232_v2 = vld [vmem:[%s9915_s19 + $0x18] sm:$0xf0] }
 0x22f   : > { %v2583_v49 = vmul.f32 -0.00019511016, %v2575_v14  ;;  %v2712_v59 = vsub.s32 32, %v2711_v6  ;;  %v2716_v43 = vsub.s32 4294967266, %v2711_v6  ;;  %v2713_v5 = vshll.u32 %v2704_v63, %v2711_v6 }
 0x230   : > { %v2576_v27 = vmul.f32 -0.001358992, %v2575_v14  ;;  %v2729_v63 = vsel %vm8779_vm10, 0, %v2727_v35  ;;  %vm2594_vm6 = vcmp.eq.s32.totalorder %v2592_v60, 0  ;;  %vm2597_vm13 = vcmp.eq.s32.totalorder %v2592_v60, 2 }
 0x231   : > { %v2714_v8 = vshrl.u32 %v2696_v0, %v2712_v59  ;;  %v2584_v42 = vadd.f32 0.008332121, %v2583_v49  ;;  %v2717_v21 = vadd.s32 127, %v2716_v43  ;;  %v2746_v30 = vadd.s32 3, %v2729_v63  ;;  %v6011_v63 = vld [vmem:[%s9915_s19 + $0x44] sm:$0xf0] }
 0x232   : > { %v2577_v41 = vadd.f32 0.041655596, %v2576_v27  ;;  %vm2593_vm12 = vcmp.lt.s32.totalorder %v2592_v60, 2  ;;  %v6033_v27 = vld [vmem:[%s9915_s19 + $0xf4] sm:$0xf0] }
 0x233   : > { %v2715_v56 = vor.u32 %v2714_v8, %v2713_v5  ;;  %v2718_v13 = vshll.u32 %v2717_v21, 23  ;;  %v2585_v39 = vmul.f32 %v2584_v42, %v2575_v14  ;;  %v2747_v24 = vand.u32 3, %v2746_v30  ;;  %v5278_v42 = vld [vmem:[%s9915_s19 + $0x70] sm:$0xf]  ;;  %v6017_v5 = vld [vmem:[%s9915_s19 + $0x74] sm:$0xf0] }
 0x234   : > { %v2578_v16 = vmul.f32 %v2577_v41, %v2575_v14  ;;  %v5279_v21 = vor.u32 %v6017_v5, %v5278_v42  ;;  %v6032_v41 = vld [vmem:[%s9915_s19 + $0xf4] sm:$0xf]  ;;  %v6026_v60 = vld [vmem:[%s9915_s19 + $0xc4] sm:$0xf]  ;;  %v5302_v42 = vld [vmem:[%s9915_s19 + $0xa0] sm:$0xf] }
 0x235   : > { %v2719_v25 = vor.u32 4788187, %v2718_v13  ;;  %v2722_v48 = vcvt.s32.f32 %v2715_v56  ;;  %v2586_v12 = vadd.f32 -0.16666654, %v2585_v39  ;;  %vm2749_vm7 = vcmp.eq.s32.totalorder %v2747_v24, 0 }
 0x236   : > { %v2579_v44 = vadd.f32 -0.4999988, %v2578_v16  ;;  %vm2752_vm15 = vcmp.eq.s32.totalorder %v2747_v24, 2  ;;  %vm2748_vm14 = vcmp.lt.s32.totalorder %v2747_v24, 2  ;;  %v6016_v56 = vld [vmem:[%s9915_s19 + $0x74] sm:$0xf]  ;;  %v5343_v39 = vor.u32 %v6033_v27, %v5342_v51  ;;  %3101 = vmatpush.bf16.msra.mxu0 %v5279_v21 }
 0x237   : > { %v2720_v46 = vand.u32 2147483647, %v2719_v25  ;;  %v2587_v32 = vmul.f32 %v2586_v12, %v2575_v14  ;;  %v5280_v13 = vld [vmem:[%s9915_s19 + $0x78] sm:$0xf0]  ;;  %v6031_v16 = vld [vmem:[%s9915_s19 + $0xe4] sm:$0xf0] }
 0x238   : > { %v2580_v40 = vmul.f32 %v2579_v44, %v2575_v14  ;;  %v5283_v25 = vor.u32 %v6016_v56, %v5280_v13  ;;  %3115 = vmatpush.bf16.msra.mxu1 %v5343_v39  ;;  %v6013_v44 = vld [vmem:[%s9915_s19 + $0x54] sm:$0xf0]  ;;  %v6023_v51 = vld [vmem:[%s9915_s19 + $0xa4] sm:$0xf0]  ;;  %v6006_v21 = vld [vmem:[%s9915_s19 + $0x24] sm:$0xf] }
 0x239   : > { %v2723_v1 = vmul.f32 %v2722_v48, %v2720_v46  ;;  %v2588_v38 = vadd.f32 1.0, %v2587_v32  ;;  %v5344_v46 = vld [vmem:[%s9915_s19 + $0xf8] sm:$0xf0]  ;;  %v5270_v48 = vld [vmem:[%s9915_s19 + $0x60] sm:$0xf]  ;;  %v8901_v24 = vpop.f32.mrf.mxu1  ;;  %v5303_v56 = vor.u32 %v6023_v51, %v5302_v42 }
 0x23a   : > { %v2581_v33 = vadd.f32 1.0, %v2580_v40  ;;  %v5347_v12 = vor.u32 %v6032_v41, %v5344_v46  ;;  %3129 = vmatpush.bf16.msra.mxu2 %v5283_v25  ;;  %v6014_v32 = vld [vmem:[%s9915_s19 + $0x64] sm:$0xf]  ;;  %v5240_v27 = vld [vmem:[%s9915_s19 + $0x28] sm:$0xf0] }
 0x23b   : > { %v2724_v10 = vxor.u32 2147483648, %v2723_v1  ;;  %v2589_v20 = vmul.f32 %v2588_v38, %v2573_v37  ;;  %v6029_v38 = vld [vmem:[%s9915_s19 + $0xd4] sm:$0xf0]  ;;  %v5243_v13 = vor.u32 %v6006_v21, %v5240_v27  ;;  %v6022_v39 = vld [vmem:[%s9915_s19 + $0xa4] sm:$0xf] }
 0x23c   : > { %v2598_v28 = vxor.u32 2147483648, %v2581_v33  ;;  %3143 = vmatpush.bf16.msra.mxu3 %v5347_v12  ;;  %v5304_v25 = vld [vmem:[%s9915_s19 + $0xa8] sm:$0xf0]  ;;  %v5230_v12 = vld [vmem:[%s9915_s19 + $0x10] sm:$0xf] }
 0x23d   : > { %v2725_v22 = vsel %vm2604_vm0, %v2724_v10, %v2723_v1  ;;  %v2595_v61 = vxor.u32 2147483648, %v2589_v20  ;;  %v6015_v1 = vld [vmem:[%s9915_s19 + $0x64] sm:$0xf0]  ;;  %v5307_v41 = vor.u32 %v6022_v39, %v5304_v25 }
 0x23e   : > { %v2728_v36 = vsel %vm8779_vm10, %v9911_v62, %v2725_v22  ;;  %v2599_v11 = vsel %vm2597_vm13, %v2598_v28, %v2589_v20  ;;  %v5271_v10 = vor.u32 %v6015_v1, %v5270_v48  ;;  %v5335_v62 = vor.u32 %v6031_v16, %v5334_v53  ;;  %v5246_v28 = vld [vmem:[%s9915_s19 + $0x30] sm:$0xf]  ;;  %v6005_v1 = vld [vmem:[%s9915_s19 + $0x14] sm:$0xf0] }
 0x23f   : > { %v2730_v17 = vmul.f32 %v2728_v36, %v2728_v36  ;;  %v2596_v58 = vsel %vm2594_vm6, %v2581_v33, %v2595_v61  ;;  %v5275_v22 = vor.u32 %v6014_v32, %v5272_v3  ;;  %v5255_v33 = vor.u32 %v6011_v63, %v5254_v57  ;;  %v5294_v53 = vld [vmem:[%s9915_s19 + $0x90] sm:$0xf]  ;;  %v6021_v32 = vld [vmem:[%s9915_s19 + $0x94] sm:$0xf0]  ;;  %v6004_v3 = vld [vmem:[%s9915_s19 + $0x14] sm:$0xf] }
 0x240   : > { %v2600_v50 = vsel %vm2593_vm12, %v2596_v58, %v2599_v11  ;;  %3102 = vmatpush.bf16.msra.mxu0 %v5271_v10  ;;  %3116 = vmatpush.bf16.msra.mxu1 %v5335_v62  ;;  %v6008_v11 = vld [vmem:[%s9915_s19 + $0x34] sm:$0xf]  ;;  %v5231_v62 = vor.u32 %v6005_v1, %v5230_v12  ;;  %v5235_v9 = vor.u32 %v6004_v3, %v5232_v2  ;;  %vm3207_vm6 = vcmask 31744  }
 0x241   : > { %v2731_v15 = vmul.f32 -0.001358992, %v2730_v17  ;;  %v2738_v55 = vmul.f32 -0.00019511016, %v2730_v17  ;;  %v2601_v59 = vsel %vm2590_vm3, nan, %v2600_v50  ;;  %3130 = vmatpush.bf16.msra.mxu2 %v5275_v22  ;;  %3144 = vmatpush.bf16.msra.mxu3 %v5339_v47  ;;  %v1872_v10 = vpop.f32.mrf.mxu1  ;;  %v5295_v22 = vor.u32 %v6021_v32, %v5294_v53 }
 0x242   : > { %v5248_v50 = vld [vmem:[%s9915_s19 + $0x38] sm:$0xf0]  ;;  %v6020_v47 = vld [vmem:[%s9915_s19 + $0x94] sm:$0xf] }
 0x243   : > { %v2732_v29 = vadd.f32 0.041655596, %v2731_v15  ;;  %v2739_v45 = vadd.f32 0.008332121, %v2738_v55  ;;  %v6012_v15 = vld [vmem:[%s9915_s19 + $0x54] sm:$0xf] }
 0x244   : > { %v5264_v55 = vld [vmem:[%s9915_s19 + $0x58] sm:$0xf0] }
 0x245   : > { %v2733_v31 = vmul.f32 %v2732_v29, %v2730_v17  ;;  %v2740_v26 = vmul.f32 %v2739_v45, %v2730_v17  ;;  %v5267_v40 = vor.u32 %v6012_v15, %v5264_v55  ;;  %v6028_v29 = vld [vmem:[%s9915_s19 + $0xd4] sm:$0xf]  ;;  %v5328_v45 = vld [vmem:[%s9915_s19 + $0xd8] sm:$0xf0]  ;;  %v6019_v15 = vld [vmem:[%s9915_s19 + $0x84] sm:$0xf0] }
 0x246   : > { %v5331_v20 = vor.u32 %v6028_v29, %v5328_v45  ;;  %v5224_v29 = vld [vmem:[%s9915_s19 + $0x8] sm:$0xf0]  ;;  %v6018_v45 = vld [vmem:[%s9915_s19 + $0x84] sm:$0xf] }
 0x247   : > { %v2734_v18 = vadd.f32 -0.4999988, %v2733_v31  ;;  %v2741_v4 = vadd.f32 -0.16666654, %v2740_v26  ;;  %v5318_v31 = vld [vmem:[%s9915_s19 + $0xc0] sm:$0xf]  ;;  %3131 = vmatpush.bf16.msra.mxu2 %v5267_v40 }
 0x248   : > { %v6027_v26 = vld [vmem:[%s9915_s19 + $0xc4] sm:$0xf0]  ;;  %3145 = vmatpush.bf16.msra.mxu3 %v5331_v20  ;;  %v6002_v40 = vld [vmem:[%s9915_s19 + $0x4] sm:$0xf]  ;;  %v5288_v20 = vld [vmem:[%s9915_s19 + $0x88] sm:$0xf0] }
 0x249   : > { %v2735_v23 = vmul.f32 %v2734_v18, %v2730_v17  ;;  %v2742_v19 = vmul.f32 %v2741_v4, %v2730_v17  ;;  %v5326_v17 = vld [vmem:[%s9915_s19 + $0xd0] sm:$0xf]  ;;  %v6010_v18 = vld [vmem:[%s9915_s19 + $0x44] sm:$0xf]  ;;  %v5256_v4 = vld [vmem:[%s9915_s19 + $0x48] sm:$0xf0]  ;;  %v5319_v30 = vor.u32 %v6027_v26, %v5318_v31  ;;  %v5227_v57 = vor.u32 %v6002_v40, %v5224_v29 }
 0x24a   : > { %v5327_v35 = vor.u32 %v6029_v38, %v5326_v17  ;;  %v5259_v61 = vor.u32 %v6010_v18, %v5256_v4  ;;  %v5286_v38 = vld [vmem:[%s9915_s19 + $0x80] sm:$0xf]  ;;  %v5291_v63 = vor.u32 %v6018_v45, %v5288_v20 }
 0x24b   : > { %v2736_v52 = vadd.f32 1.0, %v2735_v23  ;;  %v2743_v7 = vadd.f32 1.0, %v2742_v19  ;;  %v5320_v23 = vld [vmem:[%s9915_s19 + $0xc8] sm:$0xf0] }
 0x24c   : > { %3117 = vmatpush.bf16.msra.mxu1 %v5327_v35  ;;  %v5323_v19 = vor.u32 %v6026_v60, %v5320_v23  ;;  %3132 = vmatpush.bf16.msra.mxu2 %v5259_v61  ;;  %v5287_v35 = vor.u32 %v6019_v15, %v5286_v38  ;;  %v2887_v23 = vld [vmem:[%s9916_s23] sm:$0x3] }
 0x24d   : > { %v2744_v34 = vmul.f32 %v2743_v7, %v2728_v36  ;;  %v2753_v37 = vxor.u32 2147483648, %v2736_v52  ;;  %v5262_v36 = vld [vmem:[%s9915_s19 + $0x50] sm:$0xf]  ;;  %v8899_v7 = vpop.f32.mrf.mxu0 }
 0x24e   : > { %v5263_v54 = vor.u32 %v6013_v44, %v5262_v36  ;;  %3146 = vmatpush.bf16.msra.mxu3 %v5323_v19  ;;  %v5296_v36 = vld [vmem:[%s9915_s19 + $0x98] sm:$0xf0]  ;;  %v5222_v44 = vld [vmem:[%s9915_s19] sm:$0xf] }
 0x24f   : > { %v2750_v14 = vxor.u32 2147483648, %v2744_v34  ;;  %v2754_v6 = vsel %vm2752_vm15, %v2753_v37, %v2744_v34  ;;  %v5310_v34 = vld [vmem:[%s9915_s19 + $0xb0] sm:$0xf]  ;;  %v6025_v37 = vld [vmem:[%s9915_s19 + $0xb4] sm:$0xf0]  ;;  %v5299_v17 = vor.u32 %v6020_v47, %v5296_v36 }
 0x250   : > { %3103 = vmatpush.bf16.msra.mxu0 %v5263_v54  ;;  %3118 = vmatpush.bf16.msra.mxu1 %v5319_v30  ;;  %v6003_v54 = vld [vmem:[%s9915_s19 + $0x4] sm:$0xf0] }
 0x251   : > { %v2751_v49 = vsel %vm2749_vm7, %v2736_v52, %v2750_v14  ;;  %v6009_v52 = vld [vmem:[%s9915_s19 + $0x34] sm:$0xf0]  ;;  %v5311_v14 = vor.u32 %v6025_v37, %v5310_v34  ;;  %v5223_v55 = vor.u32 %v6003_v54, %v5222_v44 }
 0x252   : > { %v2755_v0 = vsel %vm2748_vm14, %v2751_v49, %v2754_v6  ;;  %v5247_v58 = vor.u32 %v6009_v52, %v5246_v28  ;;  %v6024_v49 = vld [vmem:[%s9915_s19 + $0xb4] sm:$0xf]  ;;  %v5312_v6 = vld [vmem:[%s9915_s19 + $0xb8] sm:$0xf0] }
 0x253   : > { %v2756_v43 = vsel %vm2745_vm1, nan, %v2755_v0  ;;  %v5251_v0 = vor.u32 %v6008_v11, %v5248_v50 }
 0x254   : > { %v2757_v8 = vpack.c.bf16 %v2756_v43, %v2601_v59  ;;  %3104 = vmatpush.bf16.msra.mxu0 %v5255_v33  ;;  %v5315_v59 = vor.u32 %v6024_v49, %v5312_v6  ;;  %v5238_v43 = vld [vmem:[%s9915_s19 + $0x20] sm:$0xf]  ;;  %3119 = vmatpush.bf16.msra.mxu1 %v5311_v14  ;;  %v2889_v14 = vperm.slane %v2887_v23, 0  ;;  %v2890_v49 = vperm.slane %v2887_v23, 1 }
 0x255   : > { %3133 = vmatpush.bf16.msra.mxu2 %v5251_v0  ;;  %v1858_v16 = vpop.f32.mrf.mxu0 }
 0x256   : > { %2863 = vmatmul.bf16.vlgmr.msrb.gmra.mxu2 %v2757_v8  ;;  %2877 = vmatmul.bf16.vlgmr.msrb.gmra.mxu3 %v2757_v8  ;;  %v6007_v8 = vld [vmem:[%s9915_s19 + $0x24] sm:$0xf0] }
 0x257   : > { %v5239_v5 = vor.u32 %v6007_v8, %v5238_v43  ;;  %3147 = vmatpush.bf16.msra.mxu3 %v5315_v59 }
 0x258   : > { %3105 = vmatpush.bf16.msra.mxu0 %v5247_v58  ;;  %3120 = vmatpush.bf16.msra.mxu1 %v5303_v56 }
 0x259   : > { %3134 = vmatpush.bf16.msra.mxu2 %v5243_v13 }
 0x25b   : > { %3148 = vmatpush.bf16.msra.mxu3 %v5307_v41  ;;  %v3161_v41 = vld [vmem:[%s7123_s9] sm:$0xff] }
 0x25c   : > { %3106 = vmatpush.bf16.msra.mxu0 %v5239_v5  ;;  %3121 = vmatpush.bf16.msra.mxu1 %v5295_v22 }
 0x25d   : > { %3135 = vmatpush.bf16.msra.mxu2 %v5235_v9 }
 0x25f   : > { %3149 = vmatpush.bf16.msra.mxu3 %v5299_v17 }
 0x260   : > { %3107 = vmatpush.bf16.msra.mxu0 %v5231_v62  ;;  %3122 = vmatpush.bf16.msra.mxu1 %v5287_v35  ;;  %v2935_v62 = vld [vmem:[%s9917_s0] sm:$0x3] }
 0x261   : > { %3136 = vmatpush.bf16.msra.mxu2 %v5227_v57  ;;  %v2937_v2 = vperm.slane %v2935_v62, 0  ;;  %v2938_v54 = vperm.slane %v2935_v62, 1 }
 0x263   : > { %3150 = vmatpush.bf16.msra.mxu3 %v5291_v63 }
 0x264   : > { %3108 = vmatpush.bf16.msra.mxu0 %v5223_v55 }
 0x28e   : > { %v1964_v46 = vpop.f32.mrf.mxu2  ;;  %v1978_v48 = vpop.f32.mrf.mxu3 }
 0x28f   : > { %v1965_v30 = vadd.f32 %v1964_v46, %v8899_v7  ;;  %v1979_v61 = vadd.f32 %v1978_v48, %v8901_v24  ;;  %v3162_v46 = vld [vmem:[%s7123_s9 + $0x8] sm:$0xff]  ;;  %v3163_v48 = vmax.f32 %v3161_v41, 0.0 }
 0x290   : > { %v3164_v12 = vmax.f32 %v3162_v46, 0.0 }
 0x291   : > { %v3165_v1 = vmin.f32 %v3163_v48, 1.0 }
 0x292   : > { %v3166_v53 = vmin.f32 %v3164_v12, 1.0 }
 0x296   : > { %v1966_v31 = vpop.f32.mrf.mxu2  ;;  %v1980_v26 = vpop.f32.mrf.mxu3 }
 0x297   : > { %v1967_v52 = vadd.f32 %v1966_v31, %v1858_v16  ;;  %v1981_v58 = vadd.f32 %v1980_v26, %v1872_v10  ;;  %v3169_v16 = vsub.f32 1.0, %v3165_v1  ;;  %v3170_v10 = vsub.f32 1.0, %v3166_v53 }
 0x299   : > { %v3171_v32 = vmax.f32 %v3169_v16, 0.0001  ;;  %v3172_v3 = vmax.f32 %v3170_v10, 0.0001 }
 0x29b   : > { %6361 = vrcp.f32 %v3171_v32  ;;  %vm3178_vm4 = vweird.f32 %v3171_v32  ;;  %v3184_v15 = vand.u32 2147483648, %v3171_v32  ;;  %v3182_v40 = vand.u32 2147483647, %v3171_v32 }
 0x29c   : > { %6363 = vrcp.f32 %v3172_v3  ;;  %v3199_v29 = vand.u32 2147483648, %v3172_v3  ;;  %vm3193_vm11 = vweird.f32 %v3172_v3  ;;  %v3197_v63 = vand.u32 2147483647, %v3172_v3 }
 0x29d   : > { %vm3183_vm8 = vcmp.eq.f32.partialorder %v3182_v40, 8.507059e+37 }
 0x29e   : > { %vm3198_vm10 = vcmp.eq.f32.partialorder %v3197_v63, 8.507059e+37 }
 0x2a1   : > { %v6362_v36 = vpop.eup %6361 }
 0x2a2   : > { %v6364_v17 = vpop.eup %6363  ;;  %v3174_v38 = vmul.f32 %v6362_v36, %v3171_v32  ;;  %vm3179_vm5 = vweird.f32 %v6362_v36 }
 0x2a3   : > { %v3189_v55 = vmul.f32 %v6364_v17, %v3172_v3  ;;  %vm3194_vm9 = vweird.f32 %v6364_v17  ;;  %vm9004_vm2 = vmor %vm3178_vm4, %vm3179_vm5 }
 0x2a4   : > { %v3175_v35 = vsub.f32 1.0, %v3174_v38  ;;  %vm3195_vm0 = vmor %vm3193_vm11, %vm3194_vm9 }
 0x2a5   : > { %v3190_v20 = vsub.f32 1.0, %v3189_v55 }
 0x2ab   : > { %v2412_v33 = vpop.f32.mrf.mxu0  ;;  %v2426_v18 = vpop.f32.mrf.mxu1 }
 0x2ac   : > { %v2431_v19 = vadd.f32 %v2412_v33, %v1965_v30  ;;  %v2432_v28 = vadd.f32 %v2426_v18, %v1979_v61  ;;  %v3176_v33 = vmul.f32 %v6362_v36, %v3175_v35  ;;  %v3185_v30 = vor.u32 1.1754944e-38, %v3184_v15 }
 0x2ad   : > { %v3191_v61 = vmul.f32 %v6364_v17, %v3190_v20 }
 0x2b3   : > { %v2414_v34 = vpop.f32.mrf.mxu0  ;;  %v2428_v37 = vpop.f32.mrf.mxu1 }
 0x2b4   : > { %v2433_v6 = vadd.f32 %v2414_v34, %v1967_v52  ;;  %v2434_v0 = vadd.f32 %v2428_v37, %v1981_v58  ;;  %v3200_v52 = vor.u32 1.1754944e-38, %v3199_v29  ;;  %v3168_v34 = vmax.f32 %v3166_v53, 0.0001 }
 0x2b5   : > { %v3192_v37 = vadd.f32 %v6364_v17, %v3191_v61 }
 0x2d9   : > { %v2864_v4 = vpop.f32.mrf.mxu2  ;;  %v2878_v60 = vpop.f32.mrf.mxu3 }
 0x2da   : > { %v2883_v11 = vadd.f32 %v2864_v4, %v2431_v19  ;;  %v2884_v50 = vadd.f32 %v2878_v60, %v2432_v28  ;;  %v3167_v4 = vmax.f32 %v3165_v1, 0.0001  ;;  %v3177_v28 = vadd.f32 %v6362_v36, %v3176_v33 }
 0x2dc   : > { %v2893_v43 = vadd.f32 %v2889_v14, %v2883_v11  ;;  %v2894_v24 = vadd.f32 %v2890_v49, %v2884_v50  ;;  %v3181_v11 = vsel %vm9004_vm2, %v6362_v36, %v3177_v28  ;;  %v3196_v50 = vsel %vm3195_vm0, %v6364_v17, %v3192_v37 }
 0x2de   : > { %v2897_v21 = vmax.f32 %v2893_v43, 0.0  ;;  %v2898_v27 = vmax.f32 %v2894_v24, 0.0 }
 0x2e1   : > { %v2866_v59 = vpop.f32.mrf.mxu2  ;;  %v2880_v7 = vpop.f32.mrf.mxu3 }
 0x2e2   : > { %v2885_v8 = vadd.f32 %v2866_v59, %v2433_v6  ;;  %v2886_v42 = vadd.f32 %v2880_v7, %v2434_v0  ;;  %v3201_v6 = vsel %vm3198_vm10, %v3200_v52, %v3196_v50 }
 0x2e3   : > { %v3202_v59 = vmul.f32 %v3201_v6, %v3168_v34 }
 0x2e4   : > { %v2895_v5 = vadd.f32 %v2889_v14, %v2885_v8  ;;  %v2896_v51 = vadd.f32 %v2890_v49, %v2886_v42  ;;  %v3186_v14 = vsel %vm3183_vm8, %v3185_v30, %v3181_v11 }
 0x2e5   : > { %v3187_v49 = vmul.f32 %v3186_v14, %v3167_v4 }
 0x2e6   : > { %v2899_v56 = vmax.f32 %v2895_v5, 0.0  ;;  %v2900_v13 = vmax.f32 %v2896_v51, 0.0 }
 0x2e7   : > { %6365 = vlog2.f32 %v3187_v49 }
 0x2e8   : > { %v2901_v39 = vpack.c.bf16 %v2899_v56, %v2897_v21  ;;  %v2902_v25 = vpack.c.bf16 %v2900_v13, %v2898_v27  ;;  %6367 = vlog2.f32 %v3202_v59 }
 0x2ea   : > { %3109 = vmatmul.bf16.vlgmr.msra.gmra.mxu0 %v2901_v39  ;;  %3123 = vmatmul.bf16.vlgmr.msra.gmra.mxu1 %v2902_v25 }
 0x2eb   : > { %3137 = vmatmul.bf16.vlgmr.msra.gmra.mxu2 %v2901_v39  ;;  %3151 = vmatmul.bf16.vlgmr.msra.gmra.mxu3 %v2902_v25 }
 0x2ed   : > { %v6366_v8 = vpop.eup %6365 }
 0x2ee   : > { %v6368_v42 = vpop.eup %6367  ;;  %v3204_v5 = vmul.f32 0.6931472, %v6366_v8 }
 0x2ef   : > { %v3206_v51 = vmul.f32 0.6931472, %v6368_v42 }
 0x2f0   : > { %3208 = vst.msk [vmem:[#allocation4] sm:$0xff] %vm3207_vm6, %v3204_v5 }
 0x2f1   : > { %3209 = vst.msk [vmem:[#allocation4 + $0x8] sm:$0xff] %vm3207_vm6, %v3206_v51 }
 0x367   : > { %v3110_v22 = vpop.f32.mrf.mxu0  ;;  %v3124_v9 = vpop.f32.mrf.mxu1 }
 0x368   : > { %v3111_v47 = vadd.f32 %v3110_v22, %v2937_v2 }
 0x36a   : > { %v3125_v44 = vadd.f32 %v3124_v9, %v3111_v47 }
 0x36c   : > { %3157 = vst [vmem:[#allocation3] sm:$0xff] %v3125_v44 }
 0x36e   : > { %v3138_v45 = vpop.f32.mrf.mxu2  ;;  %v3152_v57 = vpop.f32.mrf.mxu3 }
 0x36f   : > { %v3139_v31 = vadd.f32 %v3138_v45, %v2938_v54  ;;  %v3112_v26 = vpop.f32.mrf.mxu0  ;;  %v3126_v19 = vpop.f32.mrf.mxu1 }
 0x370   : > { %v3113_v18 = vadd.f32 %v3112_v26, %v2937_v2 }
 0x371   : > { %v3153_v23 = vadd.f32 %v3152_v57, %v3139_v31 }
 0x372   : > { %v3127_v58 = vadd.f32 %v3126_v19, %v3113_v18 }
 0x373   : > { %3158 = vst [vmem:[#allocation3 + $0x18] sm:$0xff] %v3153_v23 }
 0x374   : > { %3159 = vst [vmem:[#allocation3 + $0x8] sm:$0xff] %v3127_v58 }
 0x376   : > { %v3140_v0 = vpop.f32.mrf.mxu2  ;;  %v3154_v43 = vpop.f32.mrf.mxu3 }
 0x377   : > { %v3141_v7 = vadd.f32 %v3140_v0, %v2938_v54 }
 0x379   : > { %v3155_v24 = vadd.f32 %v3154_v43, %v3141_v7 }
 0x37b   : > { %3160 = vst [vmem:[#allocation3 + $0x10] sm:$0xff] %v3155_v24 }
 0x37c PF: > { %s9920_s9 = sld [smem:[#allocation38_spill]] }
 0x37d   : > { %s9921_s1 = sld [smem:[#allocation116_spill]] }
 0x37e   : > { %s9923_s17 = sld [smem:[#allocation118_spill]] }
 0x37f   : > { %s9926_s26 = sld [smem:[#allocation125_spill]] }
 0x380   : > { %s9927_s20 = sld [smem:[#allocation126_spill]] }
 0x381   : > { %s9929_s8 = sld [smem:[#allocation27_spill]] }
 0x382   : > { %v5406_v21 = vld [vmem:[%s9920_s9 + $0x70] sm:$0xf]  ;;  %v6049_v27 = vld [vmem:[%s9920_s9 + $0x74] sm:$0xf0]  ;;  %v6048_v25 = vld [vmem:[%s9920_s9 + $0x74] sm:$0xf] }
 0x383   : > { %v5470_v56 = vld [vmem:[%s9920_s9 + $0xf0] sm:$0xf]  ;;  %v5407_v13 = vor.u32 %v6049_v27, %v5406_v21  ;;  %v6065_v39 = vld [vmem:[%s9920_s9 + $0xf4] sm:$0xf0]  ;;  %v5408_v41 = vld [vmem:[%s9920_s9 + $0x78] sm:$0xf0]  ;;  %s9922_s16 = scalar_lea.vmem %s9921_s1, %s7126_s11 }
 0x384   : > { %v5471_v46 = vor.u32 %v6065_v39, %v5470_v56  ;;  %v5411_v48 = vor.u32 %v6048_v25, %v5408_v41  ;;  %v6064_v12 = vld [vmem:[%s9920_s9 + $0xf4] sm:$0xf]  ;;  %v5472_v1 = vld [vmem:[%s9920_s9 + $0xf8] sm:$0xf0]  ;;  %v5398_v53 = vld [vmem:[%s9920_s9 + $0x60] sm:$0xf]  ;;  %s9924_s25 = scalar_lea.vmem %s9923_s17, %s7126_s11 }
 0x385   : > { %3422 = vmatpush.bf16.msra.mxu0 %v5407_v13  ;;  %v5475_v16 = vor.u32 %v6064_v12, %v5472_v1  ;;  %v6047_v10 = vld [vmem:[%s9920_s9 + $0x64] sm:$0xf0]  ;;  %v5462_v62 = vld [vmem:[%s9920_s9 + $0xe0] sm:$0xf]  ;;  %v6046_v22 = vld [vmem:[%s9920_s9 + $0x64] sm:$0xf] }
 0x386   : > { %v6063_v32 = vld [vmem:[%s9920_s9 + $0xe4] sm:$0xf0]  ;;  %3436 = vmatpush.bf16.msra.mxu1 %v5471_v46  ;;  %3450 = vmatpush.bf16.msra.mxu2 %v5411_v48  ;;  %v5399_v3 = vor.u32 %v6047_v10, %v5398_v53  ;;  %v5400_v9 = vld [vmem:[%s9920_s9 + $0x68] sm:$0xf0]  ;;  %v6062_v47 = vld [vmem:[%s9920_s9 + $0xe4] sm:$0xf] }
 0x387   : > { %v5463_v2 = vor.u32 %v6063_v32, %v5462_v62  ;;  %3464 = vmatpush.bf16.msra.mxu3 %v5475_v16  ;;  %v5403_v36 = vor.u32 %v6046_v22, %v5400_v9  ;;  %v5464_v44 = vld [vmem:[%s9920_s9 + $0xe8] sm:$0xf0]  ;;  %v5390_v17 = vld [vmem:[%s9920_s9 + $0x50] sm:$0xf]  ;;  %v6045_v54 = vld [vmem:[%s9920_s9 + $0x54] sm:$0xf0] }
 0x388   : > { %v5467_v38 = vor.u32 %v6062_v47, %v5464_v44  ;;  %v5454_v15 = vld [vmem:[%s9920_s9 + $0xd0] sm:$0xf]  ;;  %v6061_v55 = vld [vmem:[%s9920_s9 + $0xd4] sm:$0xf0]  ;;  %v6044_v35 = vld [vmem:[%s9920_s9 + $0x54] sm:$0xf]  ;;  %v5391_v40 = vor.u32 %v6045_v54, %v5390_v17 }
 0x389   : > { %3423 = vmatpush.bf16.msra.mxu0 %v5399_v3  ;;  %v5392_v29 = vld [vmem:[%s9920_s9 + $0x58] sm:$0xf0]  ;;  %v6060_v45 = vld [vmem:[%s9920_s9 + $0xd4] sm:$0xf]  ;;  %v5455_v20 = vor.u32 %v6061_v55, %v5454_v15  ;;  %v5382_v31 = vld [vmem:[%s9920_s9 + $0x40] sm:$0xf] }
 0x38a   : > { %v5456_v57 = vld [vmem:[%s9920_s9 + $0xd8] sm:$0xf0]  ;;  %3437 = vmatpush.bf16.msra.mxu1 %v5463_v2  ;;  %3451 = vmatpush.bf16.msra.mxu2 %v5403_v36  ;;  %v5395_v63 = vor.u32 %v6044_v35, %v5392_v29  ;;  %v6043_v26 = vld [vmem:[%s9920_s9 + $0x44] sm:$0xf0]  ;;  %v5446_v33 = vld [vmem:[%s9920_s9 + $0xc0] sm:$0xf] }
 0x38b   : > { %3465 = vmatpush.bf16.msra.mxu3 %v5467_v38  ;;  %v5459_v18 = vor.u32 %v6060_v45, %v5456_v57  ;;  %v6059_v4 = vld [vmem:[%s9920_s9 + $0xc4] sm:$0xf0]  ;;  %v6042_v60 = vld [vmem:[%s9920_s9 + $0x44] sm:$0xf]  ;;  %v5384_v30 = vld [vmem:[%s9920_s9 + $0x48] sm:$0xf0]  ;;  %v5383_v19 = vor.u32 %v6043_v26, %v5382_v31 }
 0x38c   : > { %v6058_v61 = vld [vmem:[%s9920_s9 + $0xc4] sm:$0xf]  ;;  %v5448_v23 = vld [vmem:[%s9920_s9 + $0xc8] sm:$0xf0]  ;;  %v5447_v28 = vor.u32 %v6059_v4, %v5446_v33  ;;  %v5387_v52 = vor.u32 %v6042_v60, %v5384_v30  ;;  %v5374_v58 = vld [vmem:[%s9920_s9 + $0x30] sm:$0xf] }
 0x38d   : > { %3424 = vmatpush.bf16.msra.mxu0 %v5391_v40  ;;  %v6041_v34 = vld [vmem:[%s9920_s9 + $0x34] sm:$0xf0]  ;;  %v5438_v37 = vld [vmem:[%s9920_s9 + $0xb0] sm:$0xf]  ;;  %v5451_v11 = vor.u32 %v6058_v61, %v5448_v23  ;;  %v6040_v50 = vld [vmem:[%s9920_s9 + $0x34] sm:$0xf] }
 0x38e   : > { %3438 = vmatpush.bf16.msra.mxu1 %v5455_v20  ;;  %3452 = vmatpush.bf16.msra.mxu2 %v5395_v63  ;;  %v6057_v14 = vld [vmem:[%s9920_s9 + $0xb4] sm:$0xf0]  ;;  %v5376_v49 = vld [vmem:[%s9920_s9 + $0x38] sm:$0xf0]  ;;  %v6056_v6 = vld [vmem:[%s9920_s9 + $0xb4] sm:$0xf]  ;;  %v5375_v59 = vor.u32 %v6041_v34, %v5374_v58 }
 0x38f   : > { %3466 = vmatpush.bf16.msra.mxu3 %v5459_v18  ;;  %v5440_v0 = vld [vmem:[%s9920_s9 + $0xb8] sm:$0xf0]  ;;  %v5439_v7 = vor.u32 %v6057_v14, %v5438_v37  ;;  %v5379_v43 = vor.u32 %v6040_v50, %v5376_v49  ;;  %v5366_v24 = vld [vmem:[%s9920_s9 + $0x20] sm:$0xf]  ;;  %v6039_v8 = vld [vmem:[%s9920_s9 + $0x24] sm:$0xf0] }
 0x390   : > { %v5430_v42 = vld [vmem:[%s9920_s9 + $0xa0] sm:$0xf]  ;;  %v5443_v5 = vor.u32 %v6056_v6, %v5440_v0  ;;  %v6055_v51 = vld [vmem:[%s9920_s9 + $0xa4] sm:$0xf0]  ;;  %v6038_v21 = vld [vmem:[%s9920_s9 + $0x24] sm:$0xf]  ;;  %v5367_v39 = vor.u32 %v6039_v8, %v5366_v24 }
 0x391   : > { %3425 = vmatpush.bf16.msra.mxu0 %v5383_v19  ;;  %v5368_v27 = vld [vmem:[%s9920_s9 + $0x28] sm:$0xf0]  ;;  %v6054_v56 = vld [vmem:[%s9920_s9 + $0xa4] sm:$0xf]  ;;  %v5358_v25 = vld [vmem:[%s9920_s9 + $0x10] sm:$0xf]  ;;  %v5431_v46 = vor.u32 %v6055_v51, %v5430_v42 }
 0x392   : > { %3439 = vmatpush.bf16.msra.mxu1 %v5447_v28  ;;  %3453 = vmatpush.bf16.msra.mxu2 %v5387_v52  ;;  %v5432_v13 = vld [vmem:[%s9920_s9 + $0xa8] sm:$0xf0]  ;;  %v6037_v41 = vld [vmem:[%s9920_s9 + $0x14] sm:$0xf0]  ;;  %v5371_v48 = vor.u32 %v6038_v21, %v5368_v27  ;;  %v5422_v12 = vld [vmem:[%s9920_s9 + $0x90] sm:$0xf] }
 0x393   : > { %3467 = vmatpush.bf16.msra.mxu3 %v5451_v11  ;;  %v6053_v1 = vld [vmem:[%s9920_s9 + $0x94] sm:$0xf0]  ;;  %v6036_v53 = vld [vmem:[%s9920_s9 + $0x14] sm:$0xf]  ;;  %v5435_v16 = vor.u32 %v6054_v56, %v5432_v13  ;;  %v5360_v10 = vld [vmem:[%s9920_s9 + $0x18] sm:$0xf0]  ;;  %v5359_v47 = vor.u32 %v6037_v41, %v5358_v25 }
 0x394   : > { %v6052_v62 = vld [vmem:[%s9920_s9 + $0x94] sm:$0xf]  ;;  %v5424_v32 = vld [vmem:[%s9920_s9 + $0x98] sm:$0xf0]  ;;  %v5350_v3 = vld [vmem:[%s9920_s9] sm:$0xf]  ;;  %v5423_v15 = vor.u32 %v6053_v1, %v5422_v12  ;;  %v5363_v55 = vor.u32 %v6036_v53, %v5360_v10 }
 0x395   : > { %3426 = vmatpush.bf16.msra.mxu0 %v5375_v59  ;;  %v6035_v2 = vld [vmem:[%s9920_s9 + $0x4] sm:$0xf0]  ;;  %v9069_v22 = vld [vmem:[#allocation2 + $0x10] sm:$0xff]  ;;  %v9071_v9 = vld [vmem:[#allocation2 + $0x18] sm:$0xff]  ;;  %v5427_v45 = vor.u32 %v6052_v62, %v5424_v32  ;;  %s9930_s5 = sld [smem:[#allocation26_spill]]  ;;  %s6178_s0 = sshll.u32 %s9929_s8, 2 }
 0x396   : > { %3440 = vmatpush.bf16.msra.mxu1 %v5439_v7  ;;  %3454 = vmatpush.bf16.msra.mxu2 %v5379_v43  ;;  %v5414_v36 = vld [vmem:[%s9920_s9 + $0x80] sm:$0xf]  ;;  %v6051_v44 = vld [vmem:[%s9920_s9 + $0x84] sm:$0xf0]  ;;  %v3215_v40 = vld [vmem:[#allocation3 + $0x18] sm:$0xff]  ;;  %v5351_v60 = vor.u32 %v6035_v2, %v5350_v3  ;;  %s9933_s27 = sld [smem:[#allocation127_spill]] }
 0x397   : > { %3468 = vmatpush.bf16.msra.mxu3 %v5443_v5  ;;  %v3214_v17 = vld [vmem:[#allocation3] sm:$0xff]  ;;  %v3216_v54 = vld [vmem:[#allocation3 + $0x8] sm:$0xff]  ;;  %v3217_v29 = vld [vmem:[#allocation3 + $0x10] sm:$0xff]  ;;  %v5415_v28 = vor.u32 %v6051_v44, %v5414_v36  ;;  %s4583_s17 = sshll.u32 %s7166_s3, 4  ;;  %s4584_s17 = int_to_ptr.vmem [resolvable:$true] %s4583_s17 }
 0x398   : > { %v9075_v38 = vld [vmem:[#allocation2] sm:$0xff]  ;;  %v9077_v35 = vld [vmem:[#allocation2 + $0x8] sm:$0xff]  ;;  %v3218_v26 = vadd.f32 %v3214_v17, %v9069_v22  ;;  %v3220_v33 = vadd.f32 %v3216_v54, %v9071_v9  ;;  %v5526_v37 = vld [vmem:[%s7160_s22 + $0x60] sm:$0xf] }
 0x399   : > { %3427 = vmatpush.bf16.msra.mxu0 %v5367_v39  ;;  %v6034_v57 = vld [vmem:[%s9920_s9 + $0x4] sm:$0xf]  ;;  %v5352_v20 = vld [vmem:[%s9920_s9 + $0x8] sm:$0xf0]  ;;  %v5534_v18 = vld [vmem:[%s7160_s22 + $0x70] sm:$0xf]  ;;  %v3219_v30 = vadd.f32 %v3215_v40, %v9075_v38  ;;  %v3221_v61 = vadd.f32 %v3217_v29, %v9077_v35 }
 0x39a   : > { %3441 = vmatpush.bf16.msra.mxu1 %v5431_v46  ;;  %3455 = vmatpush.bf16.msra.mxu2 %v5371_v48  ;;  %v6050_v63 = vld [vmem:[%s9920_s9 + $0x84] sm:$0xf]  ;;  %v5416_v31 = vld [vmem:[%s9920_s9 + $0x88] sm:$0xf0]  ;;  %v6081_v4 = vld [vmem:[%s7160_s22 + $0x74] sm:$0xf0]  ;;  %v5355_v52 = vor.u32 %v6034_v57, %v5352_v20  ;;  %v3222_v50 = vpack.c.bf16 %v3220_v33, %v3218_v26 }
 0x39b   : > { %3469 = vmatpush.bf16.msra.mxu3 %v5435_v16  ;;  %v6080_v23 = vld [vmem:[%s7160_s22 + $0x74] sm:$0xf]  ;;  %v5536_v19 = vld [vmem:[%s7160_s22 + $0x78] sm:$0xf0]  ;;  %v5419_v58 = vor.u32 %v6050_v63, %v5416_v31  ;;  %v5535_v34 = vor.u32 %v6081_v4, %v5534_v18  ;;  %v5598_v11 = vld [vmem:[%s7160_s22 + $0xf0] sm:$0xf]  ;;  %v3223_v7 = vpack.c.bf16 %v3221_v61, %v3219_v30 }
 0x39c   : > { %v6097_v14 = vld [vmem:[%s7160_s22 + $0xf4] sm:$0xf0]  ;;  %v5539_v49 = vor.u32 %v6080_v23, %v5536_v19  ;;  %v6079_v6 = vld [vmem:[%s7160_s22 + $0x64] sm:$0xf0]  ;;  %v6096_v0 = vld [vmem:[%s7160_s22 + $0xf4] sm:$0xf] }
 0x39d   : > { %3428 = vmatpush.bf16.msra.mxu0 %v5359_v47  ;;  %v5600_v59 = vld [vmem:[%s7160_s22 + $0xf8] sm:$0xf0]  ;;  %v6078_v43 = vld [vmem:[%s7160_s22 + $0x64] sm:$0xf]  ;;  %v5528_v24 = vld [vmem:[%s7160_s22 + $0x68] sm:$0xf0]  ;;  %v5599_v8 = vor.u32 %v6097_v14, %v5598_v11  ;;  %v5527_v42 = vor.u32 %v6079_v6, %v5526_v37 }
 0x39e   : > { %3442 = vmatpush.bf16.msra.mxu1 %v5423_v15  ;;  %3456 = vmatpush.bf16.msra.mxu2 %v5363_v55  ;;  %v5603_v5 = vor.u32 %v6096_v0, %v5600_v59  ;;  %v5518_v51 = vld [vmem:[%s7160_s22 + $0x50] sm:$0xf]  ;;  %v5590_v21 = vld [vmem:[%s7160_s22 + $0xe0] sm:$0xf]  ;;  %v6095_v27 = vld [vmem:[%s7160_s22 + $0xe4] sm:$0xf0]  ;;  %v5531_v56 = vor.u32 %v6078_v43, %v5528_v24 }
 0x39f   : > { %3470 = vmatpush.bf16.msra.mxu3 %v5427_v45  ;;  %v6077_v13 = vld [vmem:[%s7160_s22 + $0x54] sm:$0xf0]  ;;  %v6094_v39 = vld [vmem:[%s7160_s22 + $0xe4] sm:$0xf]  ;;  %v5592_v25 = vld [vmem:[%s7160_s22 + $0xe8] sm:$0xf0]  ;;  %v5591_v48 = vor.u32 %v6095_v27, %v5590_v21 }
 0x3a0   : > { %v6076_v41 = vld [vmem:[%s7160_s22 + $0x54] sm:$0xf]  ;;  %v5520_v46 = vld [vmem:[%s7160_s22 + $0x58] sm:$0xf0]  ;;  %v5519_v12 = vor.u32 %v6077_v13, %v5518_v51  ;;  %v5595_v1 = vor.u32 %v6094_v39, %v5592_v25  ;;  %v5510_v16 = vld [vmem:[%s7160_s22 + $0x40] sm:$0xf] }
 0x3a1   : > { %3429 = vmatpush.bf16.msra.mxu0 %v5351_v60  ;;  %v5523_v53 = vor.u32 %v6076_v41, %v5520_v46  ;;  %v6075_v10 = vld [vmem:[%s7160_s22 + $0x44] sm:$0xf0]  ;;  %v6074_v62 = vld [vmem:[%s7160_s22 + $0x44] sm:$0xf]  ;;  %v5512_v32 = vld [vmem:[%s7160_s22 + $0x48] sm:$0xf0] }
 0x3a2   : > { %3443 = vmatpush.bf16.msra.mxu1 %v5415_v28  ;;  %3457 = vmatpush.bf16.msra.mxu2 %v5355_v52  ;;  %v5511_v3 = vor.u32 %v6075_v10, %v5510_v16  ;;  %v5515_v2 = vor.u32 %v6074_v62, %v5512_v32  ;;  %v5582_v47 = vld [vmem:[%s7160_s22 + $0xd0] sm:$0xf]  ;;  %v6093_v36 = vld [vmem:[%s7160_s22 + $0xd4] sm:$0xf0]  ;;  %v6092_v44 = vld [vmem:[%s7160_s22 + $0xd4] sm:$0xf] }
 0x3a3   : > { %3471 = vmatpush.bf16.msra.mxu3 %v5419_v58  ;;  %v5583_v17 = vor.u32 %v6093_v36, %v5582_v47  ;;  %v5584_v54 = vld [vmem:[%s7160_s22 + $0xd8] sm:$0xf0]  ;;  %v5502_v55 = vld [vmem:[%s7160_s22 + $0x30] sm:$0xf]  ;;  %v6073_v40 = vld [vmem:[%s7160_s22 + $0x34] sm:$0xf0] }
 0x3a4   : > { %3430 = vmatmul.bf16.vlgmr.msra.gmra.mxu0 %v3222_v50  ;;  %v5587_v15 = vor.u32 %v6092_v44, %v5584_v54  ;;  %v6072_v29 = vld [vmem:[%s7160_s22 + $0x34] sm:$0xf]  ;;  %v5503_v45 = vor.u32 %v6073_v40, %v5502_v55  ;;  %v5504_v57 = vld [vmem:[%s7160_s22 + $0x38] sm:$0xf0]  ;;  %v5574_v63 = vld [vmem:[%s7160_s22 + $0xc0] sm:$0xf] }
 0x3a5   : > { %3676 = vmatpush.bf16.msrb.mxu0 %v5535_v34  ;;  %3444 = vmatmul.bf16.vlgmr.msra.gmra.mxu1 %v3223_v7  ;;  %v5507_v20 = vor.u32 %v6072_v29, %v5504_v57  ;;  %v6091_v31 = vld [vmem:[%s7160_s22 + $0xc4] sm:$0xf0]  ;;  %v6090_v26 = vld [vmem:[%s7160_s22 + $0xc4] sm:$0xf]  ;;  %v5576_v18 = vld [vmem:[%s7160_s22 + $0xc8] sm:$0xf0] }
 0x3a6   : > { %3704 = vmatpush.bf16.msrb.mxu2 %v5539_v49  ;;  %3472 = vmatmul.bf16.vlgmr.msra.gmra.mxu3 %v3223_v7  ;;  %v5575_v33 = vor.u32 %v6091_v31, %v5574_v63  ;;  %v5579_v4 = vor.u32 %v6090_v26, %v5576_v18  ;;  %v5494_v60 = vld [vmem:[%s7160_s22 + $0x20] sm:$0xf]  ;;  %v6071_v30 = vld [vmem:[%s7160_s22 + $0x24] sm:$0xf0]  ;;  %v6070_v23 = vld [vmem:[%s7160_s22 + $0x24] sm:$0xf] }
 0x3a7   : > { %3458 = vmatmul.bf16.vlgmr.msra.gmra.mxu2 %v3222_v50  ;;  %3690 = vmatpush.bf16.msrb.mxu1 %v5599_v8  ;;  %v5495_v61 = vor.u32 %v6071_v30, %v5494_v60  ;;  %v5496_v19 = vld [vmem:[%s7160_s22 + $0x28] sm:$0xf0]  ;;  %v5566_v52 = vld [vmem:[%s7160_s22 + $0xb0] sm:$0xf]  ;;  %v6089_v58 = vld [vmem:[%s7160_s22 + $0xb4] sm:$0xf0] }
 0x3a8   : > { %3718 = vmatpush.bf16.msrb.mxu3 %v5603_v5  ;;  %v5499_v28 = vor.u32 %v6070_v23, %v5496_v19  ;;  %v6088_v34 = vld [vmem:[%s7160_s22 + $0xb4] sm:$0xf]  ;;  %v5567_v37 = vor.u32 %v6089_v58, %v5566_v52  ;;  %v5568_v11 = vld [vmem:[%s7160_s22 + $0xb8] sm:$0xf0]  ;;  %v5486_v50 = vld [vmem:[%s7160_s22 + $0x10] sm:$0xf] }
 0x3a9   : > { %3677 = vmatpush.bf16.msrb.mxu0 %v5527_v42  ;;  %v5571_v14 = vor.u32 %v6088_v34, %v5568_v11  ;;  %v6069_v49 = vld [vmem:[%s7160_s22 + $0x14] sm:$0xf0]  ;;  %v6068_v6 = vld [vmem:[%s7160_s22 + $0x14] sm:$0xf]  ;;  %v5488_v59 = vld [vmem:[%s7160_s22 + $0x18] sm:$0xf0] }
 0x3aa   : > { %3705 = vmatpush.bf16.msrb.mxu2 %v5531_v56  ;;  %v5487_v0 = vor.u32 %v6069_v49, %v5486_v50  ;;  %v5491_v7 = vor.u32 %v6068_v6, %v5488_v59  ;;  %v5558_v43 = vld [vmem:[%s7160_s22 + $0xa0] sm:$0xf]  ;;  %v6087_v24 = vld [vmem:[%s7160_s22 + $0xa4] sm:$0xf0]  ;;  %v6086_v8 = vld [vmem:[%s7160_s22 + $0xa4] sm:$0xf] }
 0x3ab   : > { %3691 = vmatpush.bf16.msrb.mxu1 %v5591_v48  ;;  %v5559_v42 = vor.u32 %v6087_v24, %v5558_v43  ;;  %v5560_v5 = vld [vmem:[%s7160_s22 + $0xa8] sm:$0xf0]  ;;  %v5478_v21 = vld [vmem:[%s7160_s22] sm:$0xf]  ;;  %v6067_v27 = vld [vmem:[%s7160_s22 + $0x4] sm:$0xf0] }
 0x3ac   : > { %3719 = vmatpush.bf16.msrb.mxu3 %v5595_v1  ;;  %v5563_v51 = vor.u32 %v6086_v8, %v5560_v5  ;;  %v6066_v56 = vld [vmem:[%s7160_s22 + $0x4] sm:$0xf]  ;;  %v5479_v13 = vor.u32 %v6067_v27, %v5478_v21  ;;  %v5480_v39 = vld [vmem:[%s7160_s22 + $0x8] sm:$0xf0]  ;;  %v5550_v41 = vld [vmem:[%s7160_s22 + $0x90] sm:$0xf] }
 0x3ad   : > { %3678 = vmatpush.bf16.msrb.mxu0 %v5519_v12  ;;  %v5483_v25 = vor.u32 %v6066_v56, %v5480_v39  ;;  %v6085_v46 = vld [vmem:[%s7160_s22 + $0x94] sm:$0xf0]  ;;  %v6084_v48 = vld [vmem:[%s7160_s22 + $0x94] sm:$0xf]  ;;  %v5552_v1 = vld [vmem:[%s7160_s22 + $0x98] sm:$0xf0] }
 0x3ae   : > { %3706 = vmatpush.bf16.msrb.mxu2 %v5523_v53  ;;  %v5551_v12 = vor.u32 %v6085_v46, %v5550_v41  ;;  %v5555_v53 = vor.u32 %v6084_v48, %v5552_v1  ;;  %v5542_v16 = vld [vmem:[%s7160_s22 + $0x80] sm:$0xf]  ;;  %v6083_v10 = vld [vmem:[%s7160_s22 + $0x84] sm:$0xf0]  ;;  %v6082_v62 = vld [vmem:[%s7160_s22 + $0x84] sm:$0xf] }
 0x3af   : > { %3692 = vmatpush.bf16.msrb.mxu1 %v5583_v17  ;;  %v5543_v32 = vor.u32 %v6083_v10, %v5542_v16  ;;  %v5662_v47 = vld [vmem:[%s7162_s29 + $0x70] sm:$0xf]  ;;  %v6113_v36 = vld [vmem:[%s7162_s29 + $0x74] sm:$0xf0]  ;;  %v6112_v44 = vld [vmem:[%s7162_s29 + $0x74] sm:$0xf] }
 0x3b0   : > { %3720 = vmatpush.bf16.msrb.mxu3 %v5587_v15  ;;  %v5663_v17 = vor.u32 %v6113_v36, %v5662_v47  ;;  %v5664_v54 = vld [vmem:[%s7162_s29 + $0x78] sm:$0xf0]  ;;  %v5654_v15 = vld [vmem:[%s7162_s29 + $0x60] sm:$0xf]  ;;  %v6111_v55 = vld [vmem:[%s7162_s29 + $0x64] sm:$0xf0] }
 0x3b1   : > { %3679 = vmatpush.bf16.msrb.mxu0 %v5511_v3  ;;  %v5544_v3 = vld [vmem:[%s7160_s22 + $0x88] sm:$0xf0]  ;;  %v5667_v40 = vor.u32 %v6112_v44, %v5664_v54  ;;  %v6110_v29 = vld [vmem:[%s7162_s29 + $0x64] sm:$0xf]  ;;  %v5726_v57 = vld [vmem:[%s7162_s29 + $0xf0] sm:$0xf] }
 0x3b2   : > { %3707 = vmatpush.bf16.msrb.mxu2 %v5515_v2  ;;  %v5547_v2 = vor.u32 %v6082_v62, %v5544_v3  ;;  %v6129_v63 = vld [vmem:[%s7162_s29 + $0xf4] sm:$0xf0]  ;;  %v6128_v31 = vld [vmem:[%s7162_s29 + $0xf4] sm:$0xf]  ;;  %v5728_v26 = vld [vmem:[%s7162_s29 + $0xf8] sm:$0xf0] }
 0x3b3   : > { %3693 = vmatpush.bf16.msrb.mxu1 %v5575_v33  ;;  %v5727_v18 = vor.u32 %v6129_v63, %v5726_v57  ;;  %v3256_v60 = vld [vmem:[%s9922_s16] sm:$0x3]  ;;  %v6109_v56 = vld [vmem:[%s7162_s29 + $0x54] sm:$0xf0]  ;;  %v5718_v41 = vld [vmem:[%s7162_s29 + $0xe0] sm:$0xf] }
 0x3b4   : > { %3721 = vmatpush.bf16.msrb.mxu3 %v5579_v4  ;;  %v5731_v4 = vor.u32 %v6128_v31, %v5728_v26  ;;  %v3259_v52 = vperm.slane %v3256_v60, 1  ;;  %v5646_v27 = vld [vmem:[%s7162_s29 + $0x50] sm:$0xf]  ;;  %v6127_v46 = vld [vmem:[%s7162_s29 + $0xe4] sm:$0xf0]  ;;  %s5927_s9 = sshll.u32 %s9930_s5, 3 }
 0x3b5   : > { %3680 = vmatpush.bf16.msrb.mxu0 %v5503_v45  ;;  %v5656_v45 = vld [vmem:[%s7162_s29 + $0x68] sm:$0xf0]  ;;  %v5647_v39 = vor.u32 %v6109_v56, %v5646_v27  ;;  %v6126_v1 = vld [vmem:[%s7162_s29 + $0xe4] sm:$0xf]  ;;  %v5638_v16 = vld [vmem:[%s7162_s29 + $0x40] sm:$0xf]  ;;  %s4580_s22 = sadd.s32 %s6178_s0, %s5927_s9 }
 0x3b6   : > { %3708 = vmatpush.bf16.msrb.mxu2 %v5507_v20  ;;  %v5655_v20 = vor.u32 %v6111_v55, %v5654_v15  ;;  %v5659_v33 = vor.u32 %v6110_v29, %v5656_v45  ;;  %v6107_v62 = vld [vmem:[%s7162_s29 + $0x44] sm:$0xf0]  ;;  %v5640_v3 = vld [vmem:[%s7162_s29 + $0x48] sm:$0xf0]  ;;  %v5710_v36 = vld [vmem:[%s7162_s29 + $0xd0] sm:$0xf] }
 0x3b7   : > { %3694 = vmatpush.bf16.msrb.mxu1 %v5567_v37  ;;  %v6125_v44 = vld [vmem:[%s7162_s29 + $0xd4] sm:$0xf0]  ;;  %v5712_v15 = vld [vmem:[%s7162_s29 + $0xd8] sm:$0xf0]  ;;  %v6104_v45 = vld [vmem:[%s7162_s29 + $0x34] sm:$0xf] }
 0x3b8   : > { %3722 = vmatpush.bf16.msrb.mxu3 %v5571_v14  ;;  %v5711_v54 = vor.u32 %v6125_v44, %v5710_v36  ;;  %v6105_v29 = vld [vmem:[%s7162_s29 + $0x34] sm:$0xf0]  ;;  %v5702_v31 = vld [vmem:[%s7162_s29 + $0xc0] sm:$0xf]  ;;  %v6123_v26 = vld [vmem:[%s7162_s29 + $0xc4] sm:$0xf0] }
 0x3b9   : > { %3681 = vmatpush.bf16.msrb.mxu0 %v5495_v61  ;;  %v3258_v61 = vperm.slane %v3256_v60, 0  ;;  %v5606_v27 = vld [vmem:[%s7162_s29] sm:$0xf]  ;;  %v6099_v56 = vld [vmem:[%s7162_s29 + $0x4] sm:$0xf0]  ;;  %s5928_s4 = sshll.u32 %s4580_s22, 3 }
 0x3ba   : > { %3709 = vmatpush.bf16.msrb.mxu2 %v5499_v28  ;;  %v3736_v44 = vld [vmem:[%s9924_s25] sm:$0x3]  ;;  %s4582_s2 = scalar_lea.hbm %s9933_s27, %s5928_s4  ;;  %s6584_s15 = scalar_lea.hbm %s9933_s27, 128 }
 0x3bb   : > { %3695 = vmatpush.bf16.msrb.mxu1 %v5559_v42  ;;  %s4585_s25 = sshll.u32 %s4582_s2, 4  ;;  %s4586_s25 = int_to_ptr.hbm [resolvable:$true] %s4585_s25 }
 0x3bc   : > { %3723 = vmatpush.bf16.msrb.mxu3 %v5563_v51  ;;  %s6578_s7 = sshra.s32 %s4586_s25, 4  ;;  %s6579_s7 = int_to_ptr.hbm [resolvable:$true] %s6578_s7 }
 0x3bd   : > { %3682 = vmatpush.bf16.msrb.mxu0 %v5487_v0  ;;  %p6585_p9 = scmp.lt.s32.totalorder %s6579_s7, %s9933_s27 }
 0x3be   : > { %3710 = vmatpush.bf16.msrb.mxu2 %v5491_v7 }
 0x3bf   : > { %3696 = vmatpush.bf16.msrb.mxu1 %v5551_v12  ;;  %v5719_v12 = vor.u32 %v6127_v46, %v5718_v41  ;;  %v5678_v46 = vld [vmem:[%s7162_s29 + $0x90] sm:$0xf] }
 0x3c0   : > { %3724 = vmatpush.bf16.msrb.mxu3 %v5555_v53  ;;  %v5720_v53 = vld [vmem:[%s7162_s29 + $0xe8] sm:$0xf0] }
 0x3c1   : > { %3683 = vmatpush.bf16.msrb.mxu0 %v5479_v13  ;;  %v6108_v13 = vld [vmem:[%s7162_s29 + $0x54] sm:$0xf]  ;;  %v5723_v10 = vor.u32 %v6126_v1, %v5720_v53  ;;  %v5680_v53 = vld [vmem:[%s7162_s29 + $0x98] sm:$0xf0] }
 0x3c2   : > { %3711 = vmatpush.bf16.msrb.mxu2 %v5483_v25  ;;  %v5648_v25 = vld [vmem:[%s7162_s29 + $0x58] sm:$0xf0] }
 0x3c3   : > { %3697 = vmatpush.bf16.msrb.mxu1 %v5543_v32  ;;  %v5651_v48 = vor.u32 %v6108_v13, %v5648_v25  ;;  %v6106_v32 = vld [vmem:[%s7162_s29 + $0x44] sm:$0xf]  ;;  %v5608_v25 = vld [vmem:[%s7162_s29 + $0x8] sm:$0xf0] }
 0x3c4   : > { %3725 = vmatpush.bf16.msrb.mxu3 %v5547_v2  ;;  %v5639_v2 = vor.u32 %v6107_v62, %v5638_v16  ;;  %v5643_v47 = vor.u32 %v6106_v32, %v5640_v3  ;;  %v6098_v13 = vld [vmem:[%s7162_s29 + $0x4] sm:$0xf]  ;;  %v6115_v62 = vld [vmem:[%s7162_s29 + $0x84] sm:$0xf0] }
 0x3c5   : > { %3950 = vmatpush.bf16.msra.mxu0 %v5663_v17  ;;  %v6124_v17 = vld [vmem:[%s7162_s29 + $0xd4] sm:$0xf]  ;;  %v5611_v41 = vor.u32 %v6098_v13, %v5608_v25  ;;  %v6114_v32 = vld [vmem:[%s7162_s29 + $0x84] sm:$0xf] }
 0x3c6   : > { %3978 = vmatpush.bf16.msra.mxu2 %v5667_v40  ;;  %v5715_v55 = vor.u32 %v6124_v17, %v5712_v15  ;;  %v5630_v40 = vld [vmem:[%s7162_s29 + $0x30] sm:$0xf]  ;;  %v3738_v15 = vperm.slane %v3736_v44, 0  ;;  %v6140_v13 = vld [vmem:[%s7164_s14 + $0x54] sm:$0xf] }
 0x3c7   : > { %3964 = vmatpush.bf16.msra.mxu1 %v5727_v18  ;;  %v5631_v57 = vor.u32 %v6105_v29, %v5630_v40  ;;  %v5703_v18 = vor.u32 %v6123_v26, %v5702_v31 }
 0x3c8   : > { %3992 = vmatpush.bf16.msra.mxu3 %v5731_v4  ;;  %v5704_v4 = vld [vmem:[%s7162_s29 + $0xc8] sm:$0xf0] }
 0x3c9   : > { %3951 = vmatpush.bf16.msra.mxu0 %v5655_v20  ;;  %v5632_v20 = vld [vmem:[%s7162_s29 + $0x38] sm:$0xf0] }
 0x3ca   : > { %3979 = vmatpush.bf16.msra.mxu2 %v5659_v33  ;;  %v5635_v63 = vor.u32 %v6104_v45, %v5632_v20  ;;  %v6122_v33 = vld [vmem:[%s7162_s29 + $0xc4] sm:$0xf]  ;;  %v3739_v20 = vperm.slane %v3736_v44, 1  ;;  %v5838_v44 = vld [vmem:[%s7164_s14 + $0xd0] sm:$0xf] }
 0x3cb   : > { %3965 = vmatpush.bf16.msra.mxu1 %v5719_v12  ;;  %v5707_v60 = vor.u32 %v6122_v33, %v5704_v4  ;;  %v6116_v12 = vld [vmem:[%s7162_s29 + $0x94] sm:$0xf] }
 0x3cc   : > { %3993 = vmatpush.bf16.msra.mxu3 %v5723_v10  ;;  %v5683_v16 = vor.u32 %v6116_v12, %v5680_v53  ;;  %v5670_v10 = vld [vmem:[%s7162_s29 + $0x80] sm:$0xf]  ;;  %v6159_v12 = vld [vmem:[%s7164_s14 + $0xe4] sm:$0xf0] }
 0x3cd   : > { %3952 = vmatpush.bf16.msra.mxu0 %v5647_v39  ;;  %v5607_v39 = vor.u32 %v6099_v56, %v5606_v27  ;;  %v5671_v3 = vor.u32 %v6115_v62, %v5670_v10  ;;  %v5774_v27 = vld [vmem:[%s7164_s14 + $0x50] sm:$0xf]  ;;  %v6141_v56 = vld [vmem:[%s7164_s14 + $0x54] sm:$0xf0] }
 0x3ce   : > { %3980 = vmatpush.bf16.msra.mxu2 %v5651_v48  ;;  %v6117_v48 = vld [vmem:[%s7162_s29 + $0x94] sm:$0xf0]  ;;  %v5775_v25 = vor.u32 %v6141_v56, %v5774_v27  ;;  %v6151_v27 = vld [vmem:[%s7164_s14 + $0xa4] sm:$0xf0]  ;;  %v6150_v56 = vld [vmem:[%s7164_s14 + $0xa4] sm:$0xf] }
 0x3cf   : > { %3966 = vmatpush.bf16.msra.mxu1 %v5711_v54  ;;  %v5679_v1 = vor.u32 %v6117_v48, %v5678_v46  ;;  %v5846_v48 = vld [vmem:[%s7164_s14 + $0xe0] sm:$0xf] }
 0x3d0   : > { %3994 = vmatpush.bf16.msra.mxu3 %v5715_v55  ;;  %v5847_v53 = vor.u32 %v6159_v12, %v5846_v48  ;;  %v6131_v48 = vld [vmem:[%s7164_s14 + $0x4] sm:$0xf0]  ;;  %v6130_v12 = vld [vmem:[%s7164_s14 + $0x4] sm:$0xf] }
 0x3d1   : > { %3953 = vmatpush.bf16.msra.mxu0 %v5639_v2  ;;  %v5672_v2 = vld [vmem:[%s7162_s29 + $0x88] sm:$0xf0] }
 0x3d2   : > { %3981 = vmatpush.bf16.msra.mxu2 %v5643_v47  ;;  %v5675_v47 = vor.u32 %v6114_v32, %v5672_v2  ;;  %v5766_v32 = vld [vmem:[%s7164_s14 + $0x40] sm:$0xf] }
 0x3d3   : > { %3967 = vmatpush.bf16.msra.mxu1 %v5703_v18 }
 0x3d4   : > { %3995 = vmatpush.bf16.msra.mxu3 %v5707_v60 }
 0x3d5   : > { %3954 = vmatpush.bf16.msra.mxu0 %v5631_v57 }
 0x3d6   : > { %3982 = vmatpush.bf16.msra.mxu2 %v5635_v63 }
 0x421   : > { %v3431_v30 = vpop.f32.mrf.mxu0 }
 0x422   : > { %v3445_v23 = vpop.f32.mrf.mxu1  ;;  %v3432_v19 = vadd.f32 %v3431_v30, %v3258_v61  ;;  %v5622_v30 = vld [vmem:[%s7162_s29 + $0x20] sm:$0xf] }
 0x424   : > { %v3446_v37 = vadd.f32 %v3445_v23, %v3432_v19  ;;  %v6102_v19 = vld [vmem:[%s7162_s29 + $0x24] sm:$0xf] }
 0x426   : > { %v3478_v6 = vmax.f32 %v3446_v37, 0.0  ;;  %v6120_v37 = vld [vmem:[%s7162_s29 + $0xb4] sm:$0xf] }
 0x429   : > { %v3473_v58 = vpop.f32.mrf.mxu3  ;;  %v3433_v34 = vpop.f32.mrf.mxu0 }
 0x42a   : > { %v3459_v28 = vpop.f32.mrf.mxu2  ;;  %v3434_v11 = vadd.f32 %v3433_v34, %v3258_v61  ;;  %v3447_v14 = vpop.f32.mrf.mxu1  ;;  %v6103_v61 = vld [vmem:[%s7162_s29 + $0x24] sm:$0xf0]  ;;  %v6121_v34 = vld [vmem:[%s7162_s29 + $0xb4] sm:$0xf0] }
 0x42b   : > { %v3460_v49 = vadd.f32 %v3459_v28, %v3259_v52  ;;  %v5623_v23 = vor.u32 %v6103_v61, %v5622_v30  ;;  %v5624_v28 = vld [vmem:[%s7162_s29 + $0x28] sm:$0xf0] }
 0x42c   : > { %v3448_v50 = vadd.f32 %v3447_v14, %v3434_v11  ;;  %v5696_v14 = vld [vmem:[%s7162_s29 + $0xb8] sm:$0xf0] }
 0x42d   : > { %v3474_v43 = vadd.f32 %v3473_v58, %v3460_v49  ;;  %v5694_v58 = vld [vmem:[%s7162_s29 + $0xb0] sm:$0xf]  ;;  %3955 = vmatpush.bf16.msra.mxu0 %v5623_v23 }
 0x42e   : > { %v3480_v0 = vmax.f32 %v3448_v50, 0.0  ;;  %v5695_v11 = vor.u32 %v6121_v34, %v5694_v58  ;;  %v5699_v50 = vor.u32 %v6120_v37, %v5696_v14  ;;  %v5614_v49 = vld [vmem:[%s7162_s29 + $0x10] sm:$0xf]  ;;  %v6145_v58 = vld [vmem:[%s7164_s14 + $0x74] sm:$0xf0] }
 0x42f   : > { %v3479_v5 = vmax.f32 %v3474_v43, 0.0  ;;  %v6144_v34 = vld [vmem:[%s7164_s14 + $0x74] sm:$0xf] }
 0x430   : > { %v3482_v59 = vpack.c.bf16 %v3480_v0, %v3478_v6  ;;  %v6101_v6 = vld [vmem:[%s7162_s29 + $0x14] sm:$0xf0]  ;;  %v6100_v0 = vld [vmem:[%s7162_s29 + $0x14] sm:$0xf]  ;;  %3968 = vmatpush.bf16.msra.mxu1 %v5695_v11  ;;  %3996 = vmatpush.bf16.msra.mxu3 %v5699_v50  ;;  %v5792_v11 = vld [vmem:[%s7164_s14 + $0x78] sm:$0xf0] }
 0x431   : > { %v3475_v8 = vpop.f32.mrf.mxu3  ;;  %v5795_v14 = vor.u32 %v6144_v34, %v5792_v11  ;;  %v6735_v50 = vmov 256.0   ;;  %v5752_v34 = vld [vmem:[%s7164_s14 + $0x28] sm:$0xf0] }
 0x432   : > { %v3461_v7 = vpop.f32.mrf.mxu2  ;;  %3684 = vmatmul.bf16.vlgmr.msrb.gmra.mxu0 %v3482_v59  ;;  %3712 = vmatmul.bf16.vlgmr.msrb.gmra.mxu2 %v3482_v59  ;;  %v5615_v59 = vor.u32 %v6101_v6, %v5614_v49  ;;  %6370 = vrcp.f32 %v6735_v50  ;;  %v5782_v49 = vld [vmem:[%s7164_s14 + $0x60] sm:$0xf]  ;;  %v6143_v6 = vld [vmem:[%s7164_s14 + $0x64] sm:$0xf0]  ;;  %v6153_v50 = vld [vmem:[%s7164_s14 + $0xb4] sm:$0xf0] }
 0x433   : > { %v3462_v24 = vadd.f32 %v3461_v7, %v3259_v52  ;;  %v5627_v52 = vor.u32 %v6102_v19, %v5624_v28  ;;  %v5616_v7 = vld [vmem:[%s7162_s29 + $0x18] sm:$0xf0] }
 0x434   : > { %v5619_v43 = vor.u32 %v6100_v0, %v5616_v7  ;;  %3956 = vmatpush.bf16.msra.mxu0 %v5615_v59  ;;  %v6142_v0 = vld [vmem:[%s7164_s14 + $0x64] sm:$0xf]  ;;  %v5783_v59 = vor.u32 %v6143_v6, %v5782_v49  ;;  %v5784_v7 = vld [vmem:[%s7164_s14 + $0x68] sm:$0xf0]  ;;  %v6152_v49 = vld [vmem:[%s7164_s14 + $0xb4] sm:$0xf] }
 0x435   : > { %v3476_v42 = vadd.f32 %v3475_v8, %v3462_v24  ;;  %3983 = vmatpush.bf16.msra.mxu2 %v5627_v52  ;;  %v5686_v24 = vld [vmem:[%s7162_s29 + $0xa0] sm:$0xf]  ;;  %v6119_v8 = vld [vmem:[%s7162_s29 + $0xa4] sm:$0xf0] }
 0x437   : > { %v3481_v51 = vmax.f32 %v3476_v42, 0.0  ;;  %v6118_v42 = vld [vmem:[%s7162_s29 + $0xa4] sm:$0xf] }
 0x438   : > { %3957 = vmatpush.bf16.msra.mxu0 %v5607_v39  ;;  %v9264_v39 = vpop.eup %6370 }
 0x439   : > { %v3483_v21 = vpack.c.bf16 %v3481_v51, %v3479_v5  ;;  %v5687_v5 = vor.u32 %v6119_v8, %v5686_v24  ;;  %v5688_v51 = vld [vmem:[%s7162_s29 + $0xa8] sm:$0xf0]  ;;  %3984 = vmatpush.bf16.msra.mxu2 %v5619_v43  ;;  %v5854_v43 = vld [vmem:[%s7164_s14 + $0xf0] sm:$0xf]  ;;  %v6161_v24 = vld [vmem:[%s7164_s14 + $0xf4] sm:$0xf0]  ;;  %v5787_v8 = vor.u32 %v6142_v0, %v5784_v7  ;;  %vm4488_vm13 = vweird.f32 %v9264_v39 }
 0x43a   : > { %v4484_v10 = vmul.f32 256.0, %v9264_v39  ;;  %v5824_v0 = vld [vmem:[%s7164_s14 + $0xb8] sm:$0xf0]  ;;  %v5742_v7 = vld [vmem:[%s7164_s14 + $0x10] sm:$0xf] }
 0x43b   : > { %3698 = vmatmul.bf16.vlgmr.msrb.gmra.mxu1 %v3483_v21  ;;  %3726 = vmatmul.bf16.vlgmr.msrb.gmra.mxu3 %v3483_v21  ;;  %v5691_v21 = vor.u32 %v6118_v42, %v5688_v51  ;;  %v5855_v42 = vor.u32 %v6161_v24, %v5854_v43  ;;  %v5856_v51 = vld [vmem:[%s7164_s14 + $0xf8] sm:$0xf0]  ;;  %v6133_v43 = vld [vmem:[%s7164_s14 + $0x14] sm:$0xf0]  ;;  %v6132_v24 = vld [vmem:[%s7164_s14 + $0x14] sm:$0xf] }
 0x43c   : > { %3969 = vmatpush.bf16.msra.mxu1 %v5687_v5  ;;  %v6160_v5 = vld [vmem:[%s7164_s14 + $0xf4] sm:$0xf] }
 0x43d   : > { %3997 = vmatpush.bf16.msra.mxu3 %v5691_v21  ;;  %3985 = vmatpush.bf16.msra.mxu2 %v5611_v41  ;;  %v5859_v21 = vor.u32 %v6160_v5, %v5856_v51  ;;  %v5776_v41 = vld [vmem:[%s7164_s14 + $0x58] sm:$0xf0] }
 0x43e   : > { %v5779_v46 = vor.u32 %v6140_v13, %v5776_v41 }
 0x440   : > { %3970 = vmatpush.bf16.msra.mxu1 %v5679_v1  ;;  %v6158_v1 = vld [vmem:[%s7164_s14 + $0xe4] sm:$0xf] }
 0x441   : > { %3998 = vmatpush.bf16.msra.mxu3 %v5683_v16  ;;  %4238 = vmatpush.bf16.msrb.mxu2 %v5795_v14  ;;  %v5848_v16 = vld [vmem:[%s7164_s14 + $0xe8] sm:$0xf0]  ;;  %v5822_v14 = vld [vmem:[%s7164_s14 + $0xb0] sm:$0xf] }
 0x442   : > { %v5851_v62 = vor.u32 %v6158_v1, %v5848_v16  ;;  %v5823_v6 = vor.u32 %v6153_v50, %v5822_v14 }
 0x444   : > { %3971 = vmatpush.bf16.msra.mxu1 %v5671_v3  ;;  %v6139_v3 = vld [vmem:[%s7164_s14 + $0x44] sm:$0xf0] }
 0x445   : > { %3999 = vmatpush.bf16.msra.mxu3 %v5675_v47  ;;  %4239 = vmatpush.bf16.msrb.mxu2 %v5787_v8  ;;  %v5767_v2 = vor.u32 %v6139_v3, %v5766_v32  ;;  %v6138_v47 = vld [vmem:[%s7164_s14 + $0x44] sm:$0xf]  ;;  %v5743_v8 = vor.u32 %v6133_v43, %v5742_v7  ;;  %v6149_v32 = vld [vmem:[%s7164_s14 + $0x94] sm:$0xf0]  ;;  %v6148_v3 = vld [vmem:[%s7164_s14 + $0x94] sm:$0xf] }
 0x448   : > { %4224 = vmatpush.bf16.msrb.mxu1 %v5855_v42  ;;  %v5744_v42 = vld [vmem:[%s7164_s14 + $0x18] sm:$0xf0] }
 0x449   : > { %4252 = vmatpush.bf16.msrb.mxu3 %v5859_v21  ;;  %4240 = vmatpush.bf16.msrb.mxu2 %v5779_v46  ;;  %v5747_v51 = vor.u32 %v6132_v24, %v5744_v42  ;;  %v5814_v21 = vld [vmem:[%s7164_s14 + $0xa0] sm:$0xf] }
 0x44a   : > { %v5815_v13 = vor.u32 %v6151_v27, %v5814_v21  ;;  %v5734_v46 = vld [vmem:[%s7164_s14] sm:$0xf]  ;;  %v6169_v21 = vld [vmem:[%s7148_s28 + $0x38] sm:$0xff] }
 0x44b   : > { %v5735_v1 = vor.u32 %v6131_v48, %v5734_v46  ;;  %v6168_v27 = vld [vmem:[%s7148_s28 + $0x30] sm:$0xff] }
 0x44c   : > { %4225 = vmatpush.bf16.msrb.mxu1 %v5847_v53  ;;  %v5736_v53 = vld [vmem:[%s7164_s14 + $0x8] sm:$0xf0]  ;;  %v6176_v46 = vld [vmem:[%s7148_s28 + $0x70] sm:$0xff] }
 0x44d   : > { %4253 = vmatpush.bf16.msrb.mxu3 %v5851_v62  ;;  %v5806_v62 = vld [vmem:[%s7164_s14 + $0x90] sm:$0xf] }
 0x4af   : > { %v3685_v36 = vpop.f32.mrf.mxu0 }
 0x4b5   : > { %v3713_v40 = vpop.f32.mrf.mxu2 }
 0x4b7   : > { %v3687_v63 = vpop.f32.mrf.mxu0 }
 0x4b8   : > { %v3699_v17 = vpop.f32.mrf.mxu1 }
 0x4b9   : > { %v3700_v54 = vadd.f32 %v3699_v17, %v3685_v36  ;;  %v5768_v36 = vld [vmem:[%s7164_s14 + $0x48] sm:$0xf0] }
 0x4ba   : > { %v5771_v17 = vor.u32 %v6138_v47, %v5768_v36  ;;  %v5808_v47 = vld [vmem:[%s7164_s14 + $0x98] sm:$0xf0] }
 0x4bb   : > { %v3732_v55 = vadd.f32 %v3700_v54, %v9069_v22  ;;  %v6157_v54 = vld [vmem:[%s7164_s14 + $0xd4] sm:$0xf0] }
 0x4bc   : > { %4241 = vmatpush.bf16.msrb.mxu2 %v5771_v17 }
 0x4bd   : > { %v9226_v29 = vadd.f32 %v3738_v15, %v3732_v55  ;;  %v3715_v30 = vpop.f32.mrf.mxu2  ;;  %v5840_v55 = vld [vmem:[%s7164_s14 + $0xd8] sm:$0xf0] }
 0x4be   : > { %v3727_v45 = vpop.f32.mrf.mxu3 }
 0x4bf   : > { %3746 = vst [vmem:[#allocation2 + $0x10] sm:$0xff] %v9226_v29  ;;  %v3728_v57 = vadd.f32 %v3727_v45, %v3713_v40  ;;  %v5839_v40 = vor.u32 %v6157_v54, %v5838_v44  ;;  %v5811_v44 = vor.u32 %v6148_v3, %v5808_v47  ;;  %v6147_v54 = vld [vmem:[%s7164_s14 + $0x84] sm:$0xf0] }
 0x4c0   : > { %v3701_v31 = vpop.f32.mrf.mxu1 }
 0x4c1   : > { %v3733_v26 = vadd.f32 %v3728_v57, %v9075_v38  ;;  %v3702_v33 = vadd.f32 %v3701_v31, %v3687_v63  ;;  %v5758_v57 = vld [vmem:[%s7164_s14 + $0x30] sm:$0xf]  ;;  %v6136_v63 = vld [vmem:[%s7164_s14 + $0x34] sm:$0xf]  ;;  %4226 = vmatpush.bf16.msrb.mxu1 %v5839_v40 }
 0x4c3   : > { %v9230_v18 = vadd.f32 %v3739_v20, %v3733_v26  ;;  %v3734_v4 = vadd.f32 %v3702_v33, %v9071_v9  ;;  %v5760_v26 = vld [vmem:[%s7164_s14 + $0x38] sm:$0xf0]  ;;  %v4485_v33 = vsub.f32 1.0, %v4484_v10  ;;  %v5739_v10 = vor.u32 %v6130_v12, %v5736_v53  ;;  %v6166_v12 = vld [vmem:[%s7148_s28 + $0x20] sm:$0xff]  ;;  %v6165_v53 = vld [vmem:[%s7148_s28 + $0x18] sm:$0xff] }
 0x4c5   : > { %3747 = vst [vmem:[#allocation2] sm:$0xff] %v9230_v18  ;;  %v9234_v22 = vadd.f32 %v3738_v15, %v3734_v4  ;;  %v4477_v60 = vadd.f32 %v9230_v18, %v9226_v29  ;;  %v6156_v15 = vld [vmem:[%s7164_s14 + $0xd4] sm:$0xf]  ;;  %v5763_v4 = vor.u32 %v6136_v63, %v5760_v26 }
 0x4c6   : > { %v3729_v61 = vpop.f32.mrf.mxu3  ;;  %v5843_v45 = vor.u32 %v6156_v15, %v5840_v55  ;;  %v6146_v15 = vld [vmem:[%s7164_s14 + $0x84] sm:$0xf] }
 0x4c7   : > { %3748 = vst [vmem:[#allocation2 + $0x18] sm:$0xff] %v9234_v22  ;;  %v3730_v38 = vadd.f32 %v3729_v61, %v3715_v30  ;;  %4478 = vadd.xlane.f32.xlu0 %v4477_v60  ;;  %v3750_v9 = vpack.c.bf16 %v9234_v22, %v9226_v29  ;;  %v5830_v60 = vld [vmem:[%s7164_s14 + $0xc0] sm:$0xf]  ;;  %v6155_v30 = vld [vmem:[%s7164_s14 + $0xc4] sm:$0xf0]  ;;  %4242 = vmatpush.bf16.msrb.mxu2 %v5763_v4 }
 0x4c8   : > { %4254 = vmatpush.bf16.msrb.mxu3 %v5843_v45  ;;  %v5831_v61 = vor.u32 %v6155_v30, %v5830_v60 }
 0x4c9   : > { %v3735_v23 = vadd.f32 %v3730_v38, %v9077_v35  ;;  %3958 = vmatmul.bf16.vlgmr.msra.gmra.mxu0 %v3750_v9  ;;  %3986 = vmatmul.bf16.vlgmr.msra.gmra.mxu2 %v3750_v9  ;;  %v5790_v35 = vld [vmem:[%s7164_s14 + $0x70] sm:$0xf]  ;;  %v6154_v38 = vld [vmem:[%s7164_s14 + $0xc4] sm:$0xf]  ;;  %v5832_v9 = vld [vmem:[%s7164_s14 + $0xc8] sm:$0xf0] }
 0x4ca   : > { %v5791_v37 = vor.u32 %v6145_v58, %v5790_v35  ;;  %v6134_v35 = vld [vmem:[%s7164_s14 + $0x24] sm:$0xf]  ;;  %4227 = vmatpush.bf16.msrb.mxu1 %v5831_v61 }
 0x4cb   : > { %v9242_v19 = vadd.f32 %v3739_v20, %v3735_v23  ;;  %v6137_v20 = vld [vmem:[%s7164_s14 + $0x34] sm:$0xf0]  ;;  %v5835_v23 = vor.u32 %v6154_v38, %v5832_v9  ;;  %v5755_v11 = vor.u32 %v6134_v35, %v5752_v34  ;;  %v3784_v38 = vld [vmem:[%s1040_s24] sm:$0x3]  ;;  %s6580_s24 = scalar_lea.hbm %s6579_s7, 32 }
 0x4cc   : > { %4210 = vmatpush.bf16.msrb.mxu0 %v5791_v37  ;;  %v5759_v31 = vor.u32 %v6137_v20, %v5758_v57  ;;  %v4486_v37 = vmul.f32 %v9264_v39, %v4485_v33  ;;  %v5800_v57 = vld [vmem:[%s7164_s14 + $0x88] sm:$0xf0]  ;;  %v3787_v34 = vperm.slane %v3784_v38, 1  ;;  %p6581_p5 = scmp.ne.s32.totalorder %s6579_s7, %s6580_s24  ;;  %p6586_p10 = scmp.lt.s32.totalorder %s6584_s15, %s6580_s24 }
 0x4cd   : > { %3749 = vst [vmem:[#allocation2 + $0x8] sm:$0xff] %v9242_v19  ;;  %v3751_v28 = vpack.c.bf16 %v9242_v19, %v9230_v18  ;;  %v4480_v52 = vadd.f32 %v9242_v19, %v9234_v22  ;;  %4255 = vmatpush.bf16.msrb.mxu3 %v5835_v23  ;;  %4243 = vmatpush.bf16.msrb.mxu2 %v5755_v11 }
 0x4ce   : > { %4228 = vmatpush.bf16.msrb.mxu1 %v5823_v6  ;;  %v4487_v5 = vadd.f32 %v9264_v39, %v4486_v37  ;;  %v5803_v20 = vor.u32 %v6146_v15, %v5800_v57  ;;  %v4544_v57 = vld [vmem:[%s9927_s20] sm:$0x3]  ;;  %p6582_p6 = pnand %p6581_p5, %p7053_p8  ;;  %p6587_p4 = por %p6586_p10, %p6585_p9 }
 0x4cf   : > { %3972 = vmatmul.bf16.vlgmr.msra.gmra.mxu1 %v3751_v28  ;;  %4000 = vmatmul.bf16.vlgmr.msra.gmra.mxu3 %v3751_v28  ;;  %v5750_v28 = vld [vmem:[%s7164_s14 + $0x20] sm:$0xf] }
 0x4d0   : > { %4481 = vadd.xlane.f32.xlu0 %v4480_v52  ;;  %4211 = vmatpush.bf16.msrb.mxu0 %v5783_v59  ;;  %v6135_v52 = vld [vmem:[%s7164_s14 + $0x24] sm:$0xf0]  ;;  %v5827_v59 = vor.u32 %v6152_v49, %v5824_v0  ;;  %v9312_v16 = vsel %vm4488_vm13, %v9264_v39, %v4487_v5  ;;  %v5798_v39 = vld [vmem:[%s7164_s14 + $0x80] sm:$0xf]  ;;  %p6583_p7 = pneg %p6582_p6 }
 0x4d1   : > { %v5751_v58 = vor.u32 %v6135_v52, %v5750_v28  ;;  %4244 = vmatpush.bf16.msrb.mxu2 %v5747_v51  ;;  %v5799_v45 = vor.u32 %v6147_v54, %v5798_v39  ;;  %v3786_v28 = vperm.slane %v3784_v38, 0  ;;  %v6163_v54 = vld [vmem:[%s7148_s28 + $0x8] sm:$0xff]  ;;  %v4547_v38 = vperm.slane %v4544_v57, 1 }
 0x4d2   : > { %4256 = vmatpush.bf16.msrb.mxu3 %v5827_v59  ;;  %4229 = vmatpush.bf16.msrb.mxu1 %v5815_v13  ;;  %p6588_p12 = pnand %p6587_p4, %p6583_p7 }
 0x4d4   : > { %4212 = vmatpush.bf16.msrb.mxu0 %v5775_v25  ;;  %v5816_v25 = vld [vmem:[%s7164_s14 + $0xa8] sm:$0xf0] }
 0x4d5   : > { %v5819_v41 = vor.u32 %v6150_v56, %v5816_v25  ;;  %4245 = vmatpush.bf16.msrb.mxu2 %v5739_v10  ;;  %v6177_v56 = vld [vmem:[%s7148_s28 + $0x78] sm:$0xff]  ;;  %v6167_v25 = vld [vmem:[%s7148_s28 + $0x28] sm:$0xff] }
 0x4d7   : > { %4257 = vmatpush.bf16.msrb.mxu3 %v5819_v41 }
 0x4d8   : > { %4213 = vmatpush.bf16.msrb.mxu0 %v5767_v2  ;;  %v5807_v2 = vor.u32 %v6149_v32, %v5806_v62  ;;  %v6174_v32 = vld [vmem:[%s7148_s28 + $0x60] sm:$0xff] }
 0x4da   : > { %4230 = vmatpush.bf16.msrb.mxu1 %v5807_v2  ;;  %v6164_v2 = vld [vmem:[%s7148_s28 + $0x10] sm:$0xff] }
 0x4db   : > { %4258 = vmatpush.bf16.msrb.mxu3 %v5811_v44 }
 0x4dc   : > { %4214 = vmatpush.bf16.msrb.mxu0 %v5759_v31 }
 0x4de   : > { %4231 = vmatpush.bf16.msrb.mxu1 %v5799_v45  ;;  %v6172_v45 = vld [vmem:[%s7148_s28 + $0x50] sm:$0xff] }
 0x4df   : > { %4259 = vmatpush.bf16.msrb.mxu3 %v5803_v20 }
 0x4e0   : > { %4215 = vmatpush.bf16.msrb.mxu0 %v5751_v58 }
 0x4e2   : > { %4418 = vmatpush.bf16.msra.mxu1 %v6177_v56 }
 0x4e4   : > { %4216 = vmatpush.bf16.msrb.mxu0 %v5743_v8 }
 0x4e6   : > { %4419 = vmatpush.bf16.msra.mxu1 %v6176_v46 }
 0x4e8   : > { %4217 = vmatpush.bf16.msrb.mxu0 %v5735_v1  ;;  %v6175_v1 = vld [vmem:[%s7148_s28 + $0x68] sm:$0xff] }
 0x4ea   : > { %4420 = vmatpush.bf16.msra.mxu1 %v6175_v1 }
 0x4ec   : > { %4404 = vmatpush.bf16.msra.mxu0 %v6169_v21 }
 0x4ee   : > { %4421 = vmatpush.bf16.msra.mxu1 %v6174_v32 }
 0x4f0   : > { %4405 = vmatpush.bf16.msra.mxu0 %v6168_v27 }
 0x4f4   : > { %4406 = vmatpush.bf16.msra.mxu0 %v6167_v25 }
 0x4f8   : > { %4407 = vmatpush.bf16.msra.mxu0 %v6166_v12 }
 0x4fc   : > { %4408 = vmatpush.bf16.msra.mxu0 %v6165_v53 }
 0x500   : > { %4409 = vmatpush.bf16.msra.mxu0 %v6164_v2 }
 0x504   : > { %4410 = vmatpush.bf16.msra.mxu0 %v6163_v54 }
 0x53a   : > { %v4479_v36 = vpop.xlane.xlu0 %4478 }
 0x53b   : > { %v4490_v17 = vmul.f32 %v9312_v16, %v4479_v36 }
 0x53d   : > { %v9323_v55 = vsub.f32 %v9226_v29, %v4490_v17  ;;  %v9326_v40 = vsub.f32 %v9230_v18, %v4490_v17  ;;  %v6173_v17 = vld [vmem:[%s7148_s28 + $0x58] sm:$0xff] }
 0x53e   : > { %4422 = vmatpush.bf16.msra.mxu1 %v6173_v17 }
 0x53f   : > { %v4496_v63 = vmul.f32 %v9323_v55, %v9323_v55  ;;  %v4497_v31 = vmul.f32 %v9326_v40, %v9326_v40 }
 0x541   : > { %v4500_v26 = vadd.f32 %v4497_v31, %v4496_v63  ;;  %v6162_v31 = vld [vmem:[%s7148_s28] sm:$0xff] }
 0x542   : > { %4423 = vmatpush.bf16.msra.mxu1 %v6172_v45  ;;  %4411 = vmatpush.bf16.msra.mxu0 %v6162_v31 }
 0x543   : > { %v4482_v33 = vpop.xlane.xlu0 %4481  ;;  %4501 = vadd.xlane.f32.xlu1 %v4500_v26 }
 0x544   : > { %v4491_v29 = vmul.f32 %v9312_v16, %v4482_v33 }
 0x546   : > { %v9335_v18 = vsub.f32 %v9234_v22, %v4491_v29  ;;  %v9338_v4 = vsub.f32 %v9242_v19, %v4491_v29  ;;  %v3959_v60 = vpop.f32.mrf.mxu0 }
 0x547   : > { %v3960_v19 = vadd.f32 %v3959_v60, %v3786_v28  ;;  %v4546_v60 = vperm.slane %v4544_v57, 0 }
 0x548   : > { %v4498_v30 = vmul.f32 %v9335_v18, %v9335_v18  ;;  %v4499_v61 = vmul.f32 %v9338_v4, %v9338_v4 }
 0x54a   : > { %v4503_v9 = vadd.f32 %v4499_v61, %v4498_v30  ;;  %v6171_v61 = vld [vmem:[%s7148_s28 + $0x48] sm:$0xff] }
 0x54b   : > { %4424 = vmatpush.bf16.msra.mxu1 %v6171_v61 }
 0x54c   : > { %4504 = vadd.xlane.f32.xlu1 %v4503_v9  ;;  %v3973_v23 = vpop.f32.mrf.mxu1  ;;  %v3987_v22 = vpop.f32.mrf.mxu2 }
 0x54d   : > { %v3974_v58 = vadd.f32 %v3973_v23, %v3960_v19  ;;  %v3988_v6 = vadd.f32 %v3987_v22, %v3787_v34 }
 0x54e   : > { %v3961_v52 = vpop.f32.mrf.mxu0 }
 0x54f   : > { %v3962_v37 = vadd.f32 %v3961_v52, %v3786_v28  ;;  %v4006_v49 = vmax.f32 %v3974_v58, 0.0 }
 0x552   : > { %v4001_v35 = vpop.f32.mrf.mxu3 }
 0x553   : > { %v4002_v59 = vadd.f32 %v4001_v35, %v3988_v6  ;;  %v6170_v35 = vld [vmem:[%s7148_s28 + $0x40] sm:$0xff] }
 0x554   : > { %v3975_v11 = vpop.f32.mrf.mxu1  ;;  %v3989_v50 = vpop.f32.mrf.mxu2  ;;  %4425 = vmatpush.bf16.msra.mxu1 %v6170_v35 }
 0x555   : > { %v3976_v14 = vadd.f32 %v3975_v11, %v3962_v37  ;;  %v3990_v43 = vadd.f32 %v3989_v50, %v3787_v34  ;;  %v4007_v42 = vmax.f32 %v4002_v59, 0.0 }
 0x557   : > { %v4008_v0 = vmax.f32 %v3976_v14, 0.0 }
 0x559   : > { %v4010_v7 = vpack.c.bf16 %v4008_v0, %v4006_v49 }
 0x55a   : > { %v4003_v24 = vpop.f32.mrf.mxu3 }
 0x55b   : > { %v4004_v8 = vadd.f32 %v4003_v24, %v3990_v43  ;;  %4218 = vmatmul.bf16.vlgmr.msrb.gmra.mxu0 %v4010_v7  ;;  %4246 = vmatmul.bf16.vlgmr.msrb.gmra.mxu2 %v4010_v7  ;;  %v4044_v7 = vld [vmem:[%s1044_s30] sm:$0x3]  ;;  %s9931_s30 = sld [smem:[#allocation20_spill]] }
 0x55d   : > { %v4009_v5 = vmax.f32 %v4004_v8, 0.0  ;;  %v4046_v8 = vperm.slane %v4044_v7, 0 }
 0x55f   : > { %v4011_v51 = vpack.c.bf16 %v4009_v5, %v4007_v42 }
 0x561   : > { %4232 = vmatmul.bf16.vlgmr.msrb.gmra.mxu1 %v4011_v51  ;;  %4260 = vmatmul.bf16.vlgmr.msrb.gmra.mxu3 %v4011_v51  ;;  %s9934_s29 = sand.u32 1, %s9931_s30  }
 0x562   : > { %s4559_s14 = scalar_lea.sflag [#allocation7], %s9934_s29 }
 0x5b6   : > { %v4502_v13 = vpop.xlane.xlu1 %4501 }
 0x5b7   : > { %v4506_v41 = vmul.f32 %v4502_v13, %v9312_v16 }
 0x5b9   : > { %v4508_v48 = vadd.f32 1e-05, %v4506_v41 }
 0x5bb   : > { %6372 = vrsqrt.f32 %v4508_v48  ;;  %vm4516_vm7 = vweird.f32 %v4508_v48 }
 0x5bf   : > { %v4505_v10 = vpop.xlane.xlu1 %4504 }
 0x5c0   : > { %v4507_v62 = vmul.f32 %v4505_v10, %v9312_v16  ;;  %v4534_v16 = vld [vmem:[%s9926_s26] sm:$0x3] }
 0x5c1   : > { %v6373_v3 = vpop.eup %6372  ;;  %v4536_v26 = vperm.slane %v4534_v16, 0  ;;  %v4537_v33 = vperm.slane %v4534_v16, 1 }
 0x5c2   : > { %v4511_v47 = vmul.f32 %v6373_v3, %v4508_v48  ;;  %v4509_v36 = vadd.f32 1e-05, %v4507_v62  ;;  %vm4517_vm12 = vweird.f32 %v6373_v3 }
 0x5c3   : > { %vm4518_vm15 = vmor %vm4516_vm7, %vm4517_vm12 }
 0x5c4   : > { %v4512_v44 = vmul.f32 %v6373_v3, %v4511_v47  ;;  %6374 = vrsqrt.f32 %v4509_v36  ;;  %vm4526_vm3 = vweird.f32 %v4509_v36 }
 0x5c6   : > { %v4513_v39 = vmul.f32 0.5, %v4512_v44 }
 0x5c8   : > { %v4514_v15 = vsub.f32 1.5, %v4513_v39 }
 0x5ca   : > { %v6375_v20 = vpop.eup %6374  ;;  %v4515_v63 = vmul.f32 %v6373_v3, %v4514_v15 }
 0x5cb   : > { %v4521_v29 = vmul.f32 %v6375_v20, %v4509_v36  ;;  %vm4527_vm14 = vweird.f32 %v6375_v20 }
 0x5cc   : > { %v4519_v30 = vsel %vm4518_vm15, %v6373_v3, %v4515_v63  ;;  %vm4528_vm1 = vmor %vm4526_vm3, %vm4527_vm14 }
 0x5cd   : > { %v4530_v9 = vmul.f32 %v4519_v30, %v9323_v55  ;;  %v4531_v23 = vmul.f32 %v4519_v30, %v9326_v40  ;;  %v4522_v22 = vmul.f32 %v6375_v20, %v4521_v29 }
 0x5cf   : > { %v4540_v28 = vmul.f32 %v4536_v26, %v4530_v9  ;;  %v4541_v52 = vmul.f32 %v4537_v33, %v4531_v23  ;;  %v4523_v19 = vmul.f32 0.5, %v4522_v22 }
 0x5d1   : > { %v4550_v58 = vadd.f32 %v4546_v60, %v4540_v28  ;;  %v4551_v34 = vadd.f32 %v4547_v38, %v4541_v52  ;;  %v4524_v37 = vsub.f32 1.5, %v4523_v19 }
 0x5d3   : > { %4554 = vst [vmem:[%s7166_s3] sm:$0xff] %v4550_v58  ;;  %v4525_v11 = vmul.f32 %v6375_v20, %v4524_v37 }
 0x5d4   : > { %4555 = vst [vmem:[%s7166_s3 + $0x8] sm:$0xff] %v4551_v34 }
 0x5d5   : > { %v4529_v55 = vsel %vm4528_vm1, %v6375_v20, %v4525_v11 }
 0x5d6   : > { %v4532_v40 = vmul.f32 %v4529_v55, %v9335_v18  ;;  %v4533_v14 = vmul.f32 %v4529_v55, %v9338_v4  ;;  %v4047_v4 = vperm.slane %v4044_v7, 1 }
 0x5d8   : > { %v4542_v50 = vmul.f32 %v4536_v26, %v4532_v40  ;;  %v4543_v49 = vmul.f32 %v4537_v33, %v4533_v14  ;;  %v4219_v6 = vpop.f32.mrf.mxu0 }
 0x5d9   : > { %v4220_v5 = vadd.f32 %v4219_v6, %v4046_v8 }
 0x5da   : > { %v4552_v0 = vadd.f32 %v4546_v60, %v4542_v50  ;;  %v4553_v59 = vadd.f32 %v4547_v38, %v4543_v49 }
 0x5dc   : > { %4556 = vst [vmem:[%s7166_s3 + $0x10] sm:$0xff] %v4552_v0 }
 0x5dd   : > { %4557 = vst [vmem:[%s7166_s3 + $0x18] sm:$0xff] %v4553_v59 }
 0x5de   : > { %v4233_v43 = vpop.f32.mrf.mxu1  ;;  %v4247_v24 = vpop.f32.mrf.mxu2 }
 0x5df   : > { %v4234_v51 = vadd.f32 %v4233_v43, %v4220_v5  ;;  %v4248_v41 = vadd.f32 %v4247_v24, %v4047_v4 }
 0x5e0   : > { %v4221_v42 = vpop.f32.mrf.mxu0 }
 0x5e1   : > { %v4222_v21 = vadd.f32 %v4221_v42, %v4046_v8  ;;  %v4266_v25 = vmax.f32 %v4234_v51, 0.0 }
 0x5e4   : > { %v4261_v18 = vpop.f32.mrf.mxu3 }
 0x5e5   : > { %v4262_v48 = vadd.f32 %v4261_v18, %v4248_v41 }
 0x5e6   : > { %v4235_v27 = vpop.f32.mrf.mxu1  ;;  %v4249_v13 = vpop.f32.mrf.mxu2 }
 0x5e7   : > { %v4236_v56 = vadd.f32 %v4235_v27, %v4222_v21  ;;  %v4250_v1 = vadd.f32 %v4249_v13, %v4047_v4  ;;  %v4267_v62 = vmax.f32 %v4262_v48, 0.0 }
 0x5e9   : > { %v4268_v46 = vmax.f32 %v4236_v56, 0.0 }
 0x5eb   : > { %v4270_v12 = vpack.c.bf16 %v4268_v46, %v4266_v25 }
 0x5ec   : > { %v4263_v53 = vpop.f32.mrf.mxu3 }
 0x5ed   : > { %v4264_v10 = vadd.f32 %v4263_v53, %v4250_v1  ;;  %4412 = vmatmul.bf16.vlgmr.msra.gmra.mxu0 %v4270_v12 }
 0x5ef   : > { %v4269_v32 = vmax.f32 %v4264_v10, 0.0 }
 0x5f1   : > { %v4271_v3 = vpack.c.bf16 %v4269_v32, %v4267_v62 }
 0x5f3   : > { %4426 = vmatmul.bf16.vlgmr.msra.gmra.mxu1 %v4271_v3 }
 0x5f4   : > { %6591 = shalt.err (!%p6588_p12)
}
 0x5f5   : > { %s6736_s3 = smov 256   ;;  %s6737_s28 = smov 16   ;;  %v6369_v47 = vld [vmem:[%s1052_s12] ss:$0 sm:$0xff]  ;;  %v4433_v63 = vld [vmem:[#allocation4 + $0x8] sm:$0xff]  ;;  %vm4474_vm9 = vcmask 31744  }
 0x5f6   : > { %6193 = dma.vmem_to_hbm [thread:$0]  (%p7053_p8), %s4584_s17, 512, %s4586_s25, %s4559_s14, %s6736_s3, %s6736_s3, %s6737_s28   ;;  %v4432_v17 = vld [vmem:[#allocation4] sm:$0xff] }
 0x66a   : > { %v4413_v2 = vpop.f32.mrf.mxu0 }
 0x66b   : > { %v4414_v36 = vadd.f32 %v6369_v47, %v4413_v2 }
 0x670   : > { %v4427_v44 = vpop.f32.mrf.mxu1 }
 0x671   : > { %v4428_v39 = vadd.f32 %v4427_v44, %v4414_v36 }
 0x672   : > { %v4415_v16 = vpop.f32.mrf.mxu0 }
 0x673   : > { %v4434_v54 = vadd.f32 %v4432_v17, %v4428_v39  ;;  %v4416_v57 = vadd.f32 %v6369_v47, %v4415_v16 }
 0x675   : > { %v4436_v15 = vsub.f32 0.0, %v4434_v54 }
 0x677   : > { %v4438_v45 = vmul.f32 1.442695, %v4436_v15 }
 0x678   : > { %v4429_v20 = vpop.f32.mrf.mxu1 }
 0x679   : > { %6376 = vpow2.f32 %v4438_v45  ;;  %v4430_v31 = vadd.f32 %v4429_v20, %v4416_v57 }
 0x67b   : > { %v4435_v26 = vadd.f32 %v4433_v63, %v4430_v31 }
 0x67d   : > { %v4437_v33 = vsub.f32 0.0, %v4435_v26 }
 0x67f   : > { %v6377_v29 = vpop.eup %6376  ;;  %v4440_v60 = vmul.f32 1.442695, %v4437_v33 }
 0x680   : > { %v4442_v30 = vadd.f32 1.0, %v6377_v29 }
 0x681   : > { %6378 = vpow2.f32 %v4440_v60 }
 0x682   : > { %6380 = vrcp.f32 %v4442_v30  ;;  %v4455_v28 = vand.u32 2147483648, %v4442_v30  ;;  %v4453_v19 = vand.u32 2147483647, %v4442_v30  ;;  %vm4449_vm5 = vweird.f32 %v4442_v30 }
 0x684   : > { %v4456_v34 = vor.u32 1.1754944e-38, %v4455_v28  ;;  %vm4454_vm2 = vcmp.eq.f32.partialorder %v4453_v19, 8.507059e+37 }
 0x687   : > { %v6379_v61 = vpop.eup %6378 }
 0x688   : > { %v6381_v38 = vpop.eup %6380  ;;  %v4443_v9 = vadd.f32 1.0, %v6379_v61 }
 0x689   : > { %v4445_v23 = vmul.f32 %v6381_v38, %v4442_v30  ;;  %vm4450_vm4 = vweird.f32 %v6381_v38 }
 0x68a   : > { %6382 = vrcp.f32 %v4443_v9  ;;  %vm4451_vm11 = vmor %vm4449_vm5, %vm4450_vm4  ;;  %v4470_v14 = vand.u32 2147483648, %v4443_v9  ;;  %v4468_v49 = vand.u32 2147483647, %v4443_v9  ;;  %vm4464_vm0 = vweird.f32 %v4443_v9 }
 0x68b   : > { %v4446_v22 = vsub.f32 1.0, %v4445_v23 }
 0x68c   : > { %v4471_v0 = vor.u32 1.1754944e-38, %v4470_v14  ;;  %vm4469_vm6 = vcmp.eq.f32.partialorder %v4468_v49, 8.507059e+37 }
 0x68d   : > { %v4447_v52 = vmul.f32 %v6381_v38, %v4446_v22 }
 0x68f   : > { %v4448_v35 = vadd.f32 %v6381_v38, %v4447_v52 }
 0x690   : > { %v6383_v58 = vpop.eup %6382 }
 0x691   : > { %v4452_v37 = vsel %vm4451_vm11, %v6381_v38, %v4448_v35  ;;  %v4460_v11 = vmul.f32 %v6383_v58, %v4443_v9  ;;  %vm4465_vm8 = vweird.f32 %v6383_v58 }
 0x692   : > { %v4457_v55 = vsel %vm4454_vm2, %v4456_v34, %v4452_v37  ;;  %vm4466_vm10 = vmor %vm4464_vm0, %vm4465_vm8 }
 0x693   : > { %4475 = vst.msk [vmem:[%s7158_s6] sm:$0xff] %vm4474_vm9, %v4457_v55  ;;  %v4461_v40 = vsub.f32 1.0, %v4460_v11 }
 0x695   : > { %v4462_v50 = vmul.f32 %v6383_v58, %v4461_v40 }
 0x697   : > { %v4463_v6 = vadd.f32 %v6383_v58, %v4462_v50 }
 0x699   : > { %v4467_v59 = vsel %vm4466_vm10, %v6383_v58, %v4463_v6 }
 0x69a   : > { %v4472_v7 = vsel %vm4469_vm6, %v4471_v0, %v4467_v59 }
 0x69b   : > { %4476 = vst.msk [vmem:[%s7158_s6 + $0x8] sm:$0xff] %vm4474_vm9, %v4472_v7 }
 0x69c PF: > { %s9936_s21 = sld [smem:[#allocation30_spill]] }
 0x69d   : > { %s9937_s12 = sld [smem:[#allocation19_spill]] }
 0x6a2   : > { %p6222_p8 = scmp.ge.s32.totalorder %s9936_s21, 2 }
 0x6a3   : > { %s4604_s30 = sand.u32 1, %s9937_s12  }
 0x6a4   : > { %p6216_p1 = pnand %p6222_p8, %p7059_p11  ;;  %s4605_s11 = scalar_lea.sflag [#allocation7], %s4604_s30 }
 0x6a6   : > { %p6217_p2 = pneg %p6216_p1 }
 0x6a8   : > { %6661 = dma.done.wait (%p6217_p2), %s4605_s11, 512  }
 0x6a9   : > { %6663 = vsyncadd (%p6217_p2), %s4605_s11, 4294966784  ;;  %s40_s2 = sadd.s32 1, %s9936_s21   ;;  %s9940_s3 = sld [smem:[#allocation20_spill]] }
 0x6aa   : > { %p9418_p13 = scmp.ge.s32.totalorder %s40_s2, 6   ;;  %s9941_s28 = sld [smem:[#allocation21_spill]] }
 0x6ab   : > { %s9942_s29 = sld [smem:[#allocation34_spill]] }
 0x6ac   : > { %s9943_s30 = sld [smem:[#allocation22_spill]] }
 0x6ad   : > { %s9944_s4 = sld [smem:[#allocation23_spill]] }
 0x6ae   : > { %s9945_s6 = sld [smem:[#allocation35_spill]] }
 0x6af   : > { %s9946_s23 = sld [smem:[#allocation24_spill]] }
 0x6b0   : > { %s9947_s1 = sld [smem:[#allocation25_spill]] }
 0x6b1   : > { %s9948_s5 = sld [smem:[#allocation33_spill]] }
 0x6b2   : > { %s9949_s24 = sld [smem:[#allocation28_spill]] }
 0x6b3   : > { %s9950_s9 = sld [smem:[#allocation29_spill]] }
 0x6b4   : > { %s9951_s25 = sld [smem:[#allocation31_spill]]  ;;  %s9954_s0 = smov %s9945_s6 }
 0x6b5   : > { %s9952_s26 = sld [smem:[#allocation32_spill]]  ;;  %39 = sbr.rel (!%p9418_p13) target bundleno = 35 (0x23), region = 240 }
 0x6b9   : > { %s9955_s6 = smov %s9950_s9 }
 0x6ba   :  { %4623 = vsyncpa [#allocation6], 1 }
 0x6bb   :  { %4625 = vsyncpa [#allocation6 + $0x1], 1 }
 0x6bc   :  { %4626 = vsyncpa [#allocation9], 1 }
 0x6bd   :  { %4627 = vsyncpa [#allocation7], 1 }
 0x6be   :  { %4629 = vsyncpa [#allocation7 + $0x1], 1 }

</bundles_post_ra>
